<compile_context>
chip_gen: v7x
topology: tpu7x:2x2x1
jax: 0.10.0
libtpu: 0.0.40
codegen_flags: <defaults>
</compile_context>

<pallas_src>
import functools

import jax
import jax.numpy as jnp
from jax import lax
from jax.experimental import pallas as pl
from jax.experimental.pallas import tpu as pltpu


def _pairwise_sqdist(a, b):
    # torch.cdist(a, b, p=2)**2 == |a_i|^2 + |b_j|^2 - 2 <a_i, b_j>
    a2 = jnp.sum(a * a, axis=1, keepdims=True)                     # (n, 1)
    b2 = jnp.transpose(jnp.sum(b * b, axis=1, keepdims=True))      # (1, m)
    # Contract the feature axes of both operands (no materialized transpose).
    # Kept in f32 (default precision): cancellation in a2+b2-2ab is the one
    # place where demoting to bf16 measurably hurts the cost matrix.
    ab = lax.dot_general(a, b, (((1,), (1,)), ((), ())),
                         preferred_element_type=jnp.float32)       # (n, m) MXU
    return jnp.maximum(a2 + b2 - 2.0 * ab, 0.0)


def _barycentric_kernel(xp_ref, yp_ref, xq_ref, yq_ref, xqyq_ref, out_ref,
                        mr_ref, *, reg, num_iter, absorb_every,
                        label_importance):
    f32 = jnp.float32
    bf16 = jnp.bfloat16
    n = xp_ref.shape[0]
    m = xq_ref.shape[0]

    xp = xp_ref[...].astype(f32)            # (n, d)
    yp = yp_ref[...].astype(f32)            # (n, c)
    xq = xq_ref[...].astype(f32)            # (m, d)
    yq = yq_ref[...].astype(f32)            # (m, c)

    # -------- cost matrix, built in place in mr_ref (the only persistent
    # (n, m) f32 buffer): C = C_feat + beta * C_lab;  mr = -C / reg. ---------
    mr_ref[...] = _pairwise_sqdist(xp, xq)                          # C_feat
    if label_importance is None:
        beta = jnp.max(jnp.max(mr_ref[...], axis=1, keepdims=True),
                       axis=0, keepdims=True)                       # detach().max()
    else:
        beta = f32(float(label_importance))
    mr_ref[...] = (mr_ref[...] + beta * _pairwise_sqdist(yp, yq)) * f32(-1.0 / reg)

    # Uniform marginals (module default p=None, q=None).
    inv_n = f32(1.0 / n)
    inv_m = f32(1.0 / m)
    tiny = f32(1e-33)   # underflow clamp: keeps reciprocal / log / matvec finite

    # Initial absorbed potentials: u = 0 exactly; the v stabilizer is
    # -colmax(mr) (any value is mathematically fine because b is overwritten
    # before first use); it keeps exp(mr + v0) <= 1 column-wise at cold start.
    u0 = jnp.zeros((n, 1), f32)
    if num_iter > 0:
        v0 = -jnp.max(mr_ref[...], axis=0, keepdims=True)           # (1, m)
    else:
        v0 = jnp.zeros((1, m), f32)

    def run_block_raw(u_col, v_row, steps):
        # One EUP (n, m) exp pass per block; K is kept in bf16 (halves the
        # per-block buffer, single-pass MXU for the mat-vecs below).
        k_bf = jnp.exp(mr_ref[...] + u_col + v_row).astype(bf16)    # (n, m)
        a_row = jnp.ones((1, n), f32)
        b_row = jnp.ones((1, m), f32)
        for _ in range(steps):                                      # unrolled
            # v-update: b = q / (K^T a)   ->  (1,n)@(n,m) = (1,m)   (MXU)
            colsum = jnp.dot(a_row.astype(bf16), k_bf,
                             preferred_element_type=f32)
            b_row = inv_m * pl.reciprocal(jnp.maximum(colsum, tiny), approx=True)
            # u-update: a = p / (K b)     ->  (1,m)x(n,m)^T = (1,n) (MXU)
            rowsum = lax.dot_general(b_row.astype(bf16), k_bf,
                                     (((1,), (1,)), ((), ())),
                                     preferred_element_type=f32)
            a_row = inv_n * pl.reciprocal(jnp.maximum(rowsum, tiny), approx=True)
        return k_bf, a_row, b_row

    def run_block(u_col, v_row, steps):
        _, a_row, b_row = run_block_raw(u_col, v_row, steps)
        # Absorb the scalings back into the log-domain potentials.
        return (u_col + jnp.transpose(jnp.log(a_row)),
                v_row + jnp.log(b_row))

    nb_full = num_iter // absorb_every
    rem = num_iter % absorb_every
    if num_iter == 0:
        loop_blocks, last_steps = 0, 0
    elif rem:
        loop_blocks, last_steps = nb_full, rem
    else:
        loop_blocks, last_steps = nb_full - 1, absorb_every

    def outer(_, carry):
        u_col, v_row = carry
        return run_block(u_col, v_row, absorb_every)

    u_col, v_row = lax.fori_loop(0, loop_blocks, outer, (u0, v0))

    # Final block: keep its K and scalings and fold the plan into the output
    # matmul.  pi = a_col * K * b_row, and with uniform p (=1/n):
    #   TX = (pi / p) @ [XQ|YQ] = n * a_col * (K @ (b_col * [XQ|YQ]))
    k_bf, a_row, b_row = run_block_raw(u_col, v_row, last_steps)
    rhs = (jnp.transpose(b_row) * xqyq_ref[...].astype(f32)).astype(bf16)
    out = jnp.dot(k_bf, rhs, preferred_element_type=f32)            # (n, dc_pad)
    out_ref[...] = (f32(n) * jnp.transpose(a_row) * out).astype(out_ref.dtype)


def supervised_barycentric_mapping(XP, XQ, YP, YQ, *, reg=0.5,
                                   num_iter_sinkhorn=50, label_importance=None,
                                   absorb_every=5):
    assert reg > 0.0, "reg == 0.0 (exact EMD) is not supported in the Pallas kernel"
    n, d = XP.shape
    m, d2 = XQ.shape
    n2, c = YP.shape
    m2, c2 = YQ.shape
    assert d == d2 and n == n2 and m == m2 and c == c2

    f32 = jnp.float32
    XPf, YPf = XP.astype(f32), YP.astype(f32)
    XQf, YQf = XQ.astype(f32), YQ.astype(f32)

    # Fused output operand [XQ | YQ], zero-padded to a 128-lane multiple in the
    # wrapper (keeps the kernel free of lane slices/concats; lane-dense store).
    dc = d + c
    dc_pad = ((dc + 127) // 128) * 128
    xqyq = jnp.zeros((m, dc_pad), f32)
    xqyq = xqyq.at[:, :d].set(XQf)
    xqyq = xqyq.at[:, d:dc].set(YQf)

    kernel = functools.partial(
        _barycentric_kernel,
        reg=float(reg),
        num_iter=int(num_iter_sinkhorn),
        absorb_every=max(1, int(absorb_every)),
        label_importance=label_importance)

    # VMEM budget: mr (f32) + K (bf16) + elementwise transients + I/O slabs,
    # clamped to the device's physical per-core VMEM minus compiler headroom.
    try:
        vmem_cap = int(pltpu.get_tpu_info().vmem_capacity_bytes)
    except Exception:  # conservative lower bound across v5e / v6e / v7x
        vmem_cap = 64 * 2**20
    io_bytes = 4 * (n * d + n * c + m * d + m * c + m * dc_pad + n * dc_pad)
    need = int(n * m * 10 + io_bytes + (2 << 20))
    vmem_bytes = int(min(vmem_cap - (8 << 20), max(need, 32 << 20)))

    def build(single_buffer):
        def spec(shape):
            idx = lambda i: (0,) * len(shape)
            if single_buffer and hasattr(pl, "Buffered"):
                # grid=(1,): double-buffering the I/O slabs buys nothing.
                return pl.BlockSpec(shape, idx, pipeline_mode=pl.Buffered(1))
            return pl.BlockSpec(shape, idx)
        return pl.pallas_call(
            kernel,
            grid=(1,),
            in_specs=[spec((n, d)), spec((n, c)), spec((m, d)), spec((m, c)),
                      spec((m, dc_pad))],
            out_specs=spec((n, dc_pad)),
            out_shape=jax.ShapeDtypeStruct((n, dc_pad), f32),
            scratch_shapes=[pltpu.VMEM((n, m), f32)],
            compiler_params=pltpu.CompilerParams(
                dimension_semantics=("arbitrary",),
                vmem_limit_bytes=vmem_bytes),
        )

    try:
        out = build(True)(XPf, YPf, XQf, YQf, xqyq)
    except Exception:
        # Fallback for jax versions without pipeline_mode / Buffered(1).
        out = build(False)(XPf, YPf, XQf, YQf, xqyq)

    return out[:, :d], out[:, d:dc]


def _reference(XP, XQ, YP, YQ, reg, num_iter, label_importance):
    # Pure-JAX mirror of the module: cdist**2 costs + POT sinkhorn_log + matmuls.
    def sq(a, b):
        a2 = jnp.sum(a * a, axis=1)[:, None]
        b2 = jnp.sum(b * b, axis=1)[None, :]
        return jnp.maximum(a2 + b2 - 2.0 * (a @ b.T), 0.0)

    cf = sq(XP, XQ)
    beta = cf.max() if label_importance is None else jnp.float32(label_importance)
    C = cf + beta * sq(YP, YQ)
    n, m = C.shape
    mr = -C / reg
    log_p = -jnp.log(jnp.float32(n)) * jnp.ones((n, 1), jnp.float32)
    log_q = -jnp.log(jnp.float32(m)) * jnp.ones((1, m), jnp.float32)
    u = jnp.zeros((n, 1), jnp.float32)
    v = jnp.zeros((1, m), jnp.float32)
    for _ in range(num_iter):
        v = log_q - jax.scipy.special.logsumexp(mr + u, axis=0, keepdims=True)
        u = log_p - jax.scipy.special.logsumexp(mr + v, axis=1, keepdims=True)
    pi = jnp.exp(mr + u + v)
    return n * (pi @ XQ), n * (pi @ YQ)


if __name__ == "__main__":
    key = jax.random.PRNGKey(0)
    k1, k2, k3, k4 = jax.random.split(key, 4)

    n, m, d, c = 32, 24, 16, 4
    XP = jax.random.normal(k1, (n, d), jnp.float32)
    XQ = 0.5 * jax.random.normal(k2, (m, d), jnp.float32) + 1.0
    YP = jax.nn.one_hot(jax.random.randint(k3, (n,), 0, c), c, dtype=jnp.float32)
    YQ = jax.nn.one_hot(jax.random.randint(k4, (m,), 0, c), c, dtype=jnp.float32)

    TXP, TYP = supervised_barycentric_mapping(
        XP, XQ, YP, YQ, reg=0.5, num_iter_sinkhorn=50, label_importance=None)
    jax.block_until_ready((TXP, TYP))

    assert TXP.shape == (n, d) and TXP.dtype == jnp.float32
    assert TYP.shape == (n, c) and TYP.dtype == jnp.float32
    assert bool(jnp.all(jnp.isfinite(TXP))) and bool(jnp.all(jnp.isfinite(TYP)))

    # Numerical check against the straightforward log-domain reference.
    TXP_ref, TYP_ref = _reference(XP, XQ, YP, YQ, 0.5, 50, None)
    assert float(jnp.mean(jnp.abs(TXP - TXP_ref))) < 5e-2
    assert float(jnp.mean(jnp.abs(TYP - TYP_ref))) < 5e-2

    print("KERNEL_OK")
</pallas_src>

<mosaic_0001>
module attributes {stable_mosaic.version = 11 : i64} {
  func.func @_barycentric_kernel(%arg0: i32, %arg1: memref<32x16xf32, #tpu.memory_space<vmem>>, %arg2: memref<32x4xf32, #tpu.memory_space<vmem>>, %arg3: memref<24x16xf32, #tpu.memory_space<vmem>>, %arg4: memref<24x4xf32, #tpu.memory_space<vmem>>, %arg5: memref<24x128xf32, #tpu.memory_space<vmem>>, %arg6: memref<32x128xf32, #tpu.memory_space<vmem>>, %arg7: memref<32x24xf32, #tpu.memory_space<vmem>>) attributes {dimension_semantics = [#tpu.dimension_semantics<arbitrary>], iteration_bounds = array<i64: 1>, scalar_prefetch = 0 : i64, scratch_operands = 1 : i64, tpu.core_type = #tpu.core_type<tc>, window_params = [{pipeline_mode = #tpu.pipeline_mode<synchronous>, transform_indices = @transform_0, window_bounds = array<i64: 32, 16>}, {pipeline_mode = #tpu.pipeline_mode<synchronous>, transform_indices = @transform_1, window_bounds = array<i64: 32, 4>}, {pipeline_mode = #tpu.pipeline_mode<synchronous>, transform_indices = @transform_2, window_bounds = array<i64: 24, 16>}, {pipeline_mode = #tpu.pipeline_mode<synchronous>, transform_indices = @transform_3, window_bounds = array<i64: 24, 4>}, {pipeline_mode = #tpu.pipeline_mode<synchronous>, transform_indices = @transform_4, window_bounds = array<i64: 24, 128>}, {pipeline_mode = #tpu.pipeline_mode<synchronous>, transform_indices = @transform_5, window_bounds = array<i64: 32, 128>}]} {
    %c0 = arith.constant 0 : index
    %c0_0 = arith.constant 0 : index
    %0 = vector.load %arg1[%c0, %c0_0] : memref<32x16xf32, #tpu.memory_space<vmem>>, vector<32x16xf32>
    %c0_1 = arith.constant 0 : index
    %c0_2 = arith.constant 0 : index
    %1 = vector.load %arg2[%c0_1, %c0_2] : memref<32x4xf32, #tpu.memory_space<vmem>>, vector<32x4xf32>
    %c0_3 = arith.constant 0 : index
    %c0_4 = arith.constant 0 : index
    %2 = vector.load %arg3[%c0_3, %c0_4] : memref<24x16xf32, #tpu.memory_space<vmem>>, vector<24x16xf32>
    %c0_5 = arith.constant 0 : index
    %c0_6 = arith.constant 0 : index
    %3 = vector.load %arg4[%c0_5, %c0_6] : memref<24x4xf32, #tpu.memory_space<vmem>>, vector<24x4xf32>
    %4 = arith.mulf %0, %0 : vector<32x16xf32>
    %cst = arith.constant dense<0.000000e+00> : vector<32xf32>
    %5 = vector.multi_reduction <add>, %4, %cst [1] : vector<32x16xf32> to vector<32xf32>
    %6 = vector.shape_cast %5 : vector<32xf32> to vector<32x1xf32>
    %7 = arith.mulf %2, %2 : vector<24x16xf32>
    %cst_7 = arith.constant dense<0.000000e+00> : vector<24xf32>
    %8 = vector.multi_reduction <add>, %7, %cst_7 [1] : vector<24x16xf32> to vector<24xf32>
    %9 = vector.shape_cast %8 : vector<24xf32> to vector<24x1xf32>
    %10 = tpu.transpose %9, [1, 0] : vector<24x1xf32> -> vector<1x24xf32>
    %cst_8 = arith.constant dense<0.000000e+00> : vector<32x24xf32>
    %11 = tpu.matmul %0, %2, %cst_8 {dimension_numbers = #tpu.dot_dimension_numbers<[1], [1], [0], [0], [0, 0, 1, 0], [], []>} : vector<32x16xf32>, vector<24x16xf32>, vector<32x24xf32> -> vector<32x24xf32>
    %12 = vector.broadcast %6 : vector<32x1xf32> to vector<32x24xf32>
    %13 = vector.broadcast %10 : vector<1x24xf32> to vector<32x24xf32>
    %14 = arith.addf %12, %13 : vector<32x24xf32>
    %cst_9 = arith.constant 2.000000e+00 : f32
    %15 = vector.broadcast %cst_9 : f32 to vector<32x24xf32>
    %16 = arith.mulf %15, %11 : vector<32x24xf32>
    %17 = arith.subf %14, %16 : vector<32x24xf32>
    %cst_10 = arith.constant 0.000000e+00 : f32
    %18 = vector.broadcast %cst_10 : f32 to vector<32x24xf32>
    %19 = arith.maximumf %17, %18 : vector<32x24xf32>
    %c0_11 = arith.constant 0 : index
    %c0_12 = arith.constant 0 : index
    %20 = vector.load %arg7[%c0_11, %c0_12] : memref<32x24xf32, #tpu.memory_space<vmem>>, vector<32x24xf32>
    tpu.vector_store %arg7[%c0_11, %c0_12], %19 {strides = array<i32>} : memref<32x24xf32, #tpu.memory_space<vmem>>, vector<32x24xf32>,
    %c0_13 = arith.constant 0 : index
    %c0_14 = arith.constant 0 : index
    %21 = vector.load %arg7[%c0_13, %c0_14] : memref<32x24xf32, #tpu.memory_space<vmem>>, vector<32x24xf32>
    %cst_15 = arith.constant dense<0xFF800000> : vector<32xf32>
    %22 = vector.multi_reduction <maximumf>, %21, %cst_15 [1] : vector<32x24xf32> to vector<32xf32>
    %23 = vector.shape_cast %22 : vector<32xf32> to vector<32x1xf32>
    %cst_16 = arith.constant dense<0xFF800000> : vector<1xf32>
    %24 = vector.multi_reduction <maximumf>, %23, %cst_16 [0] : vector<32x1xf32> to vector<1xf32>
    %25 = vector.shape_cast %24 : vector<1xf32> to vector<1x1xf32>
    %c0_17 = arith.constant 0 : index
    %c0_18 = arith.constant 0 : index
    %26 = vector.load %arg7[%c0_17, %c0_18] : memref<32x24xf32, #tpu.memory_space<vmem>>, vector<32x24xf32>
    %27 = arith.mulf %1, %1 : vector<32x4xf32>
    %cst_19 = arith.constant dense<0.000000e+00> : vector<32xf32>
    %28 = vector.multi_reduction <add>, %27, %cst_19 [1] : vector<32x4xf32> to vector<32xf32>
    %29 = vector.shape_cast %28 : vector<32xf32> to vector<32x1xf32>
    %30 = arith.mulf %3, %3 : vector<24x4xf32>
    %cst_20 = arith.constant dense<0.000000e+00> : vector<24xf32>
    %31 = vector.multi_reduction <add>, %30, %cst_20 [1] : vector<24x4xf32> to vector<24xf32>
    %32 = vector.shape_cast %31 : vector<24xf32> to vector<24x1xf32>
    %33 = tpu.transpose %32, [1, 0] : vector<24x1xf32> -> vector<1x24xf32>
    %cst_21 = arith.constant dense<0.000000e+00> : vector<32x24xf32>
    %34 = tpu.matmul %1, %3, %cst_21 {dimension_numbers = #tpu.dot_dimension_numbers<[1], [1], [0], [0], [0, 0, 1, 0], [], []>} : vector<32x4xf32>, vector<24x4xf32>, vector<32x24xf32> -> vector<32x24xf32>
    %35 = vector.broadcast %29 : vector<32x1xf32> to vector<32x24xf32>
    %36 = vector.broadcast %33 : vector<1x24xf32> to vector<32x24xf32>
    %37 = arith.addf %35, %36 : vector<32x24xf32>
    %cst_22 = arith.constant 2.000000e+00 : f32
    %38 = vector.broadcast %cst_22 : f32 to vector<32x24xf32>
    %39 = arith.mulf %38, %34 : vector<32x24xf32>
    %40 = arith.subf %37, %39 : vector<32x24xf32>
    %cst_23 = arith.constant 0.000000e+00 : f32
    %41 = vector.broadcast %cst_23 : f32 to vector<32x24xf32>
    %42 = arith.maximumf %40, %41 : vector<32x24xf32>
    %43 = vector.broadcast %25 : vector<1x1xf32> to vector<32x24xf32>
    %44 = arith.mulf %43, %42 : vector<32x24xf32>
    %45 = arith.addf %26, %44 : vector<32x24xf32>
    %cst_24 = arith.constant -2.000000e+00 : f32
    %46 = vector.broadcast %cst_24 : f32 to vector<32x24xf32>
    %47 = arith.mulf %45, %46 : vector<32x24xf32>
    %c0_25 = arith.constant 0 : index
    %c0_26 = arith.constant 0 : index
    %48 = vector.load %arg7[%c0_25, %c0_26] : memref<32x24xf32, #tpu.memory_space<vmem>>, vector<32x24xf32>
    tpu.vector_store %arg7[%c0_25, %c0_26], %47 {strides = array<i32>} : memref<32x24xf32, #tpu.memory_space<vmem>>, vector<32x24xf32>,
    %cst_27 = arith.constant 0.000000e+00 : f32
    %49 = vector.broadcast %cst_27 : f32 to vector<32x1xf32>
    %c0_28 = arith.constant 0 : index
    %c0_29 = arith.constant 0 : index
    %50 = vector.load %arg7[%c0_28, %c0_29] : memref<32x24xf32, #tpu.memory_space<vmem>>, vector<32x24xf32>
    %cst_30 = arith.constant dense<0xFF800000> : vector<24xf32>
    %51 = vector.multi_reduction <maximumf>, %50, %cst_30 [0] : vector<32x24xf32> to vector<24xf32>
    %52 = vector.shape_cast %51 : vector<24xf32> to vector<1x24xf32>
    %cst_31 = arith.constant 0.000000e+00 : f32
    %53 = vector.broadcast %cst_31 : f32 to vector<1x24xf32>
    %54 = arith.subf %53, %52 : vector<1x24xf32>
    %cst_32 = arith.constant 1.000000e-33 : f32
    %cst_33 = arith.constant 0.0416666679 : f32
    %cst_34 = arith.constant 3.125000e-02 : f32
    %c0_i32 = arith.constant 0 : i32
    %c9_i32 = arith.constant 9 : i32
    %55 = arith.addi %c0_i32, %c9_i32 : i32
    %c1_i32 = arith.constant 1 : i32
    %56:2 = scf.for %arg8 = %c0_i32 to %55 step %c1_i32 iter_args(%arg9 = %49, %arg10 = %54) -> (vector<32x1xf32>, vector<1x24xf32>)  : i32 {
      %c0_74 = arith.constant 0 : index
      %c0_75 = arith.constant 0 : index
      %147 = vector.load %arg7[%c0_74, %c0_75] : memref<32x24xf32, #tpu.memory_space<vmem>>, vector<32x24xf32>
      %148 = vector.broadcast %arg9 : vector<32x1xf32> to vector<32x24xf32>
      %149 = arith.addf %147, %148 : vector<32x24xf32>
      %150 = vector.broadcast %arg10 : vector<1x24xf32> to vector<32x24xf32>
      %151 = arith.addf %149, %150 : vector<32x24xf32>
      %152 = math.exp %151 : vector<32x24xf32>
      %153 = arith.truncf %152 : vector<32x24xf32> to vector<32x24xbf16>
      %cst_76 = arith.constant 1.000000e+00 : f32
      %154 = vector.broadcast %cst_76 : f32 to vector<1x32xf32>
      %155 = arith.truncf %154 : vector<1x32xf32> to vector<1x32xbf16>
      %cst_77 = arith.constant dense<0.000000e+00> : vector<1x24xf32>
      %156 = tpu.matmul %155, %153, %cst_77 {dimension_numbers = #tpu.dot_dimension_numbers<[1], [0], [0], [1], [0, 0, 1, 1], [], []>} : vector<1x32xbf16>, vector<32x24xbf16>, vector<1x24xf32> -> vector<1x24xf32>
      %157 = vector.broadcast %cst_32 : f32 to vector<1x24xf32>
      %158 = arith.maximumf %156, %157 : vector<1x24xf32>
      %159 = tpu.reciprocal %158 {approx = true} : vector<1x24xf32> -> vector<1x24xf32>
      %160 = vector.broadcast %cst_33 : f32 to vector<1x24xf32>
      %161 = arith.mulf %160, %159 : vector<1x24xf32>
      %162 = arith.truncf %161 : vector<1x24xf32> to vector<1x24xbf16>
      %cst_78 = arith.constant dense<0.000000e+00> : vector<1x32xf32>
      %163 = tpu.matmul %162, %153, %cst_78 {dimension_numbers = #tpu.dot_dimension_numbers<[1], [1], [0], [0], [0, 0, 1, 0], [], []>} : vector<1x24xbf16>, vector<32x24xbf16>, vector<1x32xf32> -> vector<1x32xf32>
      %164 = vector.broadcast %cst_32 : f32 to vector<1x32xf32>
      %165 = arith.maximumf %163, %164 : vector<1x32xf32>
      %166 = tpu.reciprocal %165 {approx = true} : vector<1x32xf32> -> vector<1x32xf32>
      %167 = vector.broadcast %cst_34 : f32 to vector<1x32xf32>
      %168 = arith.mulf %167, %166 : vector<1x32xf32>
      %169 = arith.truncf %168 : vector<1x32xf32> to vector<1x32xbf16>
      %cst_79 = arith.constant dense<0.000000e+00> : vector<1x24xf32>
      %170 = tpu.matmul %169, %153, %cst_79 {dimension_numbers = #tpu.dot_dimension_numbers<[1], [0], [0], [1], [0, 0, 1, 1], [], []>} : vector<1x32xbf16>, vector<32x24xbf16>, vector<1x24xf32> -> vector<1x24xf32>
      %171 = vector.broadcast %cst_32 : f32 to vector<1x24xf32>
      %172 = arith.maximumf %170, %171 : vector<1x24xf32>
      %173 = tpu.reciprocal %172 {approx = true} : vector<1x24xf32> -> vector<1x24xf32>
      %174 = vector.broadcast %cst_33 : f32 to vector<1x24xf32>
      %175 = arith.mulf %174, %173 : vector<1x24xf32>
      %176 = arith.truncf %175 : vector<1x24xf32> to vector<1x24xbf16>
      %cst_80 = arith.constant dense<0.000000e+00> : vector<1x32xf32>
      %177 = tpu.matmul %176, %153, %cst_80 {dimension_numbers = #tpu.dot_dimension_numbers<[1], [1], [0], [0], [0, 0, 1, 0], [], []>} : vector<1x24xbf16>, vector<32x24xbf16>, vector<1x32xf32> -> vector<1x32xf32>
      %178 = vector.broadcast %cst_32 : f32 to vector<1x32xf32>
      %179 = arith.maximumf %177, %178 : vector<1x32xf32>
      %180 = tpu.reciprocal %179 {approx = true} : vector<1x32xf32> -> vector<1x32xf32>
      %181 = vector.broadcast %cst_34 : f32 to vector<1x32xf32>
      %182 = arith.mulf %181, %180 : vector<1x32xf32>
      %183 = arith.truncf %182 : vector<1x32xf32> to vector<1x32xbf16>
      %cst_81 = arith.constant dense<0.000000e+00> : vector<1x24xf32>
      %184 = tpu.matmul %183, %153, %cst_81 {dimension_numbers = #tpu.dot_dimension_numbers<[1], [0], [0], [1], [0, 0, 1, 1], [], []>} : vector<1x32xbf16>, vector<32x24xbf16>, vector<1x24xf32> -> vector<1x24xf32>
      %185 = vector.broadcast %cst_32 : f32 to vector<1x24xf32>
      %186 = arith.maximumf %184, %185 : vector<1x24xf32>
      %187 = tpu.reciprocal %186 {approx = true} : vector<1x24xf32> -> vector<1x24xf32>
      %188 = vector.broadcast %cst_33 : f32 to vector<1x24xf32>
      %189 = arith.mulf %188, %187 : vector<1x24xf32>
      %190 = arith.truncf %189 : vector<1x24xf32> to vector<1x24xbf16>
      %cst_82 = arith.constant dense<0.000000e+00> : vector<1x32xf32>
      %191 = tpu.matmul %190, %153, %cst_82 {dimension_numbers = #tpu.dot_dimension_numbers<[1], [1], [0], [0], [0, 0, 1, 0], [], []>} : vector<1x24xbf16>, vector<32x24xbf16>, vector<1x32xf32> -> vector<1x32xf32>
      %192 = vector.broadcast %cst_32 : f32 to vector<1x32xf32>
      %193 = arith.maximumf %191, %192 : vector<1x32xf32>
      %194 = tpu.reciprocal %193 {approx = true} : vector<1x32xf32> -> vector<1x32xf32>
      %195 = vector.broadcast %cst_34 : f32 to vector<1x32xf32>
      %196 = arith.mulf %195, %194 : vector<1x32xf32>
      %197 = arith.truncf %196 : vector<1x32xf32> to vector<1x32xbf16>
      %cst_83 = arith.constant dense<0.000000e+00> : vector<1x24xf32>
      %198 = tpu.matmul %197, %153, %cst_83 {dimension_numbers = #tpu.dot_dimension_numbers<[1], [0], [0], [1], [0, 0, 1, 1], [], []>} : vector<1x32xbf16>, vector<32x24xbf16>, vector<1x24xf32> -> vector<1x24xf32>
      %199 = vector.broadcast %cst_32 : f32 to vector<1x24xf32>
      %200 = arith.maximumf %198, %199 : vector<1x24xf32>
      %201 = tpu.reciprocal %200 {approx = true} : vector<1x24xf32> -> vector<1x24xf32>
      %202 = vector.broadcast %cst_33 : f32 to vector<1x24xf32>
      %203 = arith.mulf %202, %201 : vector<1x24xf32>
      %204 = arith.truncf %203 : vector<1x24xf32> to vector<1x24xbf16>
      %cst_84 = arith.constant dense<0.000000e+00> : vector<1x32xf32>
      %205 = tpu.matmul %204, %153, %cst_84 {dimension_numbers = #tpu.dot_dimension_numbers<[1], [1], [0], [0], [0, 0, 1, 0], [], []>} : vector<1x24xbf16>, vector<32x24xbf16>, vector<1x32xf32> -> vector<1x32xf32>
      %206 = vector.broadcast %cst_32 : f32 to vector<1x32xf32>
      %207 = arith.maximumf %205, %206 : vector<1x32xf32>
      %208 = tpu.reciprocal %207 {approx = true} : vector<1x32xf32> -> vector<1x32xf32>
      %209 = vector.broadcast %cst_34 : f32 to vector<1x32xf32>
      %210 = arith.mulf %209, %208 : vector<1x32xf32>
      %211 = arith.truncf %210 : vector<1x32xf32> to vector<1x32xbf16>
      %cst_85 = arith.constant dense<0.000000e+00> : vector<1x24xf32>
      %212 = tpu.matmul %211, %153, %cst_85 {dimension_numbers = #tpu.dot_dimension_numbers<[1], [0], [0], [1], [0, 0, 1, 1], [], []>} : vector<1x32xbf16>, vector<32x24xbf16>, vector<1x24xf32> -> vector<1x24xf32>
      %213 = vector.broadcast %cst_32 : f32 to vector<1x24xf32>
      %214 = arith.maximumf %212, %213 : vector<1x24xf32>
      %215 = tpu.reciprocal %214 {approx = true} : vector<1x24xf32> -> vector<1x24xf32>
      %216 = vector.broadcast %cst_33 : f32 to vector<1x24xf32>
      %217 = arith.mulf %216, %215 : vector<1x24xf32>
      %218 = arith.truncf %217 : vector<1x24xf32> to vector<1x24xbf16>
      %cst_86 = arith.constant dense<0.000000e+00> : vector<1x32xf32>
      %219 = tpu.matmul %218, %153, %cst_86 {dimension_numbers = #tpu.dot_dimension_numbers<[1], [1], [0], [0], [0, 0, 1, 0], [], []>} : vector<1x24xbf16>, vector<32x24xbf16>, vector<1x32xf32> -> vector<1x32xf32>
      %220 = vector.broadcast %cst_32 : f32 to vector<1x32xf32>
      %221 = arith.maximumf %219, %220 : vector<1x32xf32>
      %222 = tpu.reciprocal %221 {approx = true} : vector<1x32xf32> -> vector<1x32xf32>
      %223 = vector.broadcast %cst_34 : f32 to vector<1x32xf32>
      %224 = arith.mulf %223, %222 : vector<1x32xf32>
      %225 = math.log %224 : vector<1x32xf32>
      %226 = tpu.transpose %225, [1, 0] : vector<1x32xf32> -> vector<32x1xf32>
      %227 = arith.addf %arg9, %226 : vector<32x1xf32>
      %228 = math.log %217 : vector<1x24xf32>
      %229 = arith.addf %arg10, %228 : vector<1x24xf32>
      scf.yield %227, %229 : vector<32x1xf32>, vector<1x24xf32>
    }
    %c0_35 = arith.constant 0 : index
    %c0_36 = arith.constant 0 : index
    %57 = vector.load %arg7[%c0_35, %c0_36] : memref<32x24xf32, #tpu.memory_space<vmem>>, vector<32x24xf32>
    %58 = vector.broadcast %56#0 : vector<32x1xf32> to vector<32x24xf32>
    %59 = arith.addf %57, %58 : vector<32x24xf32>
    %60 = vector.broadcast %56#1 : vector<1x24xf32> to vector<32x24xf32>
    %61 = arith.addf %59, %60 : vector<32x24xf32>
    %62 = math.exp %61 : vector<32x24xf32>
    %63 = arith.truncf %62 : vector<32x24xf32> to vector<32x24xbf16>
    %cst_37 = arith.constant 1.000000e+00 : f32
    %64 = vector.broadcast %cst_37 : f32 to vector<1x32xf32>
    %65 = arith.truncf %64 : vector<1x32xf32> to vector<1x32xbf16>
    %cst_38 = arith.constant dense<0.000000e+00> : vector<1x24xf32>
    %66 = tpu.matmul %65, %63, %cst_38 {dimension_numbers = #tpu.dot_dimension_numbers<[1], [0], [0], [1], [0, 0, 1, 1], [], []>} : vector<1x32xbf16>, vector<32x24xbf16>, vector<1x24xf32> -> vector<1x24xf32>
    %cst_39 = arith.constant 1.000000e-33 : f32
    %67 = vector.broadcast %cst_39 : f32 to vector<1x24xf32>
    %68 = arith.maximumf %66, %67 : vector<1x24xf32>
    %69 = tpu.reciprocal %68 {approx = true} : vector<1x24xf32> -> vector<1x24xf32>
    %cst_40 = arith.constant 0.0416666679 : f32
    %70 = vector.broadcast %cst_40 : f32 to vector<1x24xf32>
    %71 = arith.mulf %70, %69 : vector<1x24xf32>
    %72 = arith.truncf %71 : vector<1x24xf32> to vector<1x24xbf16>
    %cst_41 = arith.constant dense<0.000000e+00> : vector<1x32xf32>
    %73 = tpu.matmul %72, %63, %cst_41 {dimension_numbers = #tpu.dot_dimension_numbers<[1], [1], [0], [0], [0, 0, 1, 0], [], []>} : vector<1x24xbf16>, vector<32x24xbf16>, vector<1x32xf32> -> vector<1x32xf32>
    %cst_42 = arith.constant 1.000000e-33 : f32
    %74 = vector.broadcast %cst_42 : f32 to vector<1x32xf32>
    %75 = arith.maximumf %73, %74 : vector<1x32xf32>
    %76 = tpu.reciprocal %75 {approx = true} : vector<1x32xf32> -> vector<1x32xf32>
    %cst_43 = arith.constant 3.125000e-02 : f32
    %77 = vector.broadcast %cst_43 : f32 to vector<1x32xf32>
    %78 = arith.mulf %77, %76 : vector<1x32xf32>
    %79 = arith.truncf %78 : vector<1x32xf32> to vector<1x32xbf16>
    %cst_44 = arith.constant dense<0.000000e+00> : vector<1x24xf32>
    %80 = tpu.matmul %79, %63, %cst_44 {dimension_numbers = #tpu.dot_dimension_numbers<[1], [0], [0], [1], [0, 0, 1, 1], [], []>} : vector<1x32xbf16>, vector<32x24xbf16>, vector<1x24xf32> -> vector<1x24xf32>
    %cst_45 = arith.constant 1.000000e-33 : f32
    %81 = vector.broadcast %cst_45 : f32 to vector<1x24xf32>
    %82 = arith.maximumf %80, %81 : vector<1x24xf32>
    %83 = tpu.reciprocal %82 {approx = true} : vector<1x24xf32> -> vector<1x24xf32>
    %cst_46 = arith.constant 0.0416666679 : f32
    %84 = vector.broadcast %cst_46 : f32 to vector<1x24xf32>
    %85 = arith.mulf %84, %83 : vector<1x24xf32>
    %86 = arith.truncf %85 : vector<1x24xf32> to vector<1x24xbf16>
    %cst_47 = arith.constant dense<0.000000e+00> : vector<1x32xf32>
    %87 = tpu.matmul %86, %63, %cst_47 {dimension_numbers = #tpu.dot_dimension_numbers<[1], [1], [0], [0], [0, 0, 1, 0], [], []>} : vector<1x24xbf16>, vector<32x24xbf16>, vector<1x32xf32> -> vector<1x32xf32>
    %cst_48 = arith.constant 1.000000e-33 : f32
    %88 = vector.broadcast %cst_48 : f32 to vector<1x32xf32>
    %89 = arith.maximumf %87, %88 : vector<1x32xf32>
    %90 = tpu.reciprocal %89 {approx = true} : vector<1x32xf32> -> vector<1x32xf32>
    %cst_49 = arith.constant 3.125000e-02 : f32
    %91 = vector.broadcast %cst_49 : f32 to vector<1x32xf32>
    %92 = arith.mulf %91, %90 : vector<1x32xf32>
    %93 = arith.truncf %92 : vector<1x32xf32> to vector<1x32xbf16>
    %cst_50 = arith.constant dense<0.000000e+00> : vector<1x24xf32>
    %94 = tpu.matmul %93, %63, %cst_50 {dimension_numbers = #tpu.dot_dimension_numbers<[1], [0], [0], [1], [0, 0, 1, 1], [], []>} : vector<1x32xbf16>, vector<32x24xbf16>, vector<1x24xf32> -> vector<1x24xf32>
    %cst_51 = arith.constant 1.000000e-33 : f32
    %95 = vector.broadcast %cst_51 : f32 to vector<1x24xf32>
    %96 = arith.maximumf %94, %95 : vector<1x24xf32>
    %97 = tpu.reciprocal %96 {approx = true} : vector<1x24xf32> -> vector<1x24xf32>
    %cst_52 = arith.constant 0.0416666679 : f32
    %98 = vector.broadcast %cst_52 : f32 to vector<1x24xf32>
    %99 = arith.mulf %98, %97 : vector<1x24xf32>
    %100 = arith.truncf %99 : vector<1x24xf32> to vector<1x24xbf16>
    %cst_53 = arith.constant dense<0.000000e+00> : vector<1x32xf32>
    %101 = tpu.matmul %100, %63, %cst_53 {dimension_numbers = #tpu.dot_dimension_numbers<[1], [1], [0], [0], [0, 0, 1, 0], [], []>} : vector<1x24xbf16>, vector<32x24xbf16>, vector<1x32xf32> -> vector<1x32xf32>
    %cst_54 = arith.constant 1.000000e-33 : f32
    %102 = vector.broadcast %cst_54 : f32 to vector<1x32xf32>
    %103 = arith.maximumf %101, %102 : vector<1x32xf32>
    %104 = tpu.reciprocal %103 {approx = true} : vector<1x32xf32> -> vector<1x32xf32>
    %cst_55 = arith.constant 3.125000e-02 : f32
    %105 = vector.broadcast %cst_55 : f32 to vector<1x32xf32>
    %106 = arith.mulf %105, %104 : vector<1x32xf32>
    %107 = arith.truncf %106 : vector<1x32xf32> to vector<1x32xbf16>
    %cst_56 = arith.constant dense<0.000000e+00> : vector<1x24xf32>
    %108 = tpu.matmul %107, %63, %cst_56 {dimension_numbers = #tpu.dot_dimension_numbers<[1], [0], [0], [1], [0, 0, 1, 1], [], []>} : vector<1x32xbf16>, vector<32x24xbf16>, vector<1x24xf32> -> vector<1x24xf32>
    %cst_57 = arith.constant 1.000000e-33 : f32
    %109 = vector.broadcast %cst_57 : f32 to vector<1x24xf32>
    %110 = arith.maximumf %108, %109 : vector<1x24xf32>
    %111 = tpu.reciprocal %110 {approx = true} : vector<1x24xf32> -> vector<1x24xf32>
    %cst_58 = arith.constant 0.0416666679 : f32
    %112 = vector.broadcast %cst_58 : f32 to vector<1x24xf32>
    %113 = arith.mulf %112, %111 : vector<1x24xf32>
    %114 = arith.truncf %113 : vector<1x24xf32> to vector<1x24xbf16>
    %cst_59 = arith.constant dense<0.000000e+00> : vector<1x32xf32>
    %115 = tpu.matmul %114, %63, %cst_59 {dimension_numbers = #tpu.dot_dimension_numbers<[1], [1], [0], [0], [0, 0, 1, 0], [], []>} : vector<1x24xbf16>, vector<32x24xbf16>, vector<1x32xf32> -> vector<1x32xf32>
    %cst_60 = arith.constant 1.000000e-33 : f32
    %116 = vector.broadcast %cst_60 : f32 to vector<1x32xf32>
    %117 = arith.maximumf %115, %116 : vector<1x32xf32>
    %118 = tpu.reciprocal %117 {approx = true} : vector<1x32xf32> -> vector<1x32xf32>
    %cst_61 = arith.constant 3.125000e-02 : f32
    %119 = vector.broadcast %cst_61 : f32 to vector<1x32xf32>
    %120 = arith.mulf %119, %118 : vector<1x32xf32>
    %121 = arith.truncf %120 : vector<1x32xf32> to vector<1x32xbf16>
    %cst_62 = arith.constant dense<0.000000e+00> : vector<1x24xf32>
    %122 = tpu.matmul %121, %63, %cst_62 {dimension_numbers = #tpu.dot_dimension_numbers<[1], [0], [0], [1], [0, 0, 1, 1], [], []>} : vector<1x32xbf16>, vector<32x24xbf16>, vector<1x24xf32> -> vector<1x24xf32>
    %cst_63 = arith.constant 1.000000e-33 : f32
    %123 = vector.broadcast %cst_63 : f32 to vector<1x24xf32>
    %124 = arith.maximumf %122, %123 : vector<1x24xf32>
    %125 = tpu.reciprocal %124 {approx = true} : vector<1x24xf32> -> vector<1x24xf32>
    %cst_64 = arith.constant 0.0416666679 : f32
    %126 = vector.broadcast %cst_64 : f32 to vector<1x24xf32>
    %127 = arith.mulf %126, %125 : vector<1x24xf32>
    %128 = arith.truncf %127 : vector<1x24xf32> to vector<1x24xbf16>
    %cst_65 = arith.constant dense<0.000000e+00> : vector<1x32xf32>
    %129 = tpu.matmul %128, %63, %cst_65 {dimension_numbers = #tpu.dot_dimension_numbers<[1], [1], [0], [0], [0, 0, 1, 0], [], []>} : vector<1x24xbf16>, vector<32x24xbf16>, vector<1x32xf32> -> vector<1x32xf32>
    %cst_66 = arith.constant 1.000000e-33 : f32
    %130 = vector.broadcast %cst_66 : f32 to vector<1x32xf32>
    %131 = arith.maximumf %129, %130 : vector<1x32xf32>
    %132 = tpu.reciprocal %131 {approx = true} : vector<1x32xf32> -> vector<1x32xf32>
    %cst_67 = arith.constant 3.125000e-02 : f32
    %133 = vector.broadcast %cst_67 : f32 to vector<1x32xf32>
    %134 = arith.mulf %133, %132 : vector<1x32xf32>
    %135 = tpu.transpose %127, [1, 0] : vector<1x24xf32> -> vector<24x1xf32>
    %c0_68 = arith.constant 0 : index
    %c0_69 = arith.constant 0 : index
    %136 = vector.load %arg5[%c0_68, %c0_69] : memref<24x128xf32, #tpu.memory_space<vmem>>, vector<24x128xf32>
    %137 = vector.broadcast %135 : vector<24x1xf32> to vector<24x128xf32>
    %138 = arith.mulf %137, %136 : vector<24x128xf32>
    %139 = arith.truncf %138 : vector<24x128xf32> to vector<24x128xbf16>
    %cst_70 = arith.constant dense<0.000000e+00> : vector<32x128xf32>
    %140 = tpu.matmul %63, %139, %cst_70 {dimension_numbers = #tpu.dot_dimension_numbers<[1], [0], [0], [1], [0, 0, 1, 1], [], []>} : vector<32x24xbf16>, vector<24x128xbf16>, vector<32x128xf32> -> vector<32x128xf32>
    %141 = tpu.transpose %134, [1, 0] : vector<1x32xf32> -> vector<32x1xf32>
    %cst_71 = arith.constant 3.200000e+01 : f32
    %142 = vector.broadcast %cst_71 : f32 to vector<32x1xf32>
    %143 = arith.mulf %142, %141 : vector<32x1xf32>
    %144 = vector.broadcast %143 : vector<32x1xf32> to vector<32x128xf32>
    %145 = arith.mulf %144, %140 : vector<32x128xf32>
    %c0_72 = arith.constant 0 : index
    %c0_73 = arith.constant 0 : index
    %146 = vector.load %arg6[%c0_72, %c0_73] : memref<32x128xf32, #tpu.memory_space<vmem>>, vector<32x128xf32>
    tpu.vector_store %arg6[%c0_72, %c0_73], %145 {strides = array<i32>} : memref<32x128xf32, #tpu.memory_space<vmem>>, vector<32x128xf32>,
    return
  }
  func.func @transform_0(%arg0: i32) -> (i32, i32) {
    %c0_i32 = arith.constant 0 : i32
    %c0_i32_0 = arith.constant 0 : i32
    %c0_i32_1 = arith.constant 0 : i32
    return %c0_i32, %c0_i32_0 : i32, i32
  }
  func.func @transform_1(%arg0: i32) -> (i32, i32) {
    %c0_i32 = arith.constant 0 : i32
    %c0_i32_0 = arith.constant 0 : i32
    %c0_i32_1 = arith.constant 0 : i32
    return %c0_i32, %c0_i32_0 : i32, i32
  }
  func.func @transform_2(%arg0: i32) -> (i32, i32) {
    %c0_i32 = arith.constant 0 : i32
    %c0_i32_0 = arith.constant 0 : i32
    %c0_i32_1 = arith.constant 0 : i32
    return %c0_i32, %c0_i32_0 : i32, i32
  }
  func.func @transform_3(%arg0: i32) -> (i32, i32) {
    %c0_i32 = arith.constant 0 : i32
    %c0_i32_0 = arith.constant 0 : i32
    %c0_i32_1 = arith.constant 0 : i32
    return %c0_i32, %c0_i32_0 : i32, i32
  }
  func.func @transform_4(%arg0: i32) -> (i32, i32) {
    %c0_i32 = arith.constant 0 : i32
    %c0_i32_0 = arith.constant 0 : i32
    %c0_i32_1 = arith.constant 0 : i32
    return %c0_i32, %c0_i32_0 : i32, i32
  }
  func.func @transform_5(%arg0: i32) -> (i32, i32) {
    %c0_i32 = arith.constant 0 : i32
    %c0_i32_0 = arith.constant 0 : i32
    %c0_i32_1 = arith.constant 0 : i32
    return %c0_i32, %c0_i32_0 : i32, i32
  }
}

module attributes {stable_mosaic.version = 11 : i64} {
  func.func @_barycentric_kernel(%arg0: i32, %arg1: memref<32x16xf32, #tpu.memory_space<vmem>>, %arg2: memref<32x4xf32, #tpu.memory_space<vmem>>, %arg3: memref<24x16xf32, #tpu.memory_space<vmem>>, %arg4: memref<24x4xf32, #tpu.memory_space<vmem>>, %arg5: memref<24x128xf32, #tpu.memory_space<vmem>>, %arg6: memref<32x128xf32, #tpu.memory_space<vmem>>, %arg7: memref<32x24xf32, #tpu.memory_space<vmem>>) attributes {dimension_semantics = [#tpu.dimension_semantics<arbitrary>], iteration_bounds = array<i64: 1>, scalar_prefetch = 0 : i64, scratch_operands = 1 : i64, tpu.core_type = #tpu.core_type<tc>, window_params = [{pipeline_mode = #tpu.pipeline_mode<synchronous>, transform_indices = @transform_0, window_bounds = array<i64: 32, 16>}, {pipeline_mode = #tpu.pipeline_mode<synchronous>, transform_indices = @transform_1, window_bounds = array<i64: 32, 4>}, {pipeline_mode = #tpu.pipeline_mode<synchronous>, transform_indices = @transform_2, window_bounds = array<i64: 24, 16>}, {pipeline_mode = #tpu.pipeline_mode<synchronous>, transform_indices = @transform_3, window_bounds = array<i64: 24, 4>}, {pipeline_mode = #tpu.pipeline_mode<synchronous>, transform_indices = @transform_4, window_bounds = array<i64: 24, 128>}, {pipeline_mode = #tpu.pipeline_mode<synchronous>, transform_indices = @transform_5, window_bounds = array<i64: 32, 128>}]} {
    %c0 = arith.constant 0 : index
    %c0_0 = arith.constant 0 : index
    %0 = vector.load %arg1[%c0, %c0_0] : memref<32x16xf32, #tpu.memory_space<vmem>>, vector<32x16xf32>
    %c0_1 = arith.constant 0 : index
    %c0_2 = arith.constant 0 : index
    %1 = vector.load %arg2[%c0_1, %c0_2] : memref<32x4xf32, #tpu.memory_space<vmem>>, vector<32x4xf32>
    %c0_3 = arith.constant 0 : index
    %c0_4 = arith.constant 0 : index
    %2 = vector.load %arg3[%c0_3, %c0_4] : memref<24x16xf32, #tpu.memory_space<vmem>>, vector<24x16xf32>
    %c0_5 = arith.constant 0 : index
    %c0_6 = arith.constant 0 : index
    %3 = vector.load %arg4[%c0_5, %c0_6] : memref<24x4xf32, #tpu.memory_space<vmem>>, vector<24x4xf32>
    %4 = arith.mulf %0, %0 : vector<32x16xf32>
    %cst = arith.constant dense<0.000000e+00> : vector<32xf32>
    %5 = vector.multi_reduction <add>, %4, %cst [1] : vector<32x16xf32> to vector<32xf32>
    %6 = vector.shape_cast %5 : vector<32xf32> to vector<32x1xf32>
    %7 = arith.mulf %2, %2 : vector<24x16xf32>
    %cst_7 = arith.constant dense<0.000000e+00> : vector<24xf32>
    %8 = vector.multi_reduction <add>, %7, %cst_7 [1] : vector<24x16xf32> to vector<24xf32>
    %9 = vector.shape_cast %8 : vector<24xf32> to vector<24x1xf32>
    %10 = tpu.transpose %9, [1, 0] : vector<24x1xf32> -> vector<1x24xf32>
    %cst_8 = arith.constant dense<0.000000e+00> : vector<32x24xf32>
    %11 = tpu.matmul %0, %2, %cst_8 {dimension_numbers = #tpu.dot_dimension_numbers<[1], [1], [0], [0], [0, 0, 1, 0], [], []>} : vector<32x16xf32>, vector<24x16xf32>, vector<32x24xf32> -> vector<32x24xf32>
    %12 = vector.broadcast %6 : vector<32x1xf32> to vector<32x24xf32>
    %13 = vector.broadcast %10 : vector<1x24xf32> to vector<32x24xf32>
    %14 = arith.addf %12, %13 : vector<32x24xf32>
    %cst_9 = arith.constant 2.000000e+00 : f32
    %15 = vector.broadcast %cst_9 : f32 to vector<32x24xf32>
    %16 = arith.mulf %15, %11 : vector<32x24xf32>
    %17 = arith.subf %14, %16 : vector<32x24xf32>
    %cst_10 = arith.constant 0.000000e+00 : f32
    %18 = vector.broadcast %cst_10 : f32 to vector<32x24xf32>
    %19 = arith.maximumf %17, %18 : vector<32x24xf32>
    %c0_11 = arith.constant 0 : index
    %c0_12 = arith.constant 0 : index
    %20 = vector.load %arg7[%c0_11, %c0_12] : memref<32x24xf32, #tpu.memory_space<vmem>>, vector<32x24xf32>
    tpu.vector_store %arg7[%c0_11, %c0_12], %19 {strides = array<i32>} : memref<32x24xf32, #tpu.memory_space<vmem>>, vector<32x24xf32>,
    %c0_13 = arith.constant 0 : index
    %c0_14 = arith.constant 0 : index
    %21 = vector.load %arg7[%c0_13, %c0_14] : memref<32x24xf32, #tpu.memory_space<vmem>>, vector<32x24xf32>
    %cst_15 = arith.constant dense<0xFF800000> : vector<32xf32>
    %22 = vector.multi_reduction <maximumf>, %21, %cst_15 [1] : vector<32x24xf32> to vector<32xf32>
    %23 = vector.shape_cast %22 : vector<32xf32> to vector<32x1xf32>
    %cst_16 = arith.constant dense<0xFF800000> : vector<1xf32>
    %24 = vector.multi_reduction <maximumf>, %23, %cst_16 [0] : vector<32x1xf32> to vector<1xf32>
    %25 = vector.shape_cast %24 : vector<1xf32> to vector<1x1xf32>
    %c0_17 = arith.constant 0 : index
    %c0_18 = arith.constant 0 : index
    %26 = vector.load %arg7[%c0_17, %c0_18] : memref<32x24xf32, #tpu.memory_space<vmem>>, vector<32x24xf32>
    %27 = arith.mulf %1, %1 : vector<32x4xf32>
    %cst_19 = arith.constant dense<0.000000e+00> : vector<32xf32>
    %28 = vector.multi_reduction <add>, %27, %cst_19 [1] : vector<32x4xf32> to vector<32xf32>
    %29 = vector.shape_cast %28 : vector<32xf32> to vector<32x1xf32>
    %30 = arith.mulf %3, %3 : vector<24x4xf32>
    %cst_20 = arith.constant dense<0.000000e+00> : vector<24xf32>
    %31 = vector.multi_reduction <add>, %30, %cst_20 [1] : vector<24x4xf32> to vector<24xf32>
    %32 = vector.shape_cast %31 : vector<24xf32> to vector<24x1xf32>
    %33 = tpu.transpose %32, [1, 0] : vector<24x1xf32> -> vector<1x24xf32>
    %cst_21 = arith.constant dense<0.000000e+00> : vector<32x24xf32>
    %34 = tpu.matmul %1, %3, %cst_21 {dimension_numbers = #tpu.dot_dimension_numbers<[1], [1], [0], [0], [0, 0, 1, 0], [], []>} : vector<32x4xf32>, vector<24x4xf32>, vector<32x24xf32> -> vector<32x24xf32>
    %35 = vector.broadcast %29 : vector<32x1xf32> to vector<32x24xf32>
    %36 = vector.broadcast %33 : vector<1x24xf32> to vector<32x24xf32>
    %37 = arith.addf %35, %36 : vector<32x24xf32>
    %cst_22 = arith.constant 2.000000e+00 : f32
    %38 = vector.broadcast %cst_22 : f32 to vector<32x24xf32>
    %39 = arith.mulf %38, %34 : vector<32x24xf32>
    %40 = arith.subf %37, %39 : vector<32x24xf32>
    %cst_23 = arith.constant 0.000000e+00 : f32
    %41 = vector.broadcast %cst_23 : f32 to vector<32x24xf32>
    %42 = arith.maximumf %40, %41 : vector<32x24xf32>
    %43 = vector.broadcast %25 : vector<1x1xf32> to vector<32x24xf32>
    %44 = arith.mulf %43, %42 : vector<32x24xf32>
    %45 = arith.addf %26, %44 : vector<32x24xf32>
    %cst_24 = arith.constant -2.000000e+00 : f32
    %46 = vector.broadcast %cst_24 : f32 to vector<32x24xf32>
    %47 = arith.mulf %45, %46 : vector<32x24xf32>
    %c0_25 = arith.constant 0 : index
    %c0_26 = arith.constant 0 : index
    %48 = vector.load %arg7[%c0_25, %c0_26] : memref<32x24xf32, #tpu.memory_space<vmem>>, vector<32x24xf32>
    tpu.vector_store %arg7[%c0_25, %c0_26], %47 {strides = array<i32>} : memref<32x24xf32, #tpu.memory_space<vmem>>, vector<32x24xf32>,
    %cst_27 = arith.constant 0.000000e+00 : f32
    %49 = vector.broadcast %cst_27 : f32 to vector<32x1xf32>
    %c0_28 = arith.constant 0 : index
    %c0_29 = arith.constant 0 : index
    %50 = vector.load %arg7[%c0_28, %c0_29] : memref<32x24xf32, #tpu.memory_space<vmem>>, vector<32x24xf32>
    %cst_30 = arith.constant dense<0xFF800000> : vector<24xf32>
    %51 = vector.multi_reduction <maximumf>, %50, %cst_30 [0] : vector<32x24xf32> to vector<24xf32>
    %52 = vector.shape_cast %51 : vector<24xf32> to vector<1x24xf32>
    %cst_31 = arith.constant 0.000000e+00 : f32
    %53 = vector.broadcast %cst_31 : f32 to vector<1x24xf32>
    %54 = arith.subf %53, %52 : vector<1x24xf32>
    %cst_32 = arith.constant 1.000000e-33 : f32
    %cst_33 = arith.constant 0.0416666679 : f32
    %cst_34 = arith.constant 3.125000e-02 : f32
    %c0_i32 = arith.constant 0 : i32
    %c9_i32 = arith.constant 9 : i32
    %55 = arith.addi %c0_i32, %c9_i32 : i32
    %c1_i32 = arith.constant 1 : i32
    %56:2 = scf.for %arg8 = %c0_i32 to %55 step %c1_i32 iter_args(%arg9 = %49, %arg10 = %54) -> (vector<32x1xf32>, vector<1x24xf32>)  : i32 {
      %c0_74 = arith.constant 0 : index
      %c0_75 = arith.constant 0 : index
      %147 = vector.load %arg7[%c0_74, %c0_75] : memref<32x24xf32, #tpu.memory_space<vmem>>, vector<32x24xf32>
      %148 = vector.broadcast %arg9 : vector<32x1xf32> to vector<32x24xf32>
      %149 = arith.addf %147, %148 : vector<32x24xf32>
      %150 = vector.broadcast %arg10 : vector<1x24xf32> to vector<32x24xf32>
      %151 = arith.addf %149, %150 : vector<32x24xf32>
      %152 = math.exp %151 : vector<32x24xf32>
      %153 = arith.truncf %152 : vector<32x24xf32> to vector<32x24xbf16>
      %cst_76 = arith.constant 1.000000e+00 : f32
      %154 = vector.broadcast %cst_76 : f32 to vector<1x32xf32>
      %155 = arith.truncf %154 : vector<1x32xf32> to vector<1x32xbf16>
      %cst_77 = arith.constant dense<0.000000e+00> : vector<1x24xf32>
      %156 = tpu.matmul %155, %153, %cst_77 {dimension_numbers = #tpu.dot_dimension_numbers<[1], [0], [0], [1], [0, 0, 1, 1], [], []>} : vector<1x32xbf16>, vector<32x24xbf16>, vector<1x24xf32> -> vector<1x24xf32>
      %157 = vector.broadcast %cst_32 : f32 to vector<1x24xf32>
      %158 = arith.maximumf %156, %157 : vector<1x24xf32>
      %159 = tpu.reciprocal %158 {approx = true} : vector<1x24xf32> -> vector<1x24xf32>
      %160 = vector.broadcast %cst_33 : f32 to vector<1x24xf32>
      %161 = arith.mulf %160, %159 : vector<1x24xf32>
      %162 = arith.truncf %161 : vector<1x24xf32> to vector<1x24xbf16>
      %cst_78 = arith.constant dense<0.000000e+00> : vector<1x32xf32>
      %163 = tpu.matmul %162, %153, %cst_78 {dimension_numbers = #tpu.dot_dimension_numbers<[1], [1], [0], [0], [0, 0, 1, 0], [], []>} : vector<1x24xbf16>, vector<32x24xbf16>, vector<1x32xf32> -> vector<1x32xf32>
      %164 = vector.broadcast %cst_32 : f32 to vector<1x32xf32>
      %165 = arith.maximumf %163, %164 : vector<1x32xf32>
      %166 = tpu.reciprocal %165 {approx = true} : vector<1x32xf32> -> vector<1x32xf32>
      %167 = vector.broadcast %cst_34 : f32 to vector<1x32xf32>
      %168 = arith.mulf %167, %166 : vector<1x32xf32>
      %169 = arith.truncf %168 : vector<1x32xf32> to vector<1x32xbf16>
      %cst_79 = arith.constant dense<0.000000e+00> : vector<1x24xf32>
      %170 = tpu.matmul %169, %153, %cst_79 {dimension_numbers = #tpu.dot_dimension_numbers<[1], [0], [0], [1], [0, 0, 1, 1], [], []>} : vector<1x32xbf16>, vector<32x24xbf16>, vector<1x24xf32> -> vector<1x24xf32>
      %171 = vector.broadcast %cst_32 : f32 to vector<1x24xf32>
      %172 = arith.maximumf %170, %171 : vector<1x24xf32>
      %173 = tpu.reciprocal %172 {approx = true} : vector<1x24xf32> -> vector<1x24xf32>
      %174 = vector.broadcast %cst_33 : f32 to vector<1x24xf32>
      %175 = arith.mulf %174, %173 : vector<1x24xf32>
      %176 = arith.truncf %175 : vector<1x24xf32> to vector<1x24xbf16>
      %cst_80 = arith.constant dense<0.000000e+00> : vector<1x32xf32>
      %177 = tpu.matmul %176, %153, %cst_80 {dimension_numbers = #tpu.dot_dimension_numbers<[1], [1], [0], [0], [0, 0, 1, 0], [], []>} : vector<1x24xbf16>, vector<32x24xbf16>, vector<1x32xf32> -> vector<1x32xf32>
      %178 = vector.broadcast %cst_32 : f32 to vector<1x32xf32>
      %179 = arith.maximumf %177, %178 : vector<1x32xf32>
      %180 = tpu.reciprocal %179 {approx = true} : vector<1x32xf32> -> vector<1x32xf32>
      %181 = vector.broadcast %cst_34 : f32 to vector<1x32xf32>
      %182 = arith.mulf %181, %180 : vector<1x32xf32>
      %183 = arith.truncf %182 : vector<1x32xf32> to vector<1x32xbf16>
      %cst_81 = arith.constant dense<0.000000e+00> : vector<1x24xf32>
      %184 = tpu.matmul %183, %153, %cst_81 {dimension_numbers = #tpu.dot_dimension_numbers<[1], [0], [0], [1], [0, 0, 1, 1], [], []>} : vector<1x32xbf16>, vector<32x24xbf16>, vector<1x24xf32> -> vector<1x24xf32>
      %185 = vector.broadcast %cst_32 : f32 to vector<1x24xf32>
      %186 = arith.maximumf %184, %185 : vector<1x24xf32>
      %187 = tpu.reciprocal %186 {approx = true} : vector<1x24xf32> -> vector<1x24xf32>
      %188 = vector.broadcast %cst_33 : f32 to vector<1x24xf32>
      %189 = arith.mulf %188, %187 : vector<1x24xf32>
      %190 = arith.truncf %189 : vector<1x24xf32> to vector<1x24xbf16>
      %cst_82 = arith.constant dense<0.000000e+00> : vector<1x32xf32>
      %191 = tpu.matmul %190, %153, %cst_82 {dimension_numbers = #tpu.dot_dimension_numbers<[1], [1], [0], [0], [0, 0, 1, 0], [], []>} : vector<1x24xbf16>, vector<32x24xbf16>, vector<1x32xf32> -> vector<1x32xf32>
      %192 = vector.broadcast %cst_32 : f32 to vector<1x32xf32>
      %193 = arith.maximumf %191, %192 : vector<1x32xf32>
      %194 = tpu.reciprocal %193 {approx = true} : vector<1x32xf32> -> vector<1x32xf32>
      %195 = vector.broadcast %cst_34 : f32 to vector<1x32xf32>
      %196 = arith.mulf %195, %194 : vector<1x32xf32>
      %197 = arith.truncf %196 : vector<1x32xf32> to vector<1x32xbf16>
      %cst_83 = arith.constant dense<0.000000e+00> : vector<1x24xf32>
      %198 = tpu.matmul %197, %153, %cst_83 {dimension_numbers = #tpu.dot_dimension_numbers<[1], [0], [0], [1], [0, 0, 1, 1], [], []>} : vector<1x32xbf16>, vector<32x24xbf16>, vector<1x24xf32> -> vector<1x24xf32>
      %199 = vector.broadcast %cst_32 : f32 to vector<1x24xf32>
      %200 = arith.maximumf %198, %199 : vector<1x24xf32>
      %201 = tpu.reciprocal %200 {approx = true} : vector<1x24xf32> -> vector<1x24xf32>
      %202 = vector.broadcast %cst_33 : f32 to vector<1x24xf32>
      %203 = arith.mulf %202, %201 : vector<1x24xf32>
      %204 = arith.truncf %203 : vector<1x24xf32> to vector<1x24xbf16>
      %cst_84 = arith.constant dense<0.000000e+00> : vector<1x32xf32>
      %205 = tpu.matmul %204, %153, %cst_84 {dimension_numbers = #tpu.dot_dimension_numbers<[1], [1], [0], [0], [0, 0, 1, 0], [], []>} : vector<1x24xbf16>, vector<32x24xbf16>, vector<1x32xf32> -> vector<1x32xf32>
      %206 = vector.broadcast %cst_32 : f32 to vector<1x32xf32>
      %207 = arith.maximumf %205, %206 : vector<1x32xf32>
      %208 = tpu.reciprocal %207 {approx = true} : vector<1x32xf32> -> vector<1x32xf32>
      %209 = vector.broadcast %cst_34 : f32 to vector<1x32xf32>
      %210 = arith.mulf %209, %208 : vector<1x32xf32>
      %211 = arith.truncf %210 : vector<1x32xf32> to vector<1x32xbf16>
      %cst_85 = arith.constant dense<0.000000e+00> : vector<1x24xf32>
      %212 = tpu.matmul %211, %153, %cst_85 {dimension_numbers = #tpu.dot_dimension_numbers<[1], [0], [0], [1], [0, 0, 1, 1], [], []>} : vector<1x32xbf16>, vector<32x24xbf16>, vector<1x24xf32> -> vector<1x24xf32>
      %213 = vector.broadcast %cst_32 : f32 to vector<1x24xf32>
      %214 = arith.maximumf %212, %213 : vector<1x24xf32>
      %215 = tpu.reciprocal %214 {approx = true} : vector<1x24xf32> -> vector<1x24xf32>
      %216 = vector.broadcast %cst_33 : f32 to vector<1x24xf32>
      %217 = arith.mulf %216, %215 : vector<1x24xf32>
      %218 = arith.truncf %217 : vector<1x24xf32> to vector<1x24xbf16>
      %cst_86 = arith.constant dense<0.000000e+00> : vector<1x32xf32>
      %219 = tpu.matmul %218, %153, %cst_86 {dimension_numbers = #tpu.dot_dimension_numbers<[1], [1], [0], [0], [0, 0, 1, 0], [], []>} : vector<1x24xbf16>, vector<32x24xbf16>, vector<1x32xf32> -> vector<1x32xf32>
      %220 = vector.broadcast %cst_32 : f32 to vector<1x32xf32>
      %221 = arith.maximumf %219, %220 : vector<1x32xf32>
      %222 = tpu.reciprocal %221 {approx = true} : vector<1x32xf32> -> vector<1x32xf32>
      %223 = vector.broadcast %cst_34 : f32 to vector<1x32xf32>
      %224 = arith.mulf %223, %222 : vector<1x32xf32>
      %225 = math.log %224 : vector<1x32xf32>
      %226 = tpu.transpose %225, [1, 0] : vector<1x32xf32> -> vector<32x1xf32>
      %227 = arith.addf %arg9, %226 : vector<32x1xf32>
      %228 = math.log %217 : vector<1x24xf32>
      %229 = arith.addf %arg10, %228 : vector<1x24xf32>
      scf.yield %227, %229 : vector<32x1xf32>, vector<1x24xf32>
    }
    %c0_35 = arith.constant 0 : index
    %c0_36 = arith.constant 0 : index
    %57 = vector.load %arg7[%c0_35, %c0_36] : memref<32x24xf32, #tpu.memory_space<vmem>>, vector<32x24xf32>
    %58 = vector.broadcast %56#0 : vector<32x1xf32> to vector<32x24xf32>
    %59 = arith.addf %57, %58 : vector<32x24xf32>
    %60 = vector.broadcast %56#1 : vector<1x24xf32> to vector<32x24xf32>
    %61 = arith.addf %59, %60 : vector<32x24xf32>
    %62 = math.exp %61 : vector<32x24xf32>
    %63 = arith.truncf %62 : vector<32x24xf32> to vector<32x24xbf16>
    %cst_37 = arith.constant 1.000000e+00 : f32
    %64 = vector.broadcast %cst_37 : f32 to vector<1x32xf32>
    %65 = arith.truncf %64 : vector<1x32xf32> to vector<1x32xbf16>
    %cst_38 = arith.constant dense<0.000000e+00> : vector<1x24xf32>
    %66 = tpu.matmul %65, %63, %cst_38 {dimension_numbers = #tpu.dot_dimension_numbers<[1], [0], [0], [1], [0, 0, 1, 1], [], []>} : vector<1x32xbf16>, vector<32x24xbf16>, vector<1x24xf32> -> vector<1x24xf32>
    %cst_39 = arith.constant 1.000000e-33 : f32
    %67 = vector.broadcast %cst_39 : f32 to vector<1x24xf32>
    %68 = arith.maximumf %66, %67 : vector<1x24xf32>
    %69 = tpu.reciprocal %68 {approx = true} : vector<1x24xf32> -> vector<1x24xf32>
    %cst_40 = arith.constant 0.0416666679 : f32
    %70 = vector.broadcast %cst_40 : f32 to vector<1x24xf32>
    %71 = arith.mulf %70, %69 : vector<1x24xf32>
    %72 = arith.truncf %71 : vector<1x24xf32> to vector<1x24xbf16>
    %cst_41 = arith.constant dense<0.000000e+00> : vector<1x32xf32>
    %73 = tpu.matmul %72, %63, %cst_41 {dimension_numbers = #tpu.dot_dimension_numbers<[1], [1], [0], [0], [0, 0, 1, 0], [], []>} : vector<1x24xbf16>, vector<32x24xbf16>, vector<1x32xf32> -> vector<1x32xf32>
    %cst_42 = arith.constant 1.000000e-33 : f32
    %74 = vector.broadcast %cst_42 : f32 to vector<1x32xf32>
    %75 = arith.maximumf %73, %74 : vector<1x32xf32>
    %76 = tpu.reciprocal %75 {approx = true} : vector<1x32xf32> -> vector<1x32xf32>
    %cst_43 = arith.constant 3.125000e-02 : f32
    %77 = vector.broadcast %cst_43 : f32 to vector<1x32xf32>
    %78 = arith.mulf %77, %76 : vector<1x32xf32>
    %79 = arith.truncf %78 : vector<1x32xf32> to vector<1x32xbf16>
    %cst_44 = arith.constant dense<0.000000e+00> : vector<1x24xf32>
    %80 = tpu.matmul %79, %63, %cst_44 {dimension_numbers = #tpu.dot_dimension_numbers<[1], [0], [0], [1], [0, 0, 1, 1], [], []>} : vector<1x32xbf16>, vector<32x24xbf16>, vector<1x24xf32> -> vector<1x24xf32>
    %cst_45 = arith.constant 1.000000e-33 : f32
    %81 = vector.broadcast %cst_45 : f32 to vector<1x24xf32>
    %82 = arith.maximumf %80, %81 : vector<1x24xf32>
    %83 = tpu.reciprocal %82 {approx = true} : vector<1x24xf32> -> vector<1x24xf32>
    %cst_46 = arith.constant 0.0416666679 : f32
    %84 = vector.broadcast %cst_46 : f32 to vector<1x24xf32>
    %85 = arith.mulf %84, %83 : vector<1x24xf32>
    %86 = arith.truncf %85 : vector<1x24xf32> to vector<1x24xbf16>
    %cst_47 = arith.constant dense<0.000000e+00> : vector<1x32xf32>
    %87 = tpu.matmul %86, %63, %cst_47 {dimension_numbers = #tpu.dot_dimension_numbers<[1], [1], [0], [0], [0, 0, 1, 0], [], []>} : vector<1x24xbf16>, vector<32x24xbf16>, vector<1x32xf32> -> vector<1x32xf32>
    %cst_48 = arith.constant 1.000000e-33 : f32
    %88 = vector.broadcast %cst_48 : f32 to vector<1x32xf32>
    %89 = arith.maximumf %87, %88 : vector<1x32xf32>
    %90 = tpu.reciprocal %89 {approx = true} : vector<1x32xf32> -> vector<1x32xf32>
    %cst_49 = arith.constant 3.125000e-02 : f32
    %91 = vector.broadcast %cst_49 : f32 to vector<1x32xf32>
    %92 = arith.mulf %91, %90 : vector<1x32xf32>
    %93 = arith.truncf %92 : vector<1x32xf32> to vector<1x32xbf16>
    %cst_50 = arith.constant dense<0.000000e+00> : vector<1x24xf32>
    %94 = tpu.matmul %93, %63, %cst_50 {dimension_numbers = #tpu.dot_dimension_numbers<[1], [0], [0], [1], [0, 0, 1, 1], [], []>} : vector<1x32xbf16>, vector<32x24xbf16>, vector<1x24xf32> -> vector<1x24xf32>
    %cst_51 = arith.constant 1.000000e-33 : f32
    %95 = vector.broadcast %cst_51 : f32 to vector<1x24xf32>
    %96 = arith.maximumf %94, %95 : vector<1x24xf32>
    %97 = tpu.reciprocal %96 {approx = true} : vector<1x24xf32> -> vector<1x24xf32>
    %cst_52 = arith.constant 0.0416666679 : f32
    %98 = vector.broadcast %cst_52 : f32 to vector<1x24xf32>
    %99 = arith.mulf %98, %97 : vector<1x24xf32>
    %100 = arith.truncf %99 : vector<1x24xf32> to vector<1x24xbf16>
    %cst_53 = arith.constant dense<0.000000e+00> : vector<1x32xf32>
    %101 = tpu.matmul %100, %63, %cst_53 {dimension_numbers = #tpu.dot_dimension_numbers<[1], [1], [0], [0], [0, 0, 1, 0], [], []>} : vector<1x24xbf16>, vector<32x24xbf16>, vector<1x32xf32> -> vector<1x32xf32>
    %cst_54 = arith.constant 1.000000e-33 : f32
    %102 = vector.broadcast %cst_54 : f32 to vector<1x32xf32>
    %103 = arith.maximumf %101, %102 : vector<1x32xf32>
    %104 = tpu.reciprocal %103 {approx = true} : vector<1x32xf32> -> vector<1x32xf32>
    %cst_55 = arith.constant 3.125000e-02 : f32
    %105 = vector.broadcast %cst_55 : f32 to vector<1x32xf32>
    %106 = arith.mulf %105, %104 : vector<1x32xf32>
    %107 = arith.truncf %106 : vector<1x32xf32> to vector<1x32xbf16>
    %cst_56 = arith.constant dense<0.000000e+00> : vector<1x24xf32>
    %108 = tpu.matmul %107, %63, %cst_56 {dimension_numbers = #tpu.dot_dimension_numbers<[1], [0], [0], [1], [0, 0, 1, 1], [], []>} : vector<1x32xbf16>, vector<32x24xbf16>, vector<1x24xf32> -> vector<1x24xf32>
    %cst_57 = arith.constant 1.000000e-33 : f32
    %109 = vector.broadcast %cst_57 : f32 to vector<1x24xf32>
    %110 = arith.maximumf %108, %109 : vector<1x24xf32>
    %111 = tpu.reciprocal %110 {approx = true} : vector<1x24xf32> -> vector<1x24xf32>
    %cst_58 = arith.constant 0.0416666679 : f32
    %112 = vector.broadcast %cst_58 : f32 to vector<1x24xf32>
    %113 = arith.mulf %112, %111 : vector<1x24xf32>
    %114 = arith.truncf %113 : vector<1x24xf32> to vector<1x24xbf16>
    %cst_59 = arith.constant dense<0.000000e+00> : vector<1x32xf32>
    %115 = tpu.matmul %114, %63, %cst_59 {dimension_numbers = #tpu.dot_dimension_numbers<[1], [1], [0], [0], [0, 0, 1, 0], [], []>} : vector<1x24xbf16>, vector<32x24xbf16>, vector<1x32xf32> -> vector<1x32xf32>
    %cst_60 = arith.constant 1.000000e-33 : f32
    %116 = vector.broadcast %cst_60 : f32 to vector<1x32xf32>
    %117 = arith.maximumf %115, %116 : vector<1x32xf32>
    %118 = tpu.reciprocal %117 {approx = true} : vector<1x32xf32> -> vector<1x32xf32>
    %cst_61 = arith.constant 3.125000e-02 : f32
    %119 = vector.broadcast %cst_61 : f32 to vector<1x32xf32>
    %120 = arith.mulf %119, %118 : vector<1x32xf32>
    %121 = arith.truncf %120 : vector<1x32xf32> to vector<1x32xbf16>
    %cst_62 = arith.constant dense<0.000000e+00> : vector<1x24xf32>
    %122 = tpu.matmul %121, %63, %cst_62 {dimension_numbers = #tpu.dot_dimension_numbers<[1], [0], [0], [1], [0, 0, 1, 1], [], []>} : vector<1x32xbf16>, vector<32x24xbf16>, vector<1x24xf32> -> vector<1x24xf32>
    %cst_63 = arith.constant 1.000000e-33 : f32
    %123 = vector.broadcast %cst_63 : f32 to vector<1x24xf32>
    %124 = arith.maximumf %122, %123 : vector<1x24xf32>
    %125 = tpu.reciprocal %124 {approx = true} : vector<1x24xf32> -> vector<1x24xf32>
    %cst_64 = arith.constant 0.0416666679 : f32
    %126 = vector.broadcast %cst_64 : f32 to vector<1x24xf32>
    %127 = arith.mulf %126, %125 : vector<1x24xf32>
    %128 = arith.truncf %127 : vector<1x24xf32> to vector<1x24xbf16>
    %cst_65 = arith.constant dense<0.000000e+00> : vector<1x32xf32>
    %129 = tpu.matmul %128, %63, %cst_65 {dimension_numbers = #tpu.dot_dimension_numbers<[1], [1], [0], [0], [0, 0, 1, 0], [], []>} : vector<1x24xbf16>, vector<32x24xbf16>, vector<1x32xf32> -> vector<1x32xf32>
    %cst_66 = arith.constant 1.000000e-33 : f32
    %130 = vector.broadcast %cst_66 : f32 to vector<1x32xf32>
    %131 = arith.maximumf %129, %130 : vector<1x32xf32>
    %132 = tpu.reciprocal %131 {approx = true} : vector<1x32xf32> -> vector<1x32xf32>
    %cst_67 = arith.constant 3.125000e-02 : f32
    %133 = vector.broadcast %cst_67 : f32 to vector<1x32xf32>
    %134 = arith.mulf %133, %132 : vector<1x32xf32>
    %135 = tpu.transpose %127, [1, 0] : vector<1x24xf32> -> vector<24x1xf32>
    %c0_68 = arith.constant 0 : index
    %c0_69 = arith.constant 0 : index
    %136 = vector.load %arg5[%c0_68, %c0_69] : memref<24x128xf32, #tpu.memory_space<vmem>>, vector<24x128xf32>
    %137 = vector.broadcast %135 : vector<24x1xf32> to vector<24x128xf32>
    %138 = arith.mulf %137, %136 : vector<24x128xf32>
    %139 = arith.truncf %138 : vector<24x128xf32> to vector<24x128xbf16>
    %cst_70 = arith.constant dense<0.000000e+00> : vector<32x128xf32>
    %140 = tpu.matmul %63, %139, %cst_70 {dimension_numbers = #tpu.dot_dimension_numbers<[1], [0], [0], [1], [0, 0, 1, 1], [], []>} : vector<32x24xbf16>, vector<24x128xbf16>, vector<32x128xf32> -> vector<32x128xf32>
    %141 = tpu.transpose %134, [1, 0] : vector<1x32xf32> -> vector<32x1xf32>
    %cst_71 = arith.constant 3.200000e+01 : f32
    %142 = vector.broadcast %cst_71 : f32 to vector<32x1xf32>
    %143 = arith.mulf %142, %141 : vector<32x1xf32>
    %144 = vector.broadcast %143 : vector<32x1xf32> to vector<32x128xf32>
    %145 = arith.mulf %144, %140 : vector<32x128xf32>
    %c0_72 = arith.constant 0 : index
    %c0_73 = arith.constant 0 : index
    %146 = vector.load %arg6[%c0_72, %c0_73] : memref<32x128xf32, #tpu.memory_space<vmem>>, vector<32x128xf32>
    tpu.vector_store %arg6[%c0_72, %c0_73], %145 {strides = array<i32>} : memref<32x128xf32, #tpu.memory_space<vmem>>, vector<32x128xf32>,
    return
  }
  func.func @transform_0(%arg0: i32) -> (i32, i32) {
    %c0_i32 = arith.constant 0 : i32
    %c0_i32_0 = arith.constant 0 : i32
    %c0_i32_1 = arith.constant 0 : i32
    return %c0_i32, %c0_i32_0 : i32, i32
  }
  func.func @transform_1(%arg0: i32) -> (i32, i32) {
    %c0_i32 = arith.constant 0 : i32
    %c0_i32_0 = arith.constant 0 : i32
    %c0_i32_1 = arith.constant 0 : i32
    return %c0_i32, %c0_i32_0 : i32, i32
  }
  func.func @transform_2(%arg0: i32) -> (i32, i32) {
    %c0_i32 = arith.constant 0 : i32
    %c0_i32_0 = arith.constant 0 : i32
    %c0_i32_1 = arith.constant 0 : i32
    return %c0_i32, %c0_i32_0 : i32, i32
  }
  func.func @transform_3(%arg0: i32) -> (i32, i32) {
    %c0_i32 = arith.constant 0 : i32
    %c0_i32_0 = arith.constant 0 : i32
    %c0_i32_1 = arith.constant 0 : i32
    return %c0_i32, %c0_i32_0 : i32, i32
  }
  func.func @transform_4(%arg0: i32) -> (i32, i32) {
    %c0_i32 = arith.constant 0 : i32
    %c0_i32_0 = arith.constant 0 : i32
    %c0_i32_1 = arith.constant 0 : i32
    return %c0_i32, %c0_i32_0 : i32, i32
  }
  func.func @transform_5(%arg0: i32) -> (i32, i32) {
    %c0_i32 = arith.constant 0 : i32
    %c0_i32_0 = arith.constant 0 : i32
    %c0_i32_1 = arith.constant 0 : i32
    return %c0_i32, %c0_i32_0 : i32, i32
  }
}

</mosaic_0001>

<bundles_post_ra>
// kernel: tpu_custom_call.1
= control target key start
LH: loop header
LB: loop body
LE: loop exit
PB: predicated region body
PF: predicated region fallthrough
CT: control target
= control target key end

     0   :  { %vm41_vm0 = vcmask 130048   ;;  %s2682_s0 = inlined_call_operand.vmem [shape: f32[32,16], index: 0, kind: input, shape index: {}]   ;;  %s2683_s1 = inlined_call_operand.vmem [shape: f32[32,4], index: 1, kind: input, shape index: {}]   ;;  %s2684_s2 = inlined_call_operand.vmem [shape: f32[24,16], index: 2, kind: input, shape index: {}]   ;;  %s2685_s3 = inlined_call_operand.vmem [shape: f32[24,4], index: 3, kind: input, shape index: {}]   ;;  %s2686_s4 = inlined_call_operand.vmem [shape: f32[24,128], index: 4, kind: input, shape index: {}]   ;;  %s2687_s5 = inlined_call_operand.hbm [shape: f32[32,128], index: 5, kind: output, shape index: {}]  }
   0x1   :  { %v31_v0 = vld [vmem:[%s2684_s2] sm:$0xff]  ;;  %v32_v1 = vld [vmem:[%s2684_s2 + $0x8] sm:$0xff]  ;;  %v33_v2 = vld [vmem:[%s2684_s2 + $0x10] sm:$0xff] }
   0x2   :  { %v54_v3 = vmul.f32 %v31_v0, %v31_v0  ;;  %v55_v4 = vmul.f32 %v32_v1, %v32_v1  ;;  %v56_v5 = vmul.f32 %v33_v2, %v33_v2 }
   0x3   :  { %10 = vsyncpa [#allocation4], 0  ;;  %v2081_v6 = vpack.c.bf16 %v32_v1, %v31_v0  ;;  %v23_v7 = vld [vmem:[%s2682_s0] sm:$0xff]  ;;  %v24_v11 = vld [vmem:[%s2682_s0 + $0x8] sm:$0xff]  ;;  %vm258_vm2 = vcmask 31744   ;;  %v204_v51 = vlaneseq  ;;  %vm224_vm4 = vcmask 195584  }
   0x4   :  { %vm2082_vm1 = vmpackc.low %vm41_vm0, %vm41_vm0  ;;  %v37_v8 = vmul.f32 %v23_v7, %v23_v7  ;;  %1895 = vmatprep.mubr.msk.f32.mxu0 %vm41_vm0, %v23_v7  ;;  %v57_v9 = vsel %vm41_vm0, %v54_v3, 0.0  ;;  %v63_v10 = vsel %vm41_vm0, %v56_v5, 0.0  ;;  %v25_v12 = vld [vmem:[%s2682_s0 + $0x10] sm:$0xff]  ;;  %v60_v13 = vsel %vm41_vm0, %v55_v4, 0.0  ;;  %v26_v17 = vld [vmem:[%s2682_s0 + $0x18] sm:$0xff] }
   0x5   :  { %2083 = vmatprep.subr.msk.bf16.mxu0 %vm2082_vm1, %v2081_v6  ;;  %58 = vadd.xlane.f32.xlu0 %v57_v9  ;;  %v39_v15 = vmul.f32 %v25_v12, %v25_v12  ;;  %v38_v16 = vmul.f32 %v24_v11, %v24_v11  ;;  %v40_v20 = vmul.f32 %v26_v17, %v26_v17  ;;  %v34_v22 = vld [vmem:[%s2685_s3] sm:$0xff]  ;;  %v35_v23 = vld [vmem:[%s2685_s3 + $0x8] sm:$0xff]  ;;  %vm2088_vm3 = vmpackc.low %vm258_vm2, %vm258_vm2  ;;  %v205_v53 = vshrl.u32 %v204_v51, 7 }
   0x6   :  { %64 = vadd.xlane.f32.xlu1 %v63_v10  ;;  %2086 = vmatpush3.bf16.xpose.msk.msra.mxu0 %vm2082_vm1, %v2081_v6  ;;  %v42_v14 = vsel %vm41_vm0, %v37_v8, 0.0  ;;  %v271_v24 = vmul.f32 %v34_v22, %v34_v22  ;;  %v272_v25 = vmul.f32 %v35_v23, %v35_v23  ;;  %v2087_v26 = vpack.c.bf16 %v35_v23, %v34_v22  ;;  %v27_v27 = vld [vmem:[%s2683_s1] sm:$0xff]  ;;  %v36_v28 = vld [vmem:[%s2685_s3 + $0x10] sm:$0xff]  ;;  %v28_v33 = vld [vmem:[%s2683_s1 + $0x8] sm:$0xff] }
   0x7   :  { %1893 = vmatprep.subr.msk.mxu0 %vm41_vm0, %v33_v2  ;;  %v48_v18 = vsel %vm41_vm0, %v39_v15, 0.0  ;;  %v45_v19 = vsel %vm41_vm0, %v38_v16, 0.0  ;;  %v51_v21 = vsel %vm41_vm0, %v40_v20, 0.0  ;;  %1907 = vmatprep.mubr.msk.f32.mxu1 %vm258_vm2, %v27_v27  ;;  %v273_v31 = vmul.f32 %v36_v28, %v36_v28  ;;  %v29_v34 = vld [vmem:[%s2683_s1 + $0x10] sm:$0xff]  ;;  %v30_v35 = vld [vmem:[%s2683_s1 + $0x18] sm:$0xff]  ;;  %s2444_s1 = smov 0  }
   0x8   :  { %v274_v29 = vsel %vm258_vm2, %v271_v24, 0.0  ;;  %2089 = vmatprep.subr.msk.bf16.mxu1 %vm2088_vm3, %v2087_v26  ;;  %v277_v30 = vsel %vm258_vm2, %v272_v25, 0.0  ;;  %v254_v36 = vmul.f32 %v27_v27, %v27_v27  ;;  %v255_v40 = vmul.f32 %v28_v33, %v28_v33 }
   0x9   :  { %61 = vadd.xlane.f32.xlu0 %v60_v13  ;;  %2092 = vmatpush3.bf16.xpose.msk.msra.mxu1 %vm2088_vm3, %v2087_v26  ;;  %v280_v32 = vsel %vm258_vm2, %v273_v31, 0.0  ;;  %v256_v43 = vmul.f32 %v29_v34, %v29_v34  ;;  %v257_v45 = vmul.f32 %v30_v35, %v30_v35  ;;  %v2402_v56 = vsub.s32 0, %v205_v53 }
   0xa   :  { %43 = vadd.xlane.f32.xlu1 %v42_v14  ;;  %1905 = vmatprep.subr.msk.mxu1 %vm258_vm2, %v36_v28  ;;  %v259_v38 = vsel %vm258_vm2, %v254_v36, 0.0  ;;  %v262_v42 = vsel %vm258_vm2, %v255_v40, 0.0 }
   0xb   :  { %v265_v44 = vsel %vm258_vm2, %v256_v43, 0.0  ;;  %v268_v46 = vsel %vm258_vm2, %v257_v45, 0.0 }
   0xd   :  { %46 = vadd.xlane.f32.xlu0 %v45_v19 }
   0xe   :  { %49 = vadd.xlane.f32.xlu1 %v48_v18  ;;  %1894 = vmatpush3.xpose.msk.msra.mxu0 %vm41_vm0, %v33_v2 }
  0x11   :  { %1896 = vmatmul.mubr.msk.f32.vlgmr.msra.gmra.mrb[0].mxu0 %vm41_vm0, %v24_v11  ;;  %52 = vadd.xlane.f32.xlu0 %v51_v21 }
  0x12   :  { %1898 = vmatprep.mubr.msk.f32.mxu0 %vm41_vm0, %v25_v12  ;;  %1906 = vmatpush3.xpose.msk.msra.mxu1 %vm258_vm2, %v36_v28 }
  0x15   :  { %1899 = vmatmul.mubr.msk.f32.gmra.mrb[2].mxu0 %vm41_vm0, %v26_v17  ;;  %275 = vadd.xlane.f32.xlu0 %v274_v29 }
  0x16   :  { %1908 = vmatmul.mubr.msk.f32.vlgmr.msra.gmra.mrb[0].mxu1 %vm258_vm2, %v28_v33 }
  0x17   :  { %1910 = vmatprep.mubr.msk.f32.mxu1 %vm258_vm2, %v29_v34 }
  0x19   :  { %278 = vadd.xlane.f32.xlu0 %v277_v30 }
  0x1a   :  { %1911 = vmatmul.mubr.msk.f32.gmra.mrb[2].mxu1 %vm258_vm2, %v30_v35 }
  0x1d   :  { %281 = vadd.xlane.f32.xlu0 %v280_v32 }
  0x21   :  { %260 = vadd.xlane.f32.xlu0 %v259_v38 }
  0x25   :  { %263 = vadd.xlane.f32.xlu0 %v262_v42 }
  0x29   :  { %266 = vadd.xlane.f32.xlu0 %v265_v44 }
  0x2d   :  { %269 = vadd.xlane.f32.xlu0 %v268_v46 }
  0x92   :  { %v59_v37 = vpop.xlane.xlu0 %58 }
  0x93   :  { %66 = vxpose.xlu1.b32.start [1/3] (short) (narrow) %v59_v37, 8  ;;  %v65_v41 = vpop.xlane.xlu1 %64 }
  0x96   :  { %v62_v39 = vpop.xlane.xlu0 %61 }
  0x97   :  { %67 = vxpose.xlu1.b32.cont [2/3] (short) (narrow) %v62_v39, 8  ;;  %v44_v52 = vpop.xlane.xlu1 %43 }
  0x9a   :  { %v47_v54 = vpop.xlane.xlu0 %46 }
  0x9b   :  { %68 = vxpose.xlu1.b32.end [3/3] (short) (narrow) %v65_v41, 8  ;;  %v50_v55 = vpop.xlane.xlu1 %49 }
  0x9e   :  { %v53_v59 = vpop.xlane.xlu0 %52 }
  0xa2   :  { %v276_v23 = vpop.xlane.xlu0 %275 }
  0xa6   :  { %v279_v24 = vpop.xlane.xlu0 %278 }
  0xaa   :  { %v282_v26 = vpop.xlane.xlu0 %281 }
  0xae   :  { %v261_v27 = vpop.xlane.xlu0 %260 }
  0xb2   :  { %v264_v28 = vpop.xlane.xlu0 %263 }
  0xb6   :  { %v267_v29 = vpop.xlane.xlu0 %266 }
  0xba   :  { %v270_v30 = vpop.xlane.xlu0 %269 }
  0xe4   :  { %v1897_v47 = vpop.f32.mrb[0].mxu0 }
  0xe5   :  { %v185_v48 = vpop.f32.mrb[1].mxu0  ;;  %v213_v57 = vmul.f32 2.0, %v1897_v47 }
  0xe6   :  { %v212_v60 = vmul.f32 2.0, %v185_v48 }
  0xe8   :  { %v1900_v49 = vpop.f32.mrb[2].mxu0 }
  0xe9   :  { %v195_v50 = vpop.f32.mrb[3].mxu0  ;;  %v215_v62 = vmul.f32 2.0, %v1900_v49  ;;  %v1909_v20 = vpop.f32.mrb[0].mxu1 }
  0xea   :  { %v214_v63 = vmul.f32 2.0, %v195_v50  ;;  %v402_v21 = vpop.f32.mrb[1].mxu1  ;;  %v430_v47 = vmul.f32 2.0, %v1909_v20 }
  0xeb   :  { %v429_v48 = vmul.f32 2.0, %v402_v21 }
  0xed   :  { %v1912_v22 = vpop.f32.mrb[2].mxu1 }
  0xee   :  { %v412_v25 = vpop.f32.mrb[3].mxu1  ;;  %v432_v43 = vmul.f32 2.0, %v1912_v22 }
  0xef   :  { %v431_v45 = vmul.f32 2.0, %v412_v25 }
 0x113   :  { %v82_v58 = vpop.trf.xlu1 }
 0x114   :  { %v207_v61 = vrot.slane %v82_v58, %v2402_v56 }
 0x116   :  { %v208_v0 = vadd.f32 %v207_v61, %v44_v52  ;;  %v209_v1 = vadd.f32 %v207_v61, %v47_v54  ;;  %v211_v2 = vadd.f32 %v207_v61, %v53_v59  ;;  %v210_v3 = vadd.f32 %v207_v61, %v50_v55 }
 0x118   :  { %v216_v4 = vsub.f32 %v208_v0, %v212_v60  ;;  %v217_v5 = vsub.f32 %v209_v1, %v213_v57  ;;  %v219_v6 = vsub.f32 %v211_v2, %v215_v62  ;;  %v218_v7 = vsub.f32 %v210_v3, %v214_v63 }
 0x11a   :  { %v220_v8 = vmax.f32 %v216_v4, 0.0  ;;  %v221_v9 = vmax.f32 %v217_v5, 0.0  ;;  %v223_v10 = vmax.f32 %v219_v6, 0.0  ;;  %v222_v11 = vmax.f32 %v218_v7, 0.0 }
 0x11c   :  { %225 = vst.msk [vmem:[#allocation2] sm:$0xff] %vm224_vm4, %v220_v8  ;;  %226 = vst.msk [vmem:[#allocation2 + $0x8] sm:$0xff] %vm224_vm4, %v221_v9 }
 0x11d   :  { %228 = vst.msk [vmem:[#allocation2 + $0x18] sm:$0xff] %vm224_vm4, %v223_v10  ;;  %227 = vst.msk [vmem:[#allocation2 + $0x10] sm:$0xff] %vm224_vm4, %v222_v11 }
 0x123   :  { %v230_v12 = vld [vmem:[#allocation2 + $0x8] sm:$0xff]  ;;  %v229_v14 = vld [vmem:[#allocation2] sm:$0xff] }
 0x124   :  { %v236_v13 = vsel %vm224_vm4, %v230_v12, -inf  ;;  %v233_v15 = vsel %vm224_vm4, %v229_v14, -inf  ;;  %v232_v16 = vld [vmem:[#allocation2 + $0x18] sm:$0xff]  ;;  %v231_v18 = vld [vmem:[#allocation2 + $0x10] sm:$0xff] }
 0x125   :  { %237 = vmax.xlane.f32.xlu0 %v236_v13  ;;  %v242_v17 = vsel %vm224_vm4, %v232_v16, -inf  ;;  %v239_v19 = vsel %vm224_vm4, %v231_v18, -inf }
 0x129   :  { %234 = vmax.xlane.f32.xlu0 %v233_v15 }
 0x12d   :  { %243 = vmax.xlane.f32.xlu0 %v242_v17 }
 0x131   :  { %240 = vmax.xlane.f32.xlu0 %v239_v19 }
 0x15e   :  { %283 = vxpose.xlu0.b32.start [1/3] (short) (narrow) %v276_v23, 8 }
 0x162   :  { %284 = vxpose.xlu0.b32.cont [2/3] (short) (narrow) %v279_v24, 8 }
 0x166   :  { %285 = vxpose.xlu0.b32.end [3/3] (short) (narrow) %v282_v26, 8 }
 0x1b2   :  { %v238_v31 = vpop.xlane.xlu0 %237 }
 0x1b6   :  { %v235_v32 = vpop.xlane.xlu0 %234 }
 0x1b7   :  { %v245_v36 = vmax.f32 %v235_v32, %v238_v31  ;;  %v2440_v31 = vmov 0.0   ;;  %v2442_v32 = vmov 0.0  }
 0x1ba   :  { %v244_v33 = vpop.xlane.xlu0 %243 }
 0x1be   :  { %v241_v34 = vpop.xlane.xlu0 %240 }
 0x1bf   :  { %v246_v35 = vmax.f32 %v241_v34, %v244_v33 }
 0x1c1   :  { %v247_v37 = vmax.f32 %v245_v36, %v246_v35 }
 0x1c3   :  { %v248_v38 = vrot.slane %v247_v37, 4 }
 0x1c5   :  { %v249_v39 = vmax.f32 %v247_v37, %v248_v38 }
 0x1c7   :  { %v250_v40 = vrot.slane %v249_v39, 2 }
 0x1c9   :  { %v251_v41 = vmax.f32 %v249_v39, %v250_v40 }
 0x1cb   :  { %v252_v46 = vrot.slane %v251_v41, 1 }
 0x1cd   :  { %v253_v58 = vmax.f32 %v251_v41, %v252_v46 }
 0x1de   :  { %v299_v42 = vpop.trf.xlu0 }
 0x1df   :  { %v424_v44 = vrot.slane %v299_v42, %v2402_v56 }
 0x1e1   :  { %v425_v49 = vadd.f32 %v424_v44, %v261_v27  ;;  %v426_v50 = vadd.f32 %v424_v44, %v264_v28  ;;  %v428_v51 = vadd.f32 %v424_v44, %v270_v30  ;;  %v427_v52 = vadd.f32 %v424_v44, %v267_v29 }
 0x1e2   :  { %v2436_v29 = vmov 0.0   ;;  %v2438_v30 = vmov 0.0  }
 0x1e3   :  { %v433_v53 = vsub.f32 %v425_v49, %v429_v48  ;;  %v434_v54 = vsub.f32 %v426_v50, %v430_v47  ;;  %v436_v55 = vsub.f32 %v428_v51, %v432_v43  ;;  %v435_v57 = vsub.f32 %v427_v52, %v431_v45 }
 0x1e5   :  { %v437_v59 = vmax.f32 %v433_v53, 0.0  ;;  %v438_v60 = vmax.f32 %v434_v54, 0.0  ;;  %v440_v61 = vmax.f32 %v436_v55, 0.0  ;;  %v439_v62 = vmax.f32 %v435_v57, 0.0 }
 0x1e7   :  { %v441_v63 = vmul.f32 %v437_v59, %v253_v58  ;;  %v442_v0 = vmul.f32 %v438_v60, %v253_v58  ;;  %v444_v1 = vmul.f32 %v440_v61, %v253_v58  ;;  %v443_v2 = vmul.f32 %v439_v62, %v253_v58 }
 0x1e9   :  { %v445_v3 = vadd.f32 %v441_v63, %v229_v14  ;;  %v446_v4 = vadd.f32 %v442_v0, %v230_v12  ;;  %v448_v5 = vadd.f32 %v444_v1, %v232_v16  ;;  %v447_v6 = vadd.f32 %v443_v2, %v231_v18 }
 0x1eb   :  { %v449_v7 = vmul.f32 -2.0, %v445_v3  ;;  %v450_v8 = vmul.f32 -2.0, %v446_v4  ;;  %v452_v9 = vmul.f32 -2.0, %v448_v5  ;;  %v451_v10 = vmul.f32 -2.0, %v447_v6 }
 0x1ed   :  { %453 = vst.msk [vmem:[#allocation2] sm:$0xff] %vm224_vm4, %v449_v7  ;;  %454 = vst.msk [vmem:[#allocation2 + $0x8] sm:$0xff] %vm224_vm4, %v450_v8 }
 0x1ee   :  { %456 = vst.msk [vmem:[#allocation2 + $0x18] sm:$0xff] %vm224_vm4, %v452_v9  ;;  %455 = vst.msk [vmem:[#allocation2 + $0x10] sm:$0xff] %vm224_vm4, %v451_v10 }
 0x1f4   :  { %v2418_v11 = vld [vmem:[#allocation2] sm:$0xff]  ;;  %v2420_v13 = vld [vmem:[#allocation2 + $0x8] sm:$0xff] }
 0x1f5   :  { %v2422_v14 = vld [vmem:[#allocation2 + $0x10] sm:$0xff]  ;;  %v2424_v12 = vld [vmem:[#allocation2 + $0x18] sm:$0xff]  ;;  %v461_v15 = vsel %vm224_vm4, %v2418_v11, -inf  ;;  %v462_v16 = vsel %vm224_vm4, %v2420_v13, -inf }
 0x1f6   :  { %v463_v17 = vsel %vm224_vm4, %v2422_v14, -inf  ;;  %v464_v18 = vsel %vm224_vm4, %v2424_v12, -inf  ;;  %v465_v19 = vmax.f32 %v461_v15, %v462_v16 }
 0x1f7   :  { %v466_v20 = vmax.f32 %v463_v17, %v464_v18 }
 0x1f9   :  { %v467_v21 = vmax.f32 %v465_v19, %v466_v20 }
 0x1fb   :  { %v468_v22 = vrot.slane %v467_v21, 4 }
 0x1fd   :  { %v469_v23 = vmax.f32 %v467_v21, %v468_v22 }
 0x1ff   :  { %v470_v24 = vrot.slane %v469_v23, 2 }
 0x201   :  { %v471_v25 = vmax.f32 %v469_v23, %v470_v24 }
 0x203   :  { %v472_v26 = vrot.slane %v471_v25, 1 }
 0x205   :  { %v473_v27 = vmax.f32 %v471_v25, %v472_v26 }
 0x207   :  { %v474_v28 = vsub.f32 0.0, %v473_v27  }
 0x208 LB: > { %v2289_v33 = vmov 0   ;;  %v2290_v34 = vmov 0.0   ;;  %vm2291_vm5 = vmmov 0   ;;  %v486_v35 = vld [vmem:[#allocation2] sm:$0xff]  ;;  %v488_v36 = vld [vmem:[#allocation2 + $0x10] sm:$0xff]  ;;  %v517_v37 = vrot.slane %v2267_v28, %v2402_v56  ;;  %v487_v42 = vld [vmem:[#allocation2 + $0x8] sm:$0xff]  ;;  %s2287_s1 = sphi %s2444_s1, %s480_s1   ;;  %v2283_v32 = vphi %v2442_v32, %v2692_v32   ;;  %v2279_v31 = vphi %v2440_v31, %v2691_v31   ;;  %v2275_v30 = vphi %v2438_v30, %v2690_v30   ;;  %v2271_v29 = vphi %v2436_v29, %v2689_v29   ;;  %v2267_v28 = vphi %v474_v28, %v2688_v28  }
 0x209   : > { %2154 = vset.pattern.permute.xlu1 %v2289_v33  ;;  %2153 = vset.pattern.permute.xlu0 %v2289_v33  ;;  %v489_v43 = vld [vmem:[#allocation2 + $0x18] sm:$0xff]  ;;  %vm532_vm6 = vcmask 261120   ;;  %v2292_v0 = vmov 1065369472   ;;  %s480_s1 = sadd.s32 1, %s2287_s1  }
 0x20a   : > { %492 = vperm.xlu0 %2153, %v2283_v32   ;;  %502 = vperm.xlu1 %2154, %v2275_v30   ;;  %p477_p0 = scmp.ge.s32.totalorder %s480_s1, 9  }
 0x20b   : > { %1913 = vmatprep.subr.bf16.mxu0 %v2290_v34  ;;  %1921 = vmatprep.subr.bf16.mxu1 %v2290_v34  ;;  %vm2295_vm7 = vmmov (%p477_p0), 0   ;;  %vm1622_vm8 = vcmask (%p477_p0), 1043456  }
 0x20c   : > { %1917 = vmatprep.mubr.msk.bf16.mxu0 %vm2291_vm5, %v2290_v34  ;;  %1925 = vmatprep.mubr.msk.bf16.mxu1 %vm2291_vm5, %v2290_v34 }
 0x20e   : > { %497 = vperm.xlu0 %2153, %v2279_v31   ;;  %507 = vperm.xlu1 %2154, %v2271_v29  }
 0x289   : > { %v493_v38 = vpop.permute.xlu0 %492  ;;  %v503_v39 = vpop.permute.xlu1 %502 }
 0x28a   : > { %v510_v40 = vadd.f32 %v493_v38, %v486_v35  ;;  %v512_v41 = vadd.f32 %v503_v39, %v488_v36 }
 0x28c   : > { %v518_v44 = vadd.f32 %v517_v37, %v510_v40  ;;  %v520_v45 = vadd.f32 %v517_v37, %v512_v41 }
 0x28d   : > { %v498_v46 = vpop.permute.xlu0 %497  ;;  %v508_v47 = vpop.permute.xlu1 %507 }
 0x28e   : > { %v511_v48 = vadd.f32 %v498_v46, %v487_v42  ;;  %v513_v49 = vadd.f32 %v508_v47, %v489_v43  ;;  %v522_v50 = vmul.f32 1.442695, %v518_v44  ;;  %v526_v53 = vmul.f32 1.442695, %v520_v45 }
 0x290   : > { %v519_v51 = vadd.f32 %v517_v37, %v511_v48  ;;  %v521_v52 = vadd.f32 %v517_v37, %v513_v49  ;;  %2155 = vpow2.f32 %v522_v50 }
 0x292   : > { %v524_v54 = vmul.f32 1.442695, %v519_v51  ;;  %v528_v55 = vmul.f32 1.442695, %v521_v52 }
 0x294   : > { %2157 = vpow2.f32 %v524_v54 }
 0x295   : > { %2159 = vpow2.f32 %v526_v53 }
 0x296   : > { %2161 = vpow2.f32 %v528_v55 }
 0x29a   : > { %v2156_v57 = vpop.eup %2155 }
 0x29e   : > { %v2158_v58 = vpop.eup %2157 }
 0x29f   : > { %v2160_v59 = vpop.eup %2159  ;;  %v2476_v60 = vpack.c.bf16 %v2158_v58, %v2156_v57 }
 0x2a0   : > { %v2162_v61 = vpop.eup %2161 }
 0x2a1   : > { %1914 = vmatpush3.bf16.msra.mxu0 %v2476_v60  ;;  %v2481_v62 = vsel %vm224_vm4, %v2476_v60, 0  ;;  %v2485_v63 = vpack.c.bf16 %v2162_v61, %v2160_v59 }
 0x2a2   : > { %1922 = vmatpush3.bf16.xpose.msra.mxu1 %v2481_v62  ;;  %1915 = vmatprep.subr.bf16.mxu0 %v2290_v34 }
 0x2a3   : > { %1923 = vmatprep.subr.bf16.mxu1 %v2290_v34  ;;  %v2494_v1 = vsel %vm224_vm4, %v2485_v63, 0 }
 0x2a5   : > { %1916 = vmatpush3.bf16.msra.mxu0 %v2485_v63 }
 0x2a6   : > { %1929 = vmatprep.subr.bf16.mxu0 %v2290_v34 }
 0x2a8   : > { %1918 = vmatmul.mubr.msk.bf16.vlgmr.msra.gmra.mrb[0].mxu0 %vm532_vm6, %v2292_v0 }
 0x2a9   : > { %1930 = vmatpush3.bf16.msra.mxu0 %v2476_v60  ;;  %1933 = vmatprep.mubr.msk.bf16.mxu0 %vm2291_vm5, %v2290_v34 }
 0x2aa   : > { %1924 = vmatpush3.bf16.xpose.msra.mxu1 %v2494_v1  ;;  %1931 = vmatprep.subr.bf16.mxu0 %v2290_v34 }
 0x2ab   : > { %1945 = vmatprep.subr.bf16.mxu1 %v2290_v34 }
 0x2ad   : > { %1932 = vmatpush3.bf16.msra.mxu0 %v2485_v63 }
 0x2ae   : > { %1937 = vmatprep.subr.bf16.mxu0 %v2290_v34 }
 0x37b   : > { %v570_v2 = vpop.f32.mrb[0].mxu0 }
 0x37c   : > { %v576_v3 = vmax.f32 %v570_v2, 1e-33  ;;  %v1919_v4 = vpop.f32.mrb[1].mxu0 }
 0x37d   : > { %v573_v5 = vpop.f32.mrb[2].mxu0 }
 0x37e   : > { %2163 = vrcp.f32 %v576_v3  ;;  %v1920_v6 = vpop.f32.mrb[3].mxu0 }
 0x388   : > { %v2164_v7 = vpop.eup %2163 }
 0x389   : > { %v578_v8 = vmul.f32 0.041666668, %v2164_v7 }
 0x38b   : > { %v579_v9 = vpack.c.bf16 %v578_v8, %v578_v8 }
 0x38d   : > { %1926 = vmatmul.mubr.msk.bf16.vlgmr.msra.gmra.mrb[0].mxu1 %vm224_vm4, %v579_v9 }
 0x38e   : > { %1946 = vmatpush3.bf16.msra.mxu1 %v2476_v60  ;;  %1949 = vmatprep.mubr.msk.bf16.mxu1 %vm2291_vm5, %v2290_v34 }
 0x38f   : > { %1947 = vmatprep.subr.bf16.mxu1 %v2290_v34 }
 0x392   : > { %1948 = vmatpush3.bf16.msra.mxu1 %v2485_v63 }
 0x393   : > { %1953 = vmatprep.subr.bf16.mxu1 %v2290_v34 }
 0x460   : > { %v623_v10 = vpop.f32.mrb[0].mxu1 }
 0x461   : > { %v629_v15 = vmax.f32 %v623_v10, 1e-33  ;;  %v1927_v16 = vpop.f32.mrb[1].mxu1 }
 0x462   : > { %v626_v17 = vpop.f32.mrb[2].mxu1 }
 0x463   : > { %2165 = vrcp.f32 %v629_v15  ;;  %v1928_v18 = vpop.f32.mrb[3].mxu1 }
 0x46d   : > { %v2166_v19 = vpop.eup %2165 }
 0x46e   : > { %v631_v20 = vmul.f32 0.03125, %v2166_v19 }
 0x470   : > { %v632_v21 = vpack.c.bf16 %v631_v20, %v631_v20 }
 0x472   : > { %1934 = vmatmul.mubr.msk.bf16.vlgmr.msra.gmra.mrb[4].mxu0 %vm532_vm6, %v632_v21 }
 0x473   : > { %1938 = vmatpush3.bf16.xpose.msra.mxu0 %v2481_v62  ;;  %1941 = vmatprep.mubr.msk.bf16.mxu0 %vm2291_vm5, %v2290_v34 }
 0x474   : > { %1939 = vmatprep.subr.bf16.mxu0 %v2290_v34 }
 0x47b   : > { %1940 = vmatpush3.bf16.xpose.msra.mxu0 %v2494_v1 }
 0x47c   : > { %1961 = vmatprep.subr.bf16.mxu0 %v2290_v34 }
 0x545   : > { %v670_v22 = vpop.f32.mrb[4].mxu0 }
 0x546   : > { %v676_v23 = vmax.f32 %v670_v22, 1e-33  ;;  %v1935_v24 = vpop.f32.mrb[5].mxu0 }
 0x547   : > { %v673_v25 = vpop.f32.mrb[6].mxu0 }
 0x548   : > { %2167 = vrcp.f32 %v676_v23  ;;  %v1936_v26 = vpop.f32.mrb[7].mxu0 }
 0x552   : > { %v2168_v27 = vpop.eup %2167 }
 0x553   : > { %v678_v33 = vmul.f32 0.041666668, %v2168_v27 }
 0x555   : > { %v679_v35 = vpack.c.bf16 %v678_v33, %v678_v33 }
 0x557   : > { %1942 = vmatmul.mubr.msk.bf16.vlgmr.msra.gmra.mrb[8].mxu0 %vm224_vm4, %v679_v35 }
 0x558   : > { %1962 = vmatpush3.bf16.msra.mxu0 %v2476_v60  ;;  %1965 = vmatprep.mubr.msk.bf16.mxu0 %vm2291_vm5, %v2290_v34 }
 0x559   : > { %1963 = vmatprep.subr.bf16.mxu0 %v2290_v34 }
 0x55c   : > { %1964 = vmatpush3.bf16.msra.mxu0 %v2485_v63 }
 0x55d   : > { %1969 = vmatprep.subr.bf16.mxu0 %v2290_v34 }
 0x62a   : > { %v717_v36 = vpop.f32.mrb[8].mxu0 }
 0x62b   : > { %v723_v37 = vmax.f32 %v717_v36, 1e-33  ;;  %v1943_v38 = vpop.f32.mrb[9].mxu0 }
 0x62c   : > { %v720_v39 = vpop.f32.mrb[10].mxu0 }
 0x62d   : > { %2169 = vrcp.f32 %v723_v37  ;;  %v1944_v40 = vpop.f32.mrb[11].mxu0 }
 0x637   : > { %v2170_v41 = vpop.eup %2169 }
 0x638   : > { %v725_v42 = vmul.f32 0.03125, %v2170_v41 }
 0x63a   : > { %v726_v43 = vpack.c.bf16 %v725_v42, %v725_v42 }
 0x63c   : > { %1950 = vmatmul.mubr.msk.bf16.vlgmr.msra.gmra.mrb[4].mxu1 %vm532_vm6, %v726_v43 }
 0x63d   : > { %1954 = vmatpush3.bf16.xpose.msra.mxu1 %v2481_v62  ;;  %1957 = vmatprep.mubr.msk.bf16.mxu1 %vm2291_vm5, %v2290_v34 }
 0x63e   : > { %1955 = vmatprep.subr.bf16.mxu1 %v2290_v34 }
 0x645   : > { %1956 = vmatpush3.bf16.xpose.msra.mxu1 %v2494_v1 }
 0x646   : > { %1977 = vmatprep.subr.bf16.mxu1 %v2290_v34 }
 0x70f   : > { %v764_v44 = vpop.f32.mrb[4].mxu1 }
 0x710   : > { %v770_v45 = vmax.f32 %v764_v44, 1e-33  ;;  %v1951_v46 = vpop.f32.mrb[5].mxu1 }
 0x711   : > { %v767_v47 = vpop.f32.mrb[6].mxu1 }
 0x712   : > { %2171 = vrcp.f32 %v770_v45  ;;  %v1952_v48 = vpop.f32.mrb[7].mxu1 }
 0x71c   : > { %v2172_v49 = vpop.eup %2171 }
 0x71d   : > { %v772_v50 = vmul.f32 0.041666668, %v2172_v49  ;;  %v2294_v49 = vmov (%p477_p0), 0  }
 0x71e   :  { %2188 = vset.pattern.permute.xlu1 (%p477_p0), %v2294_v49 }
 0x71f   : > { %v773_v51 = vpack.c.bf16 %v772_v50, %v772_v50 }
 0x721   : > { %1958 = vmatmul.mubr.msk.bf16.vlgmr.msra.gmra.mrb[8].mxu1 %vm224_vm4, %v773_v51 }
 0x722   : > { %1978 = vmatpush3.bf16.msra.mxu1 %v2476_v60  ;;  %1981 = vmatprep.mubr.msk.bf16.mxu1 %vm2291_vm5, %v2290_v34 }
 0x723   : > { %1979 = vmatprep.subr.bf16.mxu1 %v2290_v34 }
 0x726   : > { %1980 = vmatpush3.bf16.msra.mxu1 %v2485_v63 }
 0x727   : > { %1985 = vmatprep.subr.bf16.mxu1 %v2290_v34 }
 0x7f4   : > { %v811_v52 = vpop.f32.mrb[8].mxu1 }
 0x7f5   : > { %v817_v53 = vmax.f32 %v811_v52, 1e-33  ;;  %v1959_v54 = vpop.f32.mrb[9].mxu1 }
 0x7f6   : > { %v814_v55 = vpop.f32.mrb[10].mxu1 }
 0x7f7   : > { %2173 = vrcp.f32 %v817_v53  ;;  %v1960_v57 = vpop.f32.mrb[11].mxu1 }
 0x801   : > { %v2174_v58 = vpop.eup %2173 }
 0x802   : > { %v819_v59 = vmul.f32 0.03125, %v2174_v58 }
 0x804   : > { %v820_v61 = vpack.c.bf16 %v819_v59, %v819_v59 }
 0x806   : > { %1966 = vmatmul.mubr.msk.bf16.vlgmr.msra.gmra.mrb[12].mxu0 %vm532_vm6, %v820_v61 }
 0x807   : > { %1970 = vmatpush3.bf16.xpose.msra.mxu0 %v2481_v62  ;;  %1973 = vmatprep.mubr.msk.bf16.mxu0 %vm2291_vm5, %v2290_v34 }
 0x808   : > { %1971 = vmatprep.subr.bf16.mxu0 %v2290_v34 }
 0x80f   : > { %1972 = vmatpush3.bf16.xpose.msra.mxu0 %v2494_v1 }
 0x8d9   : > { %v858_v60 = vpop.f32.mrb[12].mxu0 }
 0x8da   : > { %v864_v63 = vmax.f32 %v858_v60, 1e-33  ;;  %v1967_v0 = vpop.f32.mrb[13].mxu0 }
 0x8db   : > { %v861_v2 = vpop.f32.mrb[14].mxu0 }
 0x8dc   : > { %2175 = vrcp.f32 %v864_v63  ;;  %v1968_v3 = vpop.f32.mrb[15].mxu0 }
 0x8e6   : > { %v2176_v4 = vpop.eup %2175 }
 0x8e7   : > { %v866_v5 = vmul.f32 0.041666668, %v2176_v4 }
 0x8e9   : > { %v867_v6 = vpack.c.bf16 %v866_v5, %v866_v5  ;;  %v2296_v5 = vmov (%p477_p0), 1065369472  }
 0x8eb   : > { %1974 = vmatmul.mubr.msk.bf16.vlgmr.msra.gmra.mrb[16].mxu0 %vm224_vm4, %v867_v6 }
 0x9be   : > { %v905_v7 = vpop.f32.mrb[16].mxu0 }
 0x9bf   : > { %v911_v8 = vmax.f32 %v905_v7, 1e-33  ;;  %v1975_v9 = vpop.f32.mrb[17].mxu0 }
 0x9c0   : > { %v908_v10 = vpop.f32.mrb[18].mxu0 }
 0x9c1   : > { %2177 = vrcp.f32 %v911_v8  ;;  %v1976_v15 = vpop.f32.mrb[19].mxu0 }
 0x9cb   : > { %v2178_v16 = vpop.eup %2177 }
 0x9cc   : > { %v913_v17 = vmul.f32 0.03125, %v2178_v16 }
 0x9ce   : > { %v914_v18 = vpack.c.bf16 %v913_v17, %v913_v17 }
 0x9d0   : > { %1982 = vmatmul.mubr.msk.bf16.vlgmr.msra.gmra.mrb[12].mxu1 %vm532_vm6, %v914_v18 }
 0x9d1   : > { %1986 = vmatpush3.bf16.xpose.msra.mxu1 %v2481_v62  ;;  %1989 = vmatprep.mubr.msk.bf16.mxu1 %vm2291_vm5, %v2290_v34 }
 0x9d2   : > { %1987 = vmatprep.subr.bf16.mxu1 %v2290_v34 }
 0x9d9   : > { %1988 = vmatpush3.bf16.xpose.msra.mxu1 %v2494_v1 }
 0xaa3   : > { %v952_v19 = vpop.f32.mrb[12].mxu1 }
 0xaa4   : > { %v958_v20 = vmax.f32 %v952_v19, 1e-33  ;;  %v1983_v21 = vpop.f32.mrb[13].mxu1 }
 0xaa5   : > { %v955_v22 = vpop.f32.mrb[14].mxu1 }
 0xaa6   : > { %2179 = vrcp.f32 %v958_v20  ;;  %v1984_v23 = vpop.f32.mrb[15].mxu1 }
 0xab0   : > { %v2180_v24 = vpop.eup %2179 }
 0xab1   : > { %v960_v25 = vmul.f32 0.041666668, %v2180_v24 }
 0xab3   : > { %v961_v26 = vpack.c.bf16 %v960_v25, %v960_v25  ;;  %2181 = vlog2.f32 %v960_v25 }
 0xab5   : > { %1990 = vmatmul.mubr.msk.bf16.vlgmr.msra.gmra.mrb[16].mxu1 %vm224_vm4, %v961_v26 }
 0xabd   : > { %v2182_v62 = vpop.eup %2181 }
 0xabe   : > { %v1047_v27 = vmul.f32 0.6931472, %v2182_v62 }
 0xac0   : > { %v1048_v33 = vadd.f32 %v2267_v28, %v1047_v27  }
 0xb88   : > { %v999_v35 = vpop.f32.mrb[16].mxu1 }
 0xb89   : > { %v1005_v34 = vmax.f32 %v999_v35, 1e-33  ;;  %v1991_v36 = vpop.f32.mrb[17].mxu1 }
 0xb8a   : > { %v1002_v1 = vpop.f32.mrb[18].mxu1 }
 0xb8b   : > { %2183 = vrcp.f32 %v1005_v34  ;;  %v1992_v37 = vpop.f32.mrb[19].mxu1 }
 0xb95   : > { %v2184_v38 = vpop.eup %2183 }
 0xb96   : > { %v1007_v39 = vmul.f32 0.03125, %v2184_v38 }
 0xb98   : > { %2185 = vlog2.f32 %v1007_v39 }
 0xba2   : > { %v2186_v40 = vpop.eup %2185 }
 0xba3   : > { %v1009_v41 = vmul.f32 0.6931472, %v2186_v40 }
 0xba5   : > { %1010 = vxpose.xlu0.b32.start.end [1/1] (short) (narrow) %v1009_v41, 32 }
 0xbce   :  { %2187 = vset.pattern.permute.xlu0 (%p477_p0), %v2294_v49 }
 0xc25   : > { %v1026_v42 = vpop.trf.xlu0 }
 0xc26   : > { %v1042_v43 = vadd.f32 %v2283_v32, %v1026_v42  }
 0xc28   : > { %v2692_v32 = vmov %v1042_v43  ;;  %1051 = vperm.xlu0 (%p477_p0), %2187, %v1042_v43  }
 0xc29   : > { %v1027_v44 = vpop.trf.xlu0  ;;  %v2293_v32 = vmov (%p477_p0), 0.0  }
 0xc2a   : > { %v1043_v45 = vadd.f32 %v2279_v31, %v1027_v44   ;;  %1993 = vmatprep.subr.bf16.mxu0 (%p477_p0), %v2293_v32  ;;  %2001 = vmatprep.subr.bf16.mxu1 (%p477_p0), %v2293_v32 }
 0xc2b   :  { %1997 = vmatprep.mubr.msk.bf16.mxu0 (%p477_p0), %vm2295_vm7, %v2293_v32  ;;  %2005 = vmatprep.mubr.msk.bf16.mxu1 (%p477_p0), %vm2295_vm7, %v2293_v32 }
 0xc2c   : > { %v2691_v31 = vmov %v1043_v45  ;;  %1056 = vperm.xlu0 (%p477_p0), %2187, %v1043_v45  }
 0xc2d   : > { %v1028_v46 = vpop.trf.xlu0 }
 0xc2e   : > { %v1044_v47 = vadd.f32 %v2275_v30, %v1028_v46   ;;  %479 = sbr.rel (!%p477_p0) target bundleno = 520 (0x208), region = 47 }
 0xc30   : > { %v2690_v30 = vmov %v1044_v47  ;;  %1061 = vperm.xlu1 (%p477_p0), %2188, %v1044_v47  }
 0xc31   : > { %v1029_v28 = vpop.trf.xlu0 }
 0xc32   : > { %v1045_v48 = vadd.f32 %v2271_v29, %v1029_v28   ;;  %v2688_v28 = vmov %v1048_v33 }
 0xc34   : > { %v2689_v29 = vmov %v1045_v48  ;;  %1066 = vperm.xlu1 (%p477_p0), %2188, %v1045_v48  }
 0xc35   :  { %v1076_v29 = vrot.slane %v1048_v33, %v2402_v56 }
 0xca7   :  { %v1052_v31 = vpop.permute.xlu0 %1051 }
 0xca8   :  { %v1069_v51 = vadd.f32 %v1052_v31, %v2418_v11 }
 0xcaa   :  { %v1077_v52 = vadd.f32 %v1076_v29, %v1069_v51 }
 0xcab   :  { %v1057_v54 = vpop.permute.xlu0 %1056 }
 0xcac   :  { %v1070_v58 = vadd.f32 %v1057_v54, %v2420_v13  ;;  %v1081_v59 = vmul.f32 1.442695, %v1077_v52 }
 0xcae   :  { %v1078_v60 = vadd.f32 %v1076_v29, %v1070_v58  ;;  %2189 = vpow2.f32 %v1081_v59 }
 0xcaf   :  { %v1062_v30 = vpop.permute.xlu1 %1061 }
 0xcb0   :  { %v1071_v50 = vadd.f32 %v1062_v30, %v2422_v14  ;;  %v1083_v0 = vmul.f32 1.442695, %v1078_v60 }
 0xcb2   :  { %v1079_v55 = vadd.f32 %v1076_v29, %v1071_v50  ;;  %2191 = vpow2.f32 %v1083_v0 }
 0xcb3   :  { %v1067_v53 = vpop.permute.xlu1 %1066 }
 0xcb4   :  { %v1072_v57 = vadd.f32 %v1067_v53, %v2424_v12  ;;  %v1085_v63 = vmul.f32 1.442695, %v1079_v55 }
 0xcb6   :  { %v1080_v61 = vadd.f32 %v1076_v29, %v1072_v57  ;;  %2193 = vpow2.f32 %v1085_v63 }
 0xcb8   :  { %v1087_v56 = vmul.f32 1.442695, %v1080_v61  ;;  %v2190_v14 = vpop.eup %2189 }
 0xcba   :  { %2195 = vpow2.f32 %v1087_v56 }
 0xcbc   :  { %v2192_v11 = vpop.eup %2191 }
 0xcbd   :  { %v2581_v3 = vpack.c.bf16 %v2192_v11, %v2190_v14 }
 0xcbf   :  { %1994 = vmatpush3.bf16.msra.mxu0 %v2581_v3  ;;  %v2586_v13 = vsel %vm224_vm4, %v2581_v3, 0 }
 0xcc0   :  { %v2194_v2 = vpop.eup %2193  ;;  %2002 = vmatpush3.bf16.xpose.msra.mxu1 %v2586_v13  ;;  %1995 = vmatprep.subr.bf16.mxu0 %v2293_v32 }
 0xcc1   :  { %2003 = vmatprep.subr.bf16.mxu1 %v2293_v32 }
 0xcc4   :  { %v2196_v4 = vpop.eup %2195 }
 0xcc5   :  { %v2590_v12 = vpack.c.bf16 %v2196_v4, %v2194_v2 }
 0xcc7   :  { %1996 = vmatpush3.bf16.msra.mxu0 %v2590_v12  ;;  %v2599_v6 = vsel %vm224_vm4, %v2590_v12, 0 }
 0xcc8   :  { %2009 = vmatprep.subr.bf16.mxu0 %v2293_v32  ;;  %2004 = vmatpush3.bf16.xpose.msra.mxu1 %v2599_v6 }
 0xcc9   :  { %2025 = vmatprep.subr.bf16.mxu1 %v2293_v32 }
 0xcca   :  { %1998 = vmatmul.mubr.msk.bf16.vlgmr.msra.gmra.mrb[0].mxu0 %vm532_vm6, %v2296_v5 }
 0xccb   :  { %2010 = vmatpush3.bf16.msra.mxu0 %v2581_v3  ;;  %2013 = vmatprep.mubr.msk.bf16.mxu0 %vm2295_vm7, %v2293_v32 }
 0xccc   :  { %2011 = vmatprep.subr.bf16.mxu0 %v2293_v32 }
 0xccf   :  { %2012 = vmatpush3.bf16.msra.mxu0 %v2590_v12 }
 0xcd0   :  { %2017 = vmatprep.subr.bf16.mxu0 %v2293_v32 }
 0xd9d   :  { %v1129_v7 = vpop.f32.mrb[0].mxu0 }
 0xd9e   :  { %v1135_v8 = vmax.f32 %v1129_v7, 1e-33  ;;  %v1999_v9 = vpop.f32.mrb[1].mxu0 }
 0xd9f   :  { %v1132_v10 = vpop.f32.mrb[2].mxu0 }
 0xda0   :  { %2197 = vrcp.f32 %v1135_v8  ;;  %v2000_v15 = vpop.f32.mrb[3].mxu0 }
 0xdaa   :  { %v2198_v16 = vpop.eup %2197 }
 0xdab   :  { %v1137_v17 = vmul.f32 0.041666668, %v2198_v16 }
 0xdad   :  { %v1138_v18 = vpack.c.bf16 %v1137_v17, %v1137_v17 }
 0xdaf   :  { %2006 = vmatmul.mubr.msk.bf16.vlgmr.msra.gmra.mrb[0].mxu1 %vm224_vm4, %v1138_v18 }
 0xdb0   :  { %2026 = vmatpush3.bf16.msra.mxu1 %v2581_v3  ;;  %2029 = vmatprep.mubr.msk.bf16.mxu1 %vm2295_vm7, %v2293_v32 }
 0xdb1   :  { %2027 = vmatprep.subr.bf16.mxu1 %v2293_v32 }
 0xdb4   :  { %2028 = vmatpush3.bf16.msra.mxu1 %v2590_v12 }
 0xdb5   :  { %2033 = vmatprep.subr.bf16.mxu1 %v2293_v32 }
 0xe82   :  { %v1182_v19 = vpop.f32.mrb[0].mxu1 }
 0xe83   :  { %v1188_v20 = vmax.f32 %v1182_v19, 1e-33  ;;  %v2007_v21 = vpop.f32.mrb[1].mxu1 }
 0xe84   :  { %v1185_v22 = vpop.f32.mrb[2].mxu1 }
 0xe85   :  { %2199 = vrcp.f32 %v1188_v20  ;;  %v2008_v23 = vpop.f32.mrb[3].mxu1 }
 0xe8f   :  { %v2200_v24 = vpop.eup %2199 }
 0xe90   :  { %v1190_v25 = vmul.f32 0.03125, %v2200_v24 }
 0xe92   :  { %v1191_v26 = vpack.c.bf16 %v1190_v25, %v1190_v25 }
 0xe94   :  { %2014 = vmatmul.mubr.msk.bf16.vlgmr.msra.gmra.mrb[4].mxu0 %vm532_vm6, %v1191_v26 }
 0xe95   :  { %2018 = vmatpush3.bf16.xpose.msra.mxu0 %v2586_v13  ;;  %2021 = vmatprep.mubr.msk.bf16.mxu0 %vm2295_vm7, %v2293_v32 }
 0xe96   :  { %2019 = vmatprep.subr.bf16.mxu0 %v2293_v32 }
 0xe9d   :  { %2020 = vmatpush3.bf16.xpose.msra.mxu0 %v2599_v6 }
 0xe9e   :  { %2041 = vmatprep.subr.bf16.mxu0 %v2293_v32 }
 0xf67   :  { %v1229_v62 = vpop.f32.mrb[4].mxu0 }
 0xf68   :  { %v1235_v27 = vmax.f32 %v1229_v62, 1e-33  ;;  %v2015_v33 = vpop.f32.mrb[5].mxu0 }
 0xf69   :  { %v1232_v35 = vpop.f32.mrb[6].mxu0 }
 0xf6a   :  { %2201 = vrcp.f32 %v1235_v27  ;;  %v2016_v34 = vpop.f32.mrb[7].mxu0 }
 0xf6b   :  { %v1599_v34 = vld [vmem:[%s2686_s4] sm:$0xff] }
 0xf74   :  { %v2202_v36 = vpop.eup %2201 }
 0xf75   :  { %v1237_v1 = vmul.f32 0.041666668, %v2202_v36  ;;  %v1600_v36 = vld [vmem:[%s2686_s4 + $0x8] sm:$0xff] }
 0xf77   :  { %v1238_v37 = vpack.c.bf16 %v1237_v1, %v1237_v1 }
 0xf79   :  { %2022 = vmatmul.mubr.msk.bf16.vlgmr.msra.gmra.mrb[8].mxu0 %vm224_vm4, %v1238_v37 }
 0xf7a   :  { %2042 = vmatpush3.bf16.msra.mxu0 %v2581_v3  ;;  %2045 = vmatprep.mubr.msk.bf16.mxu0 %vm2295_vm7, %v2293_v32 }
 0xf7b   :  { %2043 = vmatprep.subr.bf16.mxu0 %v2293_v32 }
 0xf7e   :  { %2044 = vmatpush3.bf16.msra.mxu0 %v2590_v12 }
 0xf7f   :  { %2049 = vmatprep.subr.bf16.mxu0 %v2293_v32 }
0x104c   :  { %v1276_v38 = vpop.f32.mrb[8].mxu0 }
0x104d   :  { %v1282_v39 = vmax.f32 %v1276_v38, 1e-33  ;;  %v2023_v40 = vpop.f32.mrb[9].mxu0 }
0x104e   :  { %v1279_v41 = vpop.f32.mrb[10].mxu0 }
0x104f   :  { %2203 = vrcp.f32 %v1282_v39  ;;  %v2024_v42 = vpop.f32.mrb[11].mxu0  ;;  %v1601_v39 = vld [vmem:[%s2686_s4 + $0x10] sm:$0xff]  ;;  %s2297_s4 = smov [#allocation3]  }
0x1050   :  { %s1744_s24 = sshll.u32 %s2297_s4, 4  ;;  %s1745_s24 = int_to_ptr.vmem [resolvable:$true] %s1744_s24 }
0x1051   :  { %s2217_s25 = scalar_lea.vmem %s1745_s24, 512  ;;  %p2222_p2 = scmp.lt.s32.totalorder %s1745_s24, %s1745_s24 }
0x1052   :  { %p2218_p1 = scmp.ne.s32.totalorder %s1745_s24, %s2217_s25  ;;  %p2223_p3 = scmp.lt.s32.totalorder %s2217_s25, %s2217_s25 }
0x1054   :  { %p2224_p4 = por %p2223_p3, %p2222_p2 }
0x1056   :  { %p2225_p5 = pnand %p2224_p4, %p2218_p1 }
0x1059   :  { %v2204_v43 = vpop.eup %2203 }
0x105a   :  { %v1284_v44 = vmul.f32 0.03125, %v2204_v43 }
0x105c   :  { %v1285_v45 = vpack.c.bf16 %v1284_v44, %v1284_v44 }
0x105e   :  { %2030 = vmatmul.mubr.msk.bf16.vlgmr.msra.gmra.mrb[4].mxu1 %vm532_vm6, %v1285_v45 }
0x105f   :  { %2034 = vmatpush3.bf16.xpose.msra.mxu1 %v2586_v13  ;;  %2037 = vmatprep.mubr.msk.bf16.mxu1 %vm2295_vm7, %v2293_v32 }
0x1060   :  { %2035 = vmatprep.subr.bf16.mxu1 %v2293_v32 }
0x1067   :  { %2036 = vmatpush3.bf16.xpose.msra.mxu1 %v2599_v6 }
0x1068   :  { %2057 = vmatprep.subr.bf16.mxu1 %v2293_v32 }
0x1131   :  { %v1323_v46 = vpop.f32.mrb[4].mxu1 }
0x1132   :  { %v1329_v47 = vmax.f32 %v1323_v46, 1e-33  ;;  %v2031_v28 = vpop.f32.mrb[5].mxu1 }
0x1133   :  { %v1326_v48 = vpop.f32.mrb[6].mxu1 }
0x1134   :  { %2205 = vrcp.f32 %v1329_v47  ;;  %v2032_v49 = vpop.f32.mrb[7].mxu1 }
0x113e   :  { %v2206_v29 = vpop.eup %2205 }
0x113f   :  { %v1331_v30 = vmul.f32 0.041666668, %v2206_v29 }
0x1141   :  { %v1332_v31 = vpack.c.bf16 %v1331_v30, %v1331_v30 }
0x1143   :  { %2038 = vmatmul.mubr.msk.bf16.vlgmr.msra.gmra.mrb[8].mxu1 %vm224_vm4, %v1332_v31 }
0x1144   :  { %2058 = vmatpush3.bf16.msra.mxu1 %v2581_v3  ;;  %2061 = vmatprep.mubr.msk.bf16.mxu1 %vm2295_vm7, %v2293_v32 }
0x1145   :  { %2059 = vmatprep.subr.bf16.mxu1 %v2293_v32 }
0x1148   :  { %2060 = vmatpush3.bf16.msra.mxu1 %v2590_v12 }
0x1149   :  { %2065 = vmatprep.subr.bf16.mxu1 %v2293_v32 }
0x1216   :  { %v1370_v50 = vpop.f32.mrb[8].mxu1 }
0x1217   :  { %v1376_v51 = vmax.f32 %v1370_v50, 1e-33  ;;  %v2039_v52 = vpop.f32.mrb[9].mxu1 }
0x1218   :  { %v1373_v53 = vpop.f32.mrb[10].mxu1 }
0x1219   :  { %2207 = vrcp.f32 %v1376_v51  ;;  %v2040_v54 = vpop.f32.mrb[11].mxu1 }
0x1223   :  { %v2208_v55 = vpop.eup %2207 }
0x1224   :  { %v1378_v57 = vmul.f32 0.03125, %v2208_v55 }
0x1226   :  { %v1379_v58 = vpack.c.bf16 %v1378_v57, %v1378_v57 }
0x1228   :  { %2046 = vmatmul.mubr.msk.bf16.vlgmr.msra.gmra.mrb[12].mxu0 %vm532_vm6, %v1379_v58 }
0x1229   :  { %2050 = vmatpush3.bf16.xpose.msra.mxu0 %v2586_v13  ;;  %2053 = vmatprep.mubr.msk.bf16.mxu0 %vm2295_vm7, %v2293_v32 }
0x122a   :  { %2051 = vmatprep.subr.bf16.mxu0 %v2293_v32 }
0x1231   :  { %2052 = vmatpush3.bf16.xpose.msra.mxu0 %v2599_v6 }
0x12fb   :  { %v1417_v59 = vpop.f32.mrb[12].mxu0 }
0x12fc   :  { %v1423_v61 = vmax.f32 %v1417_v59, 1e-33  ;;  %v2047_v60 = vpop.f32.mrb[13].mxu0 }
0x12fd   :  { %v1420_v63 = vpop.f32.mrb[14].mxu0 }
0x12fe   :  { %2209 = vrcp.f32 %v1423_v61  ;;  %v2048_v0 = vpop.f32.mrb[15].mxu0 }
0x1308   :  { %v2210_v56 = vpop.eup %2209 }
0x1309   :  { %v1425_v14 = vmul.f32 0.041666668, %v2210_v56 }
0x130b   :  { %v1426_v11 = vpack.c.bf16 %v1425_v14, %v1425_v14 }
0x130d   :  { %2054 = vmatmul.mubr.msk.bf16.vlgmr.msra.gmra.mrb[16].mxu0 %vm224_vm4, %v1426_v11 }
0x130e   :  { %2077 = vmatprep.mubr.msk.bf16.mxu0 %vm224_vm4, %v2581_v3 }
0x13e0   :  { %v1464_v2 = vpop.f32.mrb[16].mxu0 }
0x13e1   :  { %v1470_v4 = vmax.f32 %v1464_v2, 1e-33  ;;  %v2055_v5 = vpop.f32.mrb[17].mxu0 }
0x13e2   :  { %v1467_v7 = vpop.f32.mrb[18].mxu0 }
0x13e3   :  { %2211 = vrcp.f32 %v1470_v4  ;;  %v2056_v8 = vpop.f32.mrb[19].mxu0 }
0x13ed   :  { %v2212_v9 = vpop.eup %2211 }
0x13ee   :  { %v1472_v10 = vmul.f32 0.03125, %v2212_v9 }
0x13f0   :  { %v1473_v15 = vpack.c.bf16 %v1472_v10, %v1472_v10 }
0x13f2   :  { %2062 = vmatmul.mubr.msk.bf16.vlgmr.msra.gmra.mrb[12].mxu1 %vm532_vm6, %v1473_v15 }
0x13f3   :  { %2066 = vmatpush3.bf16.xpose.msra.mxu1 %v2586_v13  ;;  %2069 = vmatprep.mubr.msk.bf16.mxu1 %vm2295_vm7, %v2293_v32 }
0x13f4   :  { %2067 = vmatprep.subr.bf16.mxu1 %v2293_v32 }
0x13fb   :  { %2068 = vmatpush3.bf16.xpose.msra.mxu1 %v2599_v6 }
0x14c5   :  { %v1511_v3 = vpop.f32.mrb[12].mxu1 }
0x14c6   :  { %v1517_v16 = vmax.f32 %v1511_v3, 1e-33  ;;  %v2063_v17 = vpop.f32.mrb[13].mxu1 }
0x14c7   :  { %v1514_v18 = vpop.f32.mrb[14].mxu1 }
0x14c8   :  { %2213 = vrcp.f32 %v1517_v16  ;;  %v2064_v19 = vpop.f32.mrb[15].mxu1 }
0x14d2   :  { %v2214_v20 = vpop.eup %2213 }
0x14d3   :  { %v1519_v21 = vmul.f32 0.041666668, %v2214_v20 }
0x14d5   :  { %v1520_v22 = vpack.c.bf16 %v1519_v21, %v1519_v21  ;;  %1567 = vxpose.xlu0.b32.start.end [1/1] (short) (narrow) %v1519_v21, 24 }
0x14d7   :  { %2070 = vmatmul.mubr.msk.bf16.vlgmr.msra.gmra.mrb[16].mxu1 %vm224_vm4, %v1520_v22 }
0x1555   :  { %v1583_v13 = vpop.trf.xlu0 }
0x1556   :  { %1604 = vperm.xlu1 %2188, %v1583_v13  }
0x1559   :  { %v1584_v23 = vpop.trf.xlu0 }
0x155a   :  { %1609 = vperm.xlu1 %2188, %v1584_v23  }
0x155d   :  { %v1585_v24 = vpop.trf.xlu0 }
0x155e   :  { %1614 = vperm.xlu1 %2188, %v1585_v24  }
0x15aa   :  { %v1558_v32 = vpop.f32.mrb[16].mxu1 }
0x15ab   :  { %v1564_v6 = vmax.f32 %v1558_v32, 1e-33  ;;  %v2071_v25 = vpop.f32.mrb[17].mxu1 }
0x15ac   :  { %v1561_v26 = vpop.f32.mrb[18].mxu1 }
0x15ad   :  { %2215 = vrcp.f32 %v1564_v6  ;;  %v2072_v62 = vpop.f32.mrb[19].mxu1 }
0x15b7   :  { %v2216_v27 = vpop.eup %2215 }
0x15b8   :  { %v1566_v33 = vmul.f32 0.03125, %v2216_v27 }
0x15ba   :  { %1675 = vxpose.xlu1.b32.start.end [1/1] (short) (narrow) %v1566_v33, 32 }
0x15d5   :  { %v1605_v35 = vpop.permute.xlu1 %1604 }
0x15d6   :  { %v1617_v37 = vmul.f32 %v1605_v35, %v1599_v34 }
0x15d9   :  { %v1610_v1 = vpop.permute.xlu1 %1609 }
0x15da   :  { %v1618_v38 = vmul.f32 %v1610_v1, %v1600_v36 }
0x15dc   :  { %v1620_v40 = vpack.c.bf16 %v1618_v38, %v1617_v37 }
0x15dd   :  { %v1615_v41 = vpop.permute.xlu1 %1614 }
0x15de   :  { %v1619_v42 = vmul.f32 %v1615_v41, %v1601_v39  ;;  %2073 = vmatprep.subr.bf16.mxu0 %v1620_v40 }
0x15df   :  { %2074 = vmatpush3.bf16.msra.mxu0 %v1620_v40 }
0x15e0   :  { %v1621_v43 = vpack.c.bf16 %v1619_v42, %v1619_v42 }
0x15e2   :  { %v1624_v44 = vsel %vm1622_vm8, %v1621_v43, 0  ;;  %2093 = vmatprep.subr.msk.bf16.mxu0 %vm1622_vm8, %v1621_v43 }
0x15e3   :  { %2076 = vmatpush3.bf16.msra.mxu0 %v1624_v44 }
0x15e6   :  { %2078 = vmatmul.mubr.msk.bf16.vlgmr.msra.gmra.mrb[20].mxu0 %vm224_vm4, %v2590_v12 }
0x163a   :  { %v1691_v45 = vpop.trf.xlu1 }
0x163b   :  { %v1707_v46 = vmul.f32 32.0, %v1691_v45 }
0x163d   :  { %1713 = vperm.xlu0 %2187, %v1707_v46  }
0x163e   :  { %v1692_v47 = vpop.trf.xlu1 }
0x163f   :  { %v1708_v28 = vmul.f32 32.0, %v1692_v47 }
0x1641   :  { %1718 = vperm.xlu1 %2188, %v1708_v28  }
0x1642   :  { %v1693_v48 = vpop.trf.xlu1 }
0x1643   :  { %v1709_v49 = vmul.f32 32.0, %v1693_v48 }
0x1645   :  { %1723 = vperm.xlu0 %2187, %v1709_v49  }
0x1646   :  { %v1694_v29 = vpop.trf.xlu1 }
0x1647   :  { %v1710_v30 = vmul.f32 32.0, %v1694_v29 }
0x1649   :  { %1728 = vperm.xlu0 %2187, %v1710_v30  }
0x16b9   :  { %v2079_v31 = vpop.f32.mrb[20].mxu0 }
0x16ba   :  { %v1660_v50 = vpop.f32.mrb[21].mxu0 }
0x16bb   :  { %v2080_v51 = vpop.f32.mrb[22].mxu0 }
0x16bc   :  { %v1714_v52 = vpop.permute.xlu0 %1713  ;;  %v1663_v53 = vpop.f32.mrb[23].mxu0 }
0x16bd   :  { %v1731_v54 = vmul.f32 %v1714_v52, %v1660_v50 }
0x16bf   :  { %1735 = vst [vmem:[#allocation3] sm:$0xff] %v1731_v54 }
0x16c0   :  { %v1719_v12 = vpop.permute.xlu1 %1718 }
0x16c1   :  { %v1732_v55 = vmul.f32 %v1719_v12, %v1663_v53 }
0x16c3   :  { %1736 = vst [vmem:[#allocation3 + $0x8] sm:$0xff] %v1732_v55 }
0x16c4   :  { %v1724_v57 = vpop.permute.xlu0 %1723 }
0x16c5   :  { %v1733_v58 = vmul.f32 %v2079_v31, %v1724_v57 }
0x16c7   :  { %1737 = vst [vmem:[#allocation3 + $0x10] sm:$0xff] %v1733_v58 }
0x16c8   :  { %v1729_v59 = vpop.permute.xlu0 %1728 }
0x16c9   :  { %v1734_v61 = vmul.f32 %v2080_v51, %v1729_v59 }
0x16cb   :  { %1738 = vst [vmem:[#allocation3 + $0x18] sm:$0xff] %v1734_v61 }
0x16cc   :  { %2228 = shalt.err (!%p2225_p5)
}
0x16cd   :  { %s2229_s27 = scalar_lea.hbm %s2687_s5, 512 }
0x16ce   :  { %p2230_p6 = scmp.ne.s32.totalorder %s2687_s5, %s2229_s27  ;;  %p2233_p7 = scmp.lt.u32.totalorder %s2229_s27, %s2687_s5 }
0x16d0   :  { %p2235_p8 = pnand %p2233_p7, %p2230_p6 }
0x16d2   :  { %2238 = shalt.err (!%p2235_p8)
}
0x16d3   :  { %s2298_s6 = smov 128   ;;  %s2299_s7 = smov 8  }
0x16d4   :  { %1750 = dma.vmem_to_hbm [thread:$0]  %s1745_s24, 512, %s2687_s5, [#allocation4], %s2298_s6, %s2298_s6, %s2299_s7  }
0x16d5   :  { %2263 = dma.done.wait [#allocation4], 512  }
0x16d6   :  { %2264 = vsyncadd [#allocation4], 4294966784 }
0x16d7   :  { %1754 = vsyncpa [#allocation4], 1 }

// kernel: tpu_custom_call.1
= control target key start
LH: loop header
LB: loop body
LE: loop exit
PB: predicated region body
PF: predicated region fallthrough
CT: control target
= control target key end

     0   :  { %vm41_vm0 = vcmask 130048   ;;  %s2682_s0 = inlined_call_operand.vmem [shape: f32[32,16], index: 0, kind: input, shape index: {}]   ;;  %s2683_s1 = inlined_call_operand.vmem [shape: f32[32,4], index: 1, kind: input, shape index: {}]   ;;  %s2684_s2 = inlined_call_operand.vmem [shape: f32[24,16], index: 2, kind: input, shape index: {}]   ;;  %s2685_s3 = inlined_call_operand.vmem [shape: f32[24,4], index: 3, kind: input, shape index: {}]   ;;  %s2686_s4 = inlined_call_operand.vmem [shape: f32[24,128], index: 4, kind: input, shape index: {}]   ;;  %s2687_s5 = inlined_call_operand.hbm [shape: f32[32,128], index: 5, kind: output, shape index: {}]  }
   0x1   :  { %v31_v0 = vld [vmem:[%s2684_s2] sm:$0xff]  ;;  %v32_v1 = vld [vmem:[%s2684_s2 + $0x8] sm:$0xff]  ;;  %v33_v2 = vld [vmem:[%s2684_s2 + $0x10] sm:$0xff] }
   0x2   :  { %v54_v3 = vmul.f32 %v31_v0, %v31_v0  ;;  %v55_v4 = vmul.f32 %v32_v1, %v32_v1  ;;  %v56_v5 = vmul.f32 %v33_v2, %v33_v2 }
   0x3   :  { %10 = vsyncpa [#allocation4], 0  ;;  %v2081_v6 = vpack.c.bf16 %v32_v1, %v31_v0  ;;  %v23_v7 = vld [vmem:[%s2682_s0] sm:$0xff]  ;;  %v24_v11 = vld [vmem:[%s2682_s0 + $0x8] sm:$0xff]  ;;  %vm258_vm2 = vcmask 31744   ;;  %v204_v51 = vlaneseq  ;;  %vm224_vm4 = vcmask 195584  }
   0x4   :  { %vm2082_vm1 = vmpackc.low %vm41_vm0, %vm41_vm0  ;;  %v37_v8 = vmul.f32 %v23_v7, %v23_v7  ;;  %1895 = vmatprep.mubr.msk.f32.mxu0 %vm41_vm0, %v23_v7  ;;  %v57_v9 = vsel %vm41_vm0, %v54_v3, 0.0  ;;  %v63_v10 = vsel %vm41_vm0, %v56_v5, 0.0  ;;  %v25_v12 = vld [vmem:[%s2682_s0 + $0x10] sm:$0xff]  ;;  %v60_v13 = vsel %vm41_vm0, %v55_v4, 0.0  ;;  %v26_v17 = vld [vmem:[%s2682_s0 + $0x18] sm:$0xff] }
   0x5   :  { %2083 = vmatprep.subr.msk.bf16.mxu0 %vm2082_vm1, %v2081_v6  ;;  %58 = vadd.xlane.f32.xlu0 %v57_v9  ;;  %v39_v15 = vmul.f32 %v25_v12, %v25_v12  ;;  %v38_v16 = vmul.f32 %v24_v11, %v24_v11  ;;  %v40_v20 = vmul.f32 %v26_v17, %v26_v17  ;;  %v34_v22 = vld [vmem:[%s2685_s3] sm:$0xff]  ;;  %v35_v23 = vld [vmem:[%s2685_s3 + $0x8] sm:$0xff]  ;;  %vm2088_vm3 = vmpackc.low %vm258_vm2, %vm258_vm2  ;;  %v205_v53 = vshrl.u32 %v204_v51, 7 }
   0x6   :  { %64 = vadd.xlane.f32.xlu1 %v63_v10  ;;  %2086 = vmatpush3.bf16.xpose.msk.msra.mxu0 %vm2082_vm1, %v2081_v6  ;;  %v42_v14 = vsel %vm41_vm0, %v37_v8, 0.0  ;;  %v271_v24 = vmul.f32 %v34_v22, %v34_v22  ;;  %v272_v25 = vmul.f32 %v35_v23, %v35_v23  ;;  %v2087_v26 = vpack.c.bf16 %v35_v23, %v34_v22  ;;  %v27_v27 = vld [vmem:[%s2683_s1] sm:$0xff]  ;;  %v36_v28 = vld [vmem:[%s2685_s3 + $0x10] sm:$0xff]  ;;  %v28_v33 = vld [vmem:[%s2683_s1 + $0x8] sm:$0xff] }
   0x7   :  { %1893 = vmatprep.subr.msk.mxu0 %vm41_vm0, %v33_v2  ;;  %v48_v18 = vsel %vm41_vm0, %v39_v15, 0.0  ;;  %v45_v19 = vsel %vm41_vm0, %v38_v16, 0.0  ;;  %v51_v21 = vsel %vm41_vm0, %v40_v20, 0.0  ;;  %1907 = vmatprep.mubr.msk.f32.mxu1 %vm258_vm2, %v27_v27  ;;  %v273_v31 = vmul.f32 %v36_v28, %v36_v28  ;;  %v29_v34 = vld [vmem:[%s2683_s1 + $0x10] sm:$0xff]  ;;  %v30_v35 = vld [vmem:[%s2683_s1 + $0x18] sm:$0xff]  ;;  %s2444_s1 = smov 0  }
   0x8   :  { %v274_v29 = vsel %vm258_vm2, %v271_v24, 0.0  ;;  %2089 = vmatprep.subr.msk.bf16.mxu1 %vm2088_vm3, %v2087_v26  ;;  %v277_v30 = vsel %vm258_vm2, %v272_v25, 0.0  ;;  %v254_v36 = vmul.f32 %v27_v27, %v27_v27  ;;  %v255_v40 = vmul.f32 %v28_v33, %v28_v33 }
   0x9   :  { %61 = vadd.xlane.f32.xlu0 %v60_v13  ;;  %2092 = vmatpush3.bf16.xpose.msk.msra.mxu1 %vm2088_vm3, %v2087_v26  ;;  %v280_v32 = vsel %vm258_vm2, %v273_v31, 0.0  ;;  %v256_v43 = vmul.f32 %v29_v34, %v29_v34  ;;  %v257_v45 = vmul.f32 %v30_v35, %v30_v35  ;;  %v2402_v56 = vsub.s32 0, %v205_v53 }
   0xa   :  { %43 = vadd.xlane.f32.xlu1 %v42_v14  ;;  %1905 = vmatprep.subr.msk.mxu1 %vm258_vm2, %v36_v28  ;;  %v259_v38 = vsel %vm258_vm2, %v254_v36, 0.0  ;;  %v262_v42 = vsel %vm258_vm2, %v255_v40, 0.0 }
   0xb   :  { %v265_v44 = vsel %vm258_vm2, %v256_v43, 0.0  ;;  %v268_v46 = vsel %vm258_vm2, %v257_v45, 0.0 }
   0xd   :  { %46 = vadd.xlane.f32.xlu0 %v45_v19 }
   0xe   :  { %49 = vadd.xlane.f32.xlu1 %v48_v18  ;;  %1894 = vmatpush3.xpose.msk.msra.mxu0 %vm41_vm0, %v33_v2 }
  0x11   :  { %1896 = vmatmul.mubr.msk.f32.vlgmr.msra.gmra.mrb[0].mxu0 %vm41_vm0, %v24_v11  ;;  %52 = vadd.xlane.f32.xlu0 %v51_v21 }
  0x12   :  { %1898 = vmatprep.mubr.msk.f32.mxu0 %vm41_vm0, %v25_v12  ;;  %1906 = vmatpush3.xpose.msk.msra.mxu1 %vm258_vm2, %v36_v28 }
  0x15   :  { %1899 = vmatmul.mubr.msk.f32.gmra.mrb[2].mxu0 %vm41_vm0, %v26_v17  ;;  %275 = vadd.xlane.f32.xlu0 %v274_v29 }
  0x16   :  { %1908 = vmatmul.mubr.msk.f32.vlgmr.msra.gmra.mrb[0].mxu1 %vm258_vm2, %v28_v33 }
  0x17   :  { %1910 = vmatprep.mubr.msk.f32.mxu1 %vm258_vm2, %v29_v34 }
  0x19   :  { %278 = vadd.xlane.f32.xlu0 %v277_v30 }
  0x1a   :  { %1911 = vmatmul.mubr.msk.f32.gmra.mrb[2].mxu1 %vm258_vm2, %v30_v35 }
  0x1d   :  { %281 = vadd.xlane.f32.xlu0 %v280_v32 }
  0x21   :  { %260 = vadd.xlane.f32.xlu0 %v259_v38 }
  0x25   :  { %263 = vadd.xlane.f32.xlu0 %v262_v42 }
  0x29   :  { %266 = vadd.xlane.f32.xlu0 %v265_v44 }
  0x2d   :  { %269 = vadd.xlane.f32.xlu0 %v268_v46 }
  0x92   :  { %v59_v37 = vpop.xlane.xlu0 %58 }
  0x93   :  { %66 = vxpose.xlu1.b32.start [1/3] (short) (narrow) %v59_v37, 8  ;;  %v65_v41 = vpop.xlane.xlu1 %64 }
  0x96   :  { %v62_v39 = vpop.xlane.xlu0 %61 }
  0x97   :  { %67 = vxpose.xlu1.b32.cont [2/3] (short) (narrow) %v62_v39, 8  ;;  %v44_v52 = vpop.xlane.xlu1 %43 }
  0x9a   :  { %v47_v54 = vpop.xlane.xlu0 %46 }
  0x9b   :  { %68 = vxpose.xlu1.b32.end [3/3] (short) (narrow) %v65_v41, 8  ;;  %v50_v55 = vpop.xlane.xlu1 %49 }
  0x9e   :  { %v53_v59 = vpop.xlane.xlu0 %52 }
  0xa2   :  { %v276_v23 = vpop.xlane.xlu0 %275 }
  0xa6   :  { %v279_v24 = vpop.xlane.xlu0 %278 }
  0xaa   :  { %v282_v26 = vpop.xlane.xlu0 %281 }
  0xae   :  { %v261_v27 = vpop.xlane.xlu0 %260 }
  0xb2   :  { %v264_v28 = vpop.xlane.xlu0 %263 }
  0xb6   :  { %v267_v29 = vpop.xlane.xlu0 %266 }
  0xba   :  { %v270_v30 = vpop.xlane.xlu0 %269 }
  0xe4   :  { %v1897_v47 = vpop.f32.mrb[0].mxu0 }
  0xe5   :  { %v185_v48 = vpop.f32.mrb[1].mxu0  ;;  %v213_v57 = vmul.f32 2.0, %v1897_v47 }
  0xe6   :  { %v212_v60 = vmul.f32 2.0, %v185_v48 }
  0xe8   :  { %v1900_v49 = vpop.f32.mrb[2].mxu0 }
  0xe9   :  { %v195_v50 = vpop.f32.mrb[3].mxu0  ;;  %v215_v62 = vmul.f32 2.0, %v1900_v49  ;;  %v1909_v20 = vpop.f32.mrb[0].mxu1 }
  0xea   :  { %v214_v63 = vmul.f32 2.0, %v195_v50  ;;  %v402_v21 = vpop.f32.mrb[1].mxu1  ;;  %v430_v47 = vmul.f32 2.0, %v1909_v20 }
  0xeb   :  { %v429_v48 = vmul.f32 2.0, %v402_v21 }
  0xed   :  { %v1912_v22 = vpop.f32.mrb[2].mxu1 }
  0xee   :  { %v412_v25 = vpop.f32.mrb[3].mxu1  ;;  %v432_v43 = vmul.f32 2.0, %v1912_v22 }
  0xef   :  { %v431_v45 = vmul.f32 2.0, %v412_v25 }
 0x113   :  { %v82_v58 = vpop.trf.xlu1 }
 0x114   :  { %v207_v61 = vrot.slane %v82_v58, %v2402_v56 }
 0x116   :  { %v208_v0 = vadd.f32 %v207_v61, %v44_v52  ;;  %v209_v1 = vadd.f32 %v207_v61, %v47_v54  ;;  %v211_v2 = vadd.f32 %v207_v61, %v53_v59  ;;  %v210_v3 = vadd.f32 %v207_v61, %v50_v55 }
 0x118   :  { %v216_v4 = vsub.f32 %v208_v0, %v212_v60  ;;  %v217_v5 = vsub.f32 %v209_v1, %v213_v57  ;;  %v219_v6 = vsub.f32 %v211_v2, %v215_v62  ;;  %v218_v7 = vsub.f32 %v210_v3, %v214_v63 }
 0x11a   :  { %v220_v8 = vmax.f32 %v216_v4, 0.0  ;;  %v221_v9 = vmax.f32 %v217_v5, 0.0  ;;  %v223_v10 = vmax.f32 %v219_v6, 0.0  ;;  %v222_v11 = vmax.f32 %v218_v7, 0.0 }
 0x11c   :  { %225 = vst.msk [vmem:[#allocation2] sm:$0xff] %vm224_vm4, %v220_v8  ;;  %226 = vst.msk [vmem:[#allocation2 + $0x8] sm:$0xff] %vm224_vm4, %v221_v9 }
 0x11d   :  { %228 = vst.msk [vmem:[#allocation2 + $0x18] sm:$0xff] %vm224_vm4, %v223_v10  ;;  %227 = vst.msk [vmem:[#allocation2 + $0x10] sm:$0xff] %vm224_vm4, %v222_v11 }
 0x123   :  { %v230_v12 = vld [vmem:[#allocation2 + $0x8] sm:$0xff]  ;;  %v229_v14 = vld [vmem:[#allocation2] sm:$0xff] }
 0x124   :  { %v236_v13 = vsel %vm224_vm4, %v230_v12, -inf  ;;  %v233_v15 = vsel %vm224_vm4, %v229_v14, -inf  ;;  %v232_v16 = vld [vmem:[#allocation2 + $0x18] sm:$0xff]  ;;  %v231_v18 = vld [vmem:[#allocation2 + $0x10] sm:$0xff] }
 0x125   :  { %237 = vmax.xlane.f32.xlu0 %v236_v13  ;;  %v242_v17 = vsel %vm224_vm4, %v232_v16, -inf  ;;  %v239_v19 = vsel %vm224_vm4, %v231_v18, -inf }
 0x129   :  { %234 = vmax.xlane.f32.xlu0 %v233_v15 }
 0x12d   :  { %243 = vmax.xlane.f32.xlu0 %v242_v17 }
 0x131   :  { %240 = vmax.xlane.f32.xlu0 %v239_v19 }
 0x15e   :  { %283 = vxpose.xlu0.b32.start [1/3] (short) (narrow) %v276_v23, 8 }
 0x162   :  { %284 = vxpose.xlu0.b32.cont [2/3] (short) (narrow) %v279_v24, 8 }
 0x166   :  { %285 = vxpose.xlu0.b32.end [3/3] (short) (narrow) %v282_v26, 8 }
 0x1b2   :  { %v238_v31 = vpop.xlane.xlu0 %237 }
 0x1b6   :  { %v235_v32 = vpop.xlane.xlu0 %234 }
 0x1b7   :  { %v245_v36 = vmax.f32 %v235_v32, %v238_v31  ;;  %v2440_v31 = vmov 0.0   ;;  %v2442_v32 = vmov 0.0  }
 0x1ba   :  { %v244_v33 = vpop.xlane.xlu0 %243 }
 0x1be   :  { %v241_v34 = vpop.xlane.xlu0 %240 }
 0x1bf   :  { %v246_v35 = vmax.f32 %v241_v34, %v244_v33 }
 0x1c1   :  { %v247_v37 = vmax.f32 %v245_v36, %v246_v35 }
 0x1c3   :  { %v248_v38 = vrot.slane %v247_v37, 4 }
 0x1c5   :  { %v249_v39 = vmax.f32 %v247_v37, %v248_v38 }
 0x1c7   :  { %v250_v40 = vrot.slane %v249_v39, 2 }
 0x1c9   :  { %v251_v41 = vmax.f32 %v249_v39, %v250_v40 }
 0x1cb   :  { %v252_v46 = vrot.slane %v251_v41, 1 }
 0x1cd   :  { %v253_v58 = vmax.f32 %v251_v41, %v252_v46 }
 0x1de   :  { %v299_v42 = vpop.trf.xlu0 }
 0x1df   :  { %v424_v44 = vrot.slane %v299_v42, %v2402_v56 }
 0x1e1   :  { %v425_v49 = vadd.f32 %v424_v44, %v261_v27  ;;  %v426_v50 = vadd.f32 %v424_v44, %v264_v28  ;;  %v428_v51 = vadd.f32 %v424_v44, %v270_v30  ;;  %v427_v52 = vadd.f32 %v424_v44, %v267_v29 }
 0x1e2   :  { %v2436_v29 = vmov 0.0   ;;  %v2438_v30 = vmov 0.0  }
 0x1e3   :  { %v433_v53 = vsub.f32 %v425_v49, %v429_v48  ;;  %v434_v54 = vsub.f32 %v426_v50, %v430_v47  ;;  %v436_v55 = vsub.f32 %v428_v51, %v432_v43  ;;  %v435_v57 = vsub.f32 %v427_v52, %v431_v45 }
 0x1e5   :  { %v437_v59 = vmax.f32 %v433_v53, 0.0  ;;  %v438_v60 = vmax.f32 %v434_v54, 0.0  ;;  %v440_v61 = vmax.f32 %v436_v55, 0.0  ;;  %v439_v62 = vmax.f32 %v435_v57, 0.0 }
 0x1e7   :  { %v441_v63 = vmul.f32 %v437_v59, %v253_v58  ;;  %v442_v0 = vmul.f32 %v438_v60, %v253_v58  ;;  %v444_v1 = vmul.f32 %v440_v61, %v253_v58  ;;  %v443_v2 = vmul.f32 %v439_v62, %v253_v58 }
 0x1e9   :  { %v445_v3 = vadd.f32 %v441_v63, %v229_v14  ;;  %v446_v4 = vadd.f32 %v442_v0, %v230_v12  ;;  %v448_v5 = vadd.f32 %v444_v1, %v232_v16  ;;  %v447_v6 = vadd.f32 %v443_v2, %v231_v18 }
 0x1eb   :  { %v449_v7 = vmul.f32 -2.0, %v445_v3  ;;  %v450_v8 = vmul.f32 -2.0, %v446_v4  ;;  %v452_v9 = vmul.f32 -2.0, %v448_v5  ;;  %v451_v10 = vmul.f32 -2.0, %v447_v6 }
 0x1ed   :  { %453 = vst.msk [vmem:[#allocation2] sm:$0xff] %vm224_vm4, %v449_v7  ;;  %454 = vst.msk [vmem:[#allocation2 + $0x8] sm:$0xff] %vm224_vm4, %v450_v8 }
 0x1ee   :  { %456 = vst.msk [vmem:[#allocation2 + $0x18] sm:$0xff] %vm224_vm4, %v452_v9  ;;  %455 = vst.msk [vmem:[#allocation2 + $0x10] sm:$0xff] %vm224_vm4, %v451_v10 }
 0x1f4   :  { %v2418_v11 = vld [vmem:[#allocation2] sm:$0xff]  ;;  %v2420_v13 = vld [vmem:[#allocation2 + $0x8] sm:$0xff] }
 0x1f5   :  { %v2422_v14 = vld [vmem:[#allocation2 + $0x10] sm:$0xff]  ;;  %v2424_v12 = vld [vmem:[#allocation2 + $0x18] sm:$0xff]  ;;  %v461_v15 = vsel %vm224_vm4, %v2418_v11, -inf  ;;  %v462_v16 = vsel %vm224_vm4, %v2420_v13, -inf }
 0x1f6   :  { %v463_v17 = vsel %vm224_vm4, %v2422_v14, -inf  ;;  %v464_v18 = vsel %vm224_vm4, %v2424_v12, -inf  ;;  %v465_v19 = vmax.f32 %v461_v15, %v462_v16 }
 0x1f7   :  { %v466_v20 = vmax.f32 %v463_v17, %v464_v18 }
 0x1f9   :  { %v467_v21 = vmax.f32 %v465_v19, %v466_v20 }
 0x1fb   :  { %v468_v22 = vrot.slane %v467_v21, 4 }
 0x1fd   :  { %v469_v23 = vmax.f32 %v467_v21, %v468_v22 }
 0x1ff   :  { %v470_v24 = vrot.slane %v469_v23, 2 }
 0x201   :  { %v471_v25 = vmax.f32 %v469_v23, %v470_v24 }
 0x203   :  { %v472_v26 = vrot.slane %v471_v25, 1 }
 0x205   :  { %v473_v27 = vmax.f32 %v471_v25, %v472_v26 }
 0x207   :  { %v474_v28 = vsub.f32 0.0, %v473_v27  }
 0x208 LB: > { %v2289_v33 = vmov 0   ;;  %v2290_v34 = vmov 0.0   ;;  %vm2291_vm5 = vmmov 0   ;;  %v486_v35 = vld [vmem:[#allocation2] sm:$0xff]  ;;  %v488_v36 = vld [vmem:[#allocation2 + $0x10] sm:$0xff]  ;;  %v517_v37 = vrot.slane %v2267_v28, %v2402_v56  ;;  %v487_v42 = vld [vmem:[#allocation2 + $0x8] sm:$0xff]  ;;  %s2287_s1 = sphi %s2444_s1, %s480_s1   ;;  %v2283_v32 = vphi %v2442_v32, %v2692_v32   ;;  %v2279_v31 = vphi %v2440_v31, %v2691_v31   ;;  %v2275_v30 = vphi %v2438_v30, %v2690_v30   ;;  %v2271_v29 = vphi %v2436_v29, %v2689_v29   ;;  %v2267_v28 = vphi %v474_v28, %v2688_v28  }
 0x209   : > { %2154 = vset.pattern.permute.xlu1 %v2289_v33  ;;  %2153 = vset.pattern.permute.xlu0 %v2289_v33  ;;  %v489_v43 = vld [vmem:[#allocation2 + $0x18] sm:$0xff]  ;;  %vm532_vm6 = vcmask 261120   ;;  %v2292_v0 = vmov 1065369472   ;;  %s480_s1 = sadd.s32 1, %s2287_s1  }
 0x20a   : > { %492 = vperm.xlu0 %2153, %v2283_v32   ;;  %502 = vperm.xlu1 %2154, %v2275_v30   ;;  %p477_p0 = scmp.ge.s32.totalorder %s480_s1, 9  }
 0x20b   : > { %1913 = vmatprep.subr.bf16.mxu0 %v2290_v34  ;;  %1921 = vmatprep.subr.bf16.mxu1 %v2290_v34  ;;  %vm2295_vm7 = vmmov (%p477_p0), 0   ;;  %vm1622_vm8 = vcmask (%p477_p0), 1043456  }
 0x20c   : > { %1917 = vmatprep.mubr.msk.bf16.mxu0 %vm2291_vm5, %v2290_v34  ;;  %1925 = vmatprep.mubr.msk.bf16.mxu1 %vm2291_vm5, %v2290_v34 }
 0x20e   : > { %497 = vperm.xlu0 %2153, %v2279_v31   ;;  %507 = vperm.xlu1 %2154, %v2271_v29  }
 0x289   : > { %v493_v38 = vpop.permute.xlu0 %492  ;;  %v503_v39 = vpop.permute.xlu1 %502 }
 0x28a   : > { %v510_v40 = vadd.f32 %v493_v38, %v486_v35  ;;  %v512_v41 = vadd.f32 %v503_v39, %v488_v36 }
 0x28c   : > { %v518_v44 = vadd.f32 %v517_v37, %v510_v40  ;;  %v520_v45 = vadd.f32 %v517_v37, %v512_v41 }
 0x28d   : > { %v498_v46 = vpop.permute.xlu0 %497  ;;  %v508_v47 = vpop.permute.xlu1 %507 }
 0x28e   : > { %v511_v48 = vadd.f32 %v498_v46, %v487_v42  ;;  %v513_v49 = vadd.f32 %v508_v47, %v489_v43  ;;  %v522_v50 = vmul.f32 1.442695, %v518_v44  ;;  %v526_v53 = vmul.f32 1.442695, %v520_v45 }
 0x290   : > { %v519_v51 = vadd.f32 %v517_v37, %v511_v48  ;;  %v521_v52 = vadd.f32 %v517_v37, %v513_v49  ;;  %2155 = vpow2.f32 %v522_v50 }
 0x292   : > { %v524_v54 = vmul.f32 1.442695, %v519_v51  ;;  %v528_v55 = vmul.f32 1.442695, %v521_v52 }
 0x294   : > { %2157 = vpow2.f32 %v524_v54 }
 0x295   : > { %2159 = vpow2.f32 %v526_v53 }
 0x296   : > { %2161 = vpow2.f32 %v528_v55 }
 0x29a   : > { %v2156_v57 = vpop.eup %2155 }
 0x29e   : > { %v2158_v58 = vpop.eup %2157 }
 0x29f   : > { %v2160_v59 = vpop.eup %2159  ;;  %v2476_v60 = vpack.c.bf16 %v2158_v58, %v2156_v57 }
 0x2a0   : > { %v2162_v61 = vpop.eup %2161 }
 0x2a1   : > { %1914 = vmatpush3.bf16.msra.mxu0 %v2476_v60  ;;  %v2481_v62 = vsel %vm224_vm4, %v2476_v60, 0  ;;  %v2485_v63 = vpack.c.bf16 %v2162_v61, %v2160_v59 }
 0x2a2   : > { %1922 = vmatpush3.bf16.xpose.msra.mxu1 %v2481_v62  ;;  %1915 = vmatprep.subr.bf16.mxu0 %v2290_v34 }
 0x2a3   : > { %1923 = vmatprep.subr.bf16.mxu1 %v2290_v34  ;;  %v2494_v1 = vsel %vm224_vm4, %v2485_v63, 0 }
 0x2a5   : > { %1916 = vmatpush3.bf16.msra.mxu0 %v2485_v63 }
 0x2a6   : > { %1929 = vmatprep.subr.bf16.mxu0 %v2290_v34 }
 0x2a8   : > { %1918 = vmatmul.mubr.msk.bf16.vlgmr.msra.gmra.mrb[0].mxu0 %vm532_vm6, %v2292_v0 }
 0x2a9   : > { %1930 = vmatpush3.bf16.msra.mxu0 %v2476_v60  ;;  %1933 = vmatprep.mubr.msk.bf16.mxu0 %vm2291_vm5, %v2290_v34 }
 0x2aa   : > { %1924 = vmatpush3.bf16.xpose.msra.mxu1 %v2494_v1  ;;  %1931 = vmatprep.subr.bf16.mxu0 %v2290_v34 }
 0x2ab   : > { %1945 = vmatprep.subr.bf16.mxu1 %v2290_v34 }
 0x2ad   : > { %1932 = vmatpush3.bf16.msra.mxu0 %v2485_v63 }
 0x2ae   : > { %1937 = vmatprep.subr.bf16.mxu0 %v2290_v34 }
 0x37b   : > { %v570_v2 = vpop.f32.mrb[0].mxu0 }
 0x37c   : > { %v576_v3 = vmax.f32 %v570_v2, 1e-33  ;;  %v1919_v4 = vpop.f32.mrb[1].mxu0 }
 0x37d   : > { %v573_v5 = vpop.f32.mrb[2].mxu0 }
 0x37e   : > { %2163 = vrcp.f32 %v576_v3  ;;  %v1920_v6 = vpop.f32.mrb[3].mxu0 }
 0x388   : > { %v2164_v7 = vpop.eup %2163 }
 0x389   : > { %v578_v8 = vmul.f32 0.041666668, %v2164_v7 }
 0x38b   : > { %v579_v9 = vpack.c.bf16 %v578_v8, %v578_v8 }
 0x38d   : > { %1926 = vmatmul.mubr.msk.bf16.vlgmr.msra.gmra.mrb[0].mxu1 %vm224_vm4, %v579_v9 }
 0x38e   : > { %1946 = vmatpush3.bf16.msra.mxu1 %v2476_v60  ;;  %1949 = vmatprep.mubr.msk.bf16.mxu1 %vm2291_vm5, %v2290_v34 }
 0x38f   : > { %1947 = vmatprep.subr.bf16.mxu1 %v2290_v34 }
 0x392   : > { %1948 = vmatpush3.bf16.msra.mxu1 %v2485_v63 }
 0x393   : > { %1953 = vmatprep.subr.bf16.mxu1 %v2290_v34 }
 0x460   : > { %v623_v10 = vpop.f32.mrb[0].mxu1 }
 0x461   : > { %v629_v15 = vmax.f32 %v623_v10, 1e-33  ;;  %v1927_v16 = vpop.f32.mrb[1].mxu1 }
 0x462   : > { %v626_v17 = vpop.f32.mrb[2].mxu1 }
 0x463   : > { %2165 = vrcp.f32 %v629_v15  ;;  %v1928_v18 = vpop.f32.mrb[3].mxu1 }
 0x46d   : > { %v2166_v19 = vpop.eup %2165 }
 0x46e   : > { %v631_v20 = vmul.f32 0.03125, %v2166_v19 }
 0x470   : > { %v632_v21 = vpack.c.bf16 %v631_v20, %v631_v20 }
 0x472   : > { %1934 = vmatmul.mubr.msk.bf16.vlgmr.msra.gmra.mrb[4].mxu0 %vm532_vm6, %v632_v21 }
 0x473   : > { %1938 = vmatpush3.bf16.xpose.msra.mxu0 %v2481_v62  ;;  %1941 = vmatprep.mubr.msk.bf16.mxu0 %vm2291_vm5, %v2290_v34 }
 0x474   : > { %1939 = vmatprep.subr.bf16.mxu0 %v2290_v34 }
 0x47b   : > { %1940 = vmatpush3.bf16.xpose.msra.mxu0 %v2494_v1 }
 0x47c   : > { %1961 = vmatprep.subr.bf16.mxu0 %v2290_v34 }
 0x545   : > { %v670_v22 = vpop.f32.mrb[4].mxu0 }
 0x546   : > { %v676_v23 = vmax.f32 %v670_v22, 1e-33  ;;  %v1935_v24 = vpop.f32.mrb[5].mxu0 }
 0x547   : > { %v673_v25 = vpop.f32.mrb[6].mxu0 }
 0x548   : > { %2167 = vrcp.f32 %v676_v23  ;;  %v1936_v26 = vpop.f32.mrb[7].mxu0 }
 0x552   : > { %v2168_v27 = vpop.eup %2167 }
 0x553   : > { %v678_v33 = vmul.f32 0.041666668, %v2168_v27 }
 0x555   : > { %v679_v35 = vpack.c.bf16 %v678_v33, %v678_v33 }
 0x557   : > { %1942 = vmatmul.mubr.msk.bf16.vlgmr.msra.gmra.mrb[8].mxu0 %vm224_vm4, %v679_v35 }
 0x558   : > { %1962 = vmatpush3.bf16.msra.mxu0 %v2476_v60  ;;  %1965 = vmatprep.mubr.msk.bf16.mxu0 %vm2291_vm5, %v2290_v34 }
 0x559   : > { %1963 = vmatprep.subr.bf16.mxu0 %v2290_v34 }
 0x55c   : > { %1964 = vmatpush3.bf16.msra.mxu0 %v2485_v63 }
 0x55d   : > { %1969 = vmatprep.subr.bf16.mxu0 %v2290_v34 }
 0x62a   : > { %v717_v36 = vpop.f32.mrb[8].mxu0 }
 0x62b   : > { %v723_v37 = vmax.f32 %v717_v36, 1e-33  ;;  %v1943_v38 = vpop.f32.mrb[9].mxu0 }
 0x62c   : > { %v720_v39 = vpop.f32.mrb[10].mxu0 }
 0x62d   : > { %2169 = vrcp.f32 %v723_v37  ;;  %v1944_v40 = vpop.f32.mrb[11].mxu0 }
 0x637   : > { %v2170_v41 = vpop.eup %2169 }
 0x638   : > { %v725_v42 = vmul.f32 0.03125, %v2170_v41 }
 0x63a   : > { %v726_v43 = vpack.c.bf16 %v725_v42, %v725_v42 }
 0x63c   : > { %1950 = vmatmul.mubr.msk.bf16.vlgmr.msra.gmra.mrb[4].mxu1 %vm532_vm6, %v726_v43 }
 0x63d   : > { %1954 = vmatpush3.bf16.xpose.msra.mxu1 %v2481_v62  ;;  %1957 = vmatprep.mubr.msk.bf16.mxu1 %vm2291_vm5, %v2290_v34 }
 0x63e   : > { %1955 = vmatprep.subr.bf16.mxu1 %v2290_v34 }
 0x645   : > { %1956 = vmatpush3.bf16.xpose.msra.mxu1 %v2494_v1 }
 0x646   : > { %1977 = vmatprep.subr.bf16.mxu1 %v2290_v34 }
 0x70f   : > { %v764_v44 = vpop.f32.mrb[4].mxu1 }
 0x710   : > { %v770_v45 = vmax.f32 %v764_v44, 1e-33  ;;  %v1951_v46 = vpop.f32.mrb[5].mxu1 }
 0x711   : > { %v767_v47 = vpop.f32.mrb[6].mxu1 }
 0x712   : > { %2171 = vrcp.f32 %v770_v45  ;;  %v1952_v48 = vpop.f32.mrb[7].mxu1 }
 0x71c   : > { %v2172_v49 = vpop.eup %2171 }
 0x71d   : > { %v772_v50 = vmul.f32 0.041666668, %v2172_v49  ;;  %v2294_v49 = vmov (%p477_p0), 0  }
 0x71e   :  { %2188 = vset.pattern.permute.xlu1 (%p477_p0), %v2294_v49 }
 0x71f   : > { %v773_v51 = vpack.c.bf16 %v772_v50, %v772_v50 }
 0x721   : > { %1958 = vmatmul.mubr.msk.bf16.vlgmr.msra.gmra.mrb[8].mxu1 %vm224_vm4, %v773_v51 }
 0x722   : > { %1978 = vmatpush3.bf16.msra.mxu1 %v2476_v60  ;;  %1981 = vmatprep.mubr.msk.bf16.mxu1 %vm2291_vm5, %v2290_v34 }
 0x723   : > { %1979 = vmatprep.subr.bf16.mxu1 %v2290_v34 }
 0x726   : > { %1980 = vmatpush3.bf16.msra.mxu1 %v2485_v63 }
 0x727   : > { %1985 = vmatprep.subr.bf16.mxu1 %v2290_v34 }
 0x7f4   : > { %v811_v52 = vpop.f32.mrb[8].mxu1 }
 0x7f5   : > { %v817_v53 = vmax.f32 %v811_v52, 1e-33  ;;  %v1959_v54 = vpop.f32.mrb[9].mxu1 }
 0x7f6   : > { %v814_v55 = vpop.f32.mrb[10].mxu1 }
 0x7f7   : > { %2173 = vrcp.f32 %v817_v53  ;;  %v1960_v57 = vpop.f32.mrb[11].mxu1 }
 0x801   : > { %v2174_v58 = vpop.eup %2173 }
 0x802   : > { %v819_v59 = vmul.f32 0.03125, %v2174_v58 }
 0x804   : > { %v820_v61 = vpack.c.bf16 %v819_v59, %v819_v59 }
 0x806   : > { %1966 = vmatmul.mubr.msk.bf16.vlgmr.msra.gmra.mrb[12].mxu0 %vm532_vm6, %v820_v61 }
 0x807   : > { %1970 = vmatpush3.bf16.xpose.msra.mxu0 %v2481_v62  ;;  %1973 = vmatprep.mubr.msk.bf16.mxu0 %vm2291_vm5, %v2290_v34 }
 0x808   : > { %1971 = vmatprep.subr.bf16.mxu0 %v2290_v34 }
 0x80f   : > { %1972 = vmatpush3.bf16.xpose.msra.mxu0 %v2494_v1 }
 0x8d9   : > { %v858_v60 = vpop.f32.mrb[12].mxu0 }
 0x8da   : > { %v864_v63 = vmax.f32 %v858_v60, 1e-33  ;;  %v1967_v0 = vpop.f32.mrb[13].mxu0 }
 0x8db   : > { %v861_v2 = vpop.f32.mrb[14].mxu0 }
 0x8dc   : > { %2175 = vrcp.f32 %v864_v63  ;;  %v1968_v3 = vpop.f32.mrb[15].mxu0 }
 0x8e6   : > { %v2176_v4 = vpop.eup %2175 }
 0x8e7   : > { %v866_v5 = vmul.f32 0.041666668, %v2176_v4 }
 0x8e9   : > { %v867_v6 = vpack.c.bf16 %v866_v5, %v866_v5  ;;  %v2296_v5 = vmov (%p477_p0), 1065369472  }
 0x8eb   : > { %1974 = vmatmul.mubr.msk.bf16.vlgmr.msra.gmra.mrb[16].mxu0 %vm224_vm4, %v867_v6 }
 0x9be   : > { %v905_v7 = vpop.f32.mrb[16].mxu0 }
 0x9bf   : > { %v911_v8 = vmax.f32 %v905_v7, 1e-33  ;;  %v1975_v9 = vpop.f32.mrb[17].mxu0 }
 0x9c0   : > { %v908_v10 = vpop.f32.mrb[18].mxu0 }
 0x9c1   : > { %2177 = vrcp.f32 %v911_v8  ;;  %v1976_v15 = vpop.f32.mrb[19].mxu0 }
 0x9cb   : > { %v2178_v16 = vpop.eup %2177 }
 0x9cc   : > { %v913_v17 = vmul.f32 0.03125, %v2178_v16 }
 0x9ce   : > { %v914_v18 = vpack.c.bf16 %v913_v17, %v913_v17 }
 0x9d0   : > { %1982 = vmatmul.mubr.msk.bf16.vlgmr.msra.gmra.mrb[12].mxu1 %vm532_vm6, %v914_v18 }
 0x9d1   : > { %1986 = vmatpush3.bf16.xpose.msra.mxu1 %v2481_v62  ;;  %1989 = vmatprep.mubr.msk.bf16.mxu1 %vm2291_vm5, %v2290_v34 }
 0x9d2   : > { %1987 = vmatprep.subr.bf16.mxu1 %v2290_v34 }
 0x9d9   : > { %1988 = vmatpush3.bf16.xpose.msra.mxu1 %v2494_v1 }
 0xaa3   : > { %v952_v19 = vpop.f32.mrb[12].mxu1 }
 0xaa4   : > { %v958_v20 = vmax.f32 %v952_v19, 1e-33  ;;  %v1983_v21 = vpop.f32.mrb[13].mxu1 }
 0xaa5   : > { %v955_v22 = vpop.f32.mrb[14].mxu1 }
 0xaa6   : > { %2179 = vrcp.f32 %v958_v20  ;;  %v1984_v23 = vpop.f32.mrb[15].mxu1 }
 0xab0   : > { %v2180_v24 = vpop.eup %2179 }
 0xab1   : > { %v960_v25 = vmul.f32 0.041666668, %v2180_v24 }
 0xab3   : > { %v961_v26 = vpack.c.bf16 %v960_v25, %v960_v25  ;;  %2181 = vlog2.f32 %v960_v25 }
 0xab5   : > { %1990 = vmatmul.mubr.msk.bf16.vlgmr.msra.gmra.mrb[16].mxu1 %vm224_vm4, %v961_v26 }
 0xabd   : > { %v2182_v62 = vpop.eup %2181 }
 0xabe   : > { %v1047_v27 = vmul.f32 0.6931472, %v2182_v62 }
 0xac0   : > { %v1048_v33 = vadd.f32 %v2267_v28, %v1047_v27  }
 0xb88   : > { %v999_v35 = vpop.f32.mrb[16].mxu1 }
 0xb89   : > { %v1005_v34 = vmax.f32 %v999_v35, 1e-33  ;;  %v1991_v36 = vpop.f32.mrb[17].mxu1 }
 0xb8a   : > { %v1002_v1 = vpop.f32.mrb[18].mxu1 }
 0xb8b   : > { %2183 = vrcp.f32 %v1005_v34  ;;  %v1992_v37 = vpop.f32.mrb[19].mxu1 }
 0xb95   : > { %v2184_v38 = vpop.eup %2183 }
 0xb96   : > { %v1007_v39 = vmul.f32 0.03125, %v2184_v38 }
 0xb98   : > { %2185 = vlog2.f32 %v1007_v39 }
 0xba2   : > { %v2186_v40 = vpop.eup %2185 }
 0xba3   : > { %v1009_v41 = vmul.f32 0.6931472, %v2186_v40 }
 0xba5   : > { %1010 = vxpose.xlu0.b32.start.end [1/1] (short) (narrow) %v1009_v41, 32 }
 0xbce   :  { %2187 = vset.pattern.permute.xlu0 (%p477_p0), %v2294_v49 }
 0xc25   : > { %v1026_v42 = vpop.trf.xlu0 }
 0xc26   : > { %v1042_v43 = vadd.f32 %v2283_v32, %v1026_v42  }
 0xc28   : > { %v2692_v32 = vmov %v1042_v43  ;;  %1051 = vperm.xlu0 (%p477_p0), %2187, %v1042_v43  }
 0xc29   : > { %v1027_v44 = vpop.trf.xlu0  ;;  %v2293_v32 = vmov (%p477_p0), 0.0  }
 0xc2a   : > { %v1043_v45 = vadd.f32 %v2279_v31, %v1027_v44   ;;  %1993 = vmatprep.subr.bf16.mxu0 (%p477_p0), %v2293_v32  ;;  %2001 = vmatprep.subr.bf16.mxu1 (%p477_p0), %v2293_v32 }
 0xc2b   :  { %1997 = vmatprep.mubr.msk.bf16.mxu0 (%p477_p0), %vm2295_vm7, %v2293_v32  ;;  %2005 = vmatprep.mubr.msk.bf16.mxu1 (%p477_p0), %vm2295_vm7, %v2293_v32 }
 0xc2c   : > { %v2691_v31 = vmov %v1043_v45  ;;  %1056 = vperm.xlu0 (%p477_p0), %2187, %v1043_v45  }
 0xc2d   : > { %v1028_v46 = vpop.trf.xlu0 }
 0xc2e   : > { %v1044_v47 = vadd.f32 %v2275_v30, %v1028_v46   ;;  %479 = sbr.rel (!%p477_p0) target bundleno = 520 (0x208), region = 47 }
 0xc30   : > { %v2690_v30 = vmov %v1044_v47  ;;  %1061 = vperm.xlu1 (%p477_p0), %2188, %v1044_v47  }
 0xc31   : > { %v1029_v28 = vpop.trf.xlu0 }
 0xc32   : > { %v1045_v48 = vadd.f32 %v2271_v29, %v1029_v28   ;;  %v2688_v28 = vmov %v1048_v33 }
 0xc34   : > { %v2689_v29 = vmov %v1045_v48  ;;  %1066 = vperm.xlu1 (%p477_p0), %2188, %v1045_v48  }
 0xc35   :  { %v1076_v29 = vrot.slane %v1048_v33, %v2402_v56 }
 0xca7   :  { %v1052_v31 = vpop.permute.xlu0 %1051 }
 0xca8   :  { %v1069_v51 = vadd.f32 %v1052_v31, %v2418_v11 }
 0xcaa   :  { %v1077_v52 = vadd.f32 %v1076_v29, %v1069_v51 }
 0xcab   :  { %v1057_v54 = vpop.permute.xlu0 %1056 }
 0xcac   :  { %v1070_v58 = vadd.f32 %v1057_v54, %v2420_v13  ;;  %v1081_v59 = vmul.f32 1.442695, %v1077_v52 }
 0xcae   :  { %v1078_v60 = vadd.f32 %v1076_v29, %v1070_v58  ;;  %2189 = vpow2.f32 %v1081_v59 }
 0xcaf   :  { %v1062_v30 = vpop.permute.xlu1 %1061 }
 0xcb0   :  { %v1071_v50 = vadd.f32 %v1062_v30, %v2422_v14  ;;  %v1083_v0 = vmul.f32 1.442695, %v1078_v60 }
 0xcb2   :  { %v1079_v55 = vadd.f32 %v1076_v29, %v1071_v50  ;;  %2191 = vpow2.f32 %v1083_v0 }
 0xcb3   :  { %v1067_v53 = vpop.permute.xlu1 %1066 }
 0xcb4   :  { %v1072_v57 = vadd.f32 %v1067_v53, %v2424_v12  ;;  %v1085_v63 = vmul.f32 1.442695, %v1079_v55 }
 0xcb6   :  { %v1080_v61 = vadd.f32 %v1076_v29, %v1072_v57  ;;  %2193 = vpow2.f32 %v1085_v63 }
 0xcb8   :  { %v1087_v56 = vmul.f32 1.442695, %v1080_v61  ;;  %v2190_v14 = vpop.eup %2189 }
 0xcba   :  { %2195 = vpow2.f32 %v1087_v56 }
 0xcbc   :  { %v2192_v11 = vpop.eup %2191 }
 0xcbd   :  { %v2581_v3 = vpack.c.bf16 %v2192_v11, %v2190_v14 }
 0xcbf   :  { %1994 = vmatpush3.bf16.msra.mxu0 %v2581_v3  ;;  %v2586_v13 = vsel %vm224_vm4, %v2581_v3, 0 }
 0xcc0   :  { %v2194_v2 = vpop.eup %2193  ;;  %2002 = vmatpush3.bf16.xpose.msra.mxu1 %v2586_v13  ;;  %1995 = vmatprep.subr.bf16.mxu0 %v2293_v32 }
 0xcc1   :  { %2003 = vmatprep.subr.bf16.mxu1 %v2293_v32 }
 0xcc4   :  { %v2196_v4 = vpop.eup %2195 }
 0xcc5   :  { %v2590_v12 = vpack.c.bf16 %v2196_v4, %v2194_v2 }
 0xcc7   :  { %1996 = vmatpush3.bf16.msra.mxu0 %v2590_v12  ;;  %v2599_v6 = vsel %vm224_vm4, %v2590_v12, 0 }
 0xcc8   :  { %2009 = vmatprep.subr.bf16.mxu0 %v2293_v32  ;;  %2004 = vmatpush3.bf16.xpose.msra.mxu1 %v2599_v6 }
 0xcc9   :  { %2025 = vmatprep.subr.bf16.mxu1 %v2293_v32 }
 0xcca   :  { %1998 = vmatmul.mubr.msk.bf16.vlgmr.msra.gmra.mrb[0].mxu0 %vm532_vm6, %v2296_v5 }
 0xccb   :  { %2010 = vmatpush3.bf16.msra.mxu0 %v2581_v3  ;;  %2013 = vmatprep.mubr.msk.bf16.mxu0 %vm2295_vm7, %v2293_v32 }
 0xccc   :  { %2011 = vmatprep.subr.bf16.mxu0 %v2293_v32 }
 0xccf   :  { %2012 = vmatpush3.bf16.msra.mxu0 %v2590_v12 }
 0xcd0   :  { %2017 = vmatprep.subr.bf16.mxu0 %v2293_v32 }
 0xd9d   :  { %v1129_v7 = vpop.f32.mrb[0].mxu0 }
 0xd9e   :  { %v1135_v8 = vmax.f32 %v1129_v7, 1e-33  ;;  %v1999_v9 = vpop.f32.mrb[1].mxu0 }
 0xd9f   :  { %v1132_v10 = vpop.f32.mrb[2].mxu0 }
 0xda0   :  { %2197 = vrcp.f32 %v1135_v8  ;;  %v2000_v15 = vpop.f32.mrb[3].mxu0 }
 0xdaa   :  { %v2198_v16 = vpop.eup %2197 }
 0xdab   :  { %v1137_v17 = vmul.f32 0.041666668, %v2198_v16 }
 0xdad   :  { %v1138_v18 = vpack.c.bf16 %v1137_v17, %v1137_v17 }
 0xdaf   :  { %2006 = vmatmul.mubr.msk.bf16.vlgmr.msra.gmra.mrb[0].mxu1 %vm224_vm4, %v1138_v18 }
 0xdb0   :  { %2026 = vmatpush3.bf16.msra.mxu1 %v2581_v3  ;;  %2029 = vmatprep.mubr.msk.bf16.mxu1 %vm2295_vm7, %v2293_v32 }
 0xdb1   :  { %2027 = vmatprep.subr.bf16.mxu1 %v2293_v32 }
 0xdb4   :  { %2028 = vmatpush3.bf16.msra.mxu1 %v2590_v12 }
 0xdb5   :  { %2033 = vmatprep.subr.bf16.mxu1 %v2293_v32 }
 0xe82   :  { %v1182_v19 = vpop.f32.mrb[0].mxu1 }
 0xe83   :  { %v1188_v20 = vmax.f32 %v1182_v19, 1e-33  ;;  %v2007_v21 = vpop.f32.mrb[1].mxu1 }
 0xe84   :  { %v1185_v22 = vpop.f32.mrb[2].mxu1 }
 0xe85   :  { %2199 = vrcp.f32 %v1188_v20  ;;  %v2008_v23 = vpop.f32.mrb[3].mxu1 }
 0xe8f   :  { %v2200_v24 = vpop.eup %2199 }
 0xe90   :  { %v1190_v25 = vmul.f32 0.03125, %v2200_v24 }
 0xe92   :  { %v1191_v26 = vpack.c.bf16 %v1190_v25, %v1190_v25 }
 0xe94   :  { %2014 = vmatmul.mubr.msk.bf16.vlgmr.msra.gmra.mrb[4].mxu0 %vm532_vm6, %v1191_v26 }
 0xe95   :  { %2018 = vmatpush3.bf16.xpose.msra.mxu0 %v2586_v13  ;;  %2021 = vmatprep.mubr.msk.bf16.mxu0 %vm2295_vm7, %v2293_v32 }
 0xe96   :  { %2019 = vmatprep.subr.bf16.mxu0 %v2293_v32 }
 0xe9d   :  { %2020 = vmatpush3.bf16.xpose.msra.mxu0 %v2599_v6 }
 0xe9e   :  { %2041 = vmatprep.subr.bf16.mxu0 %v2293_v32 }
 0xf67   :  { %v1229_v62 = vpop.f32.mrb[4].mxu0 }
 0xf68   :  { %v1235_v27 = vmax.f32 %v1229_v62, 1e-33  ;;  %v2015_v33 = vpop.f32.mrb[5].mxu0 }
 0xf69   :  { %v1232_v35 = vpop.f32.mrb[6].mxu0 }
 0xf6a   :  { %2201 = vrcp.f32 %v1235_v27  ;;  %v2016_v34 = vpop.f32.mrb[7].mxu0 }
 0xf6b   :  { %v1599_v34 = vld [vmem:[%s2686_s4] sm:$0xff] }
 0xf74   :  { %v2202_v36 = vpop.eup %2201 }
 0xf75   :  { %v1237_v1 = vmul.f32 0.041666668, %v2202_v36  ;;  %v1600_v36 = vld [vmem:[%s2686_s4 + $0x8] sm:$0xff] }
 0xf77   :  { %v1238_v37 = vpack.c.bf16 %v1237_v1, %v1237_v1 }
 0xf79   :  { %2022 = vmatmul.mubr.msk.bf16.vlgmr.msra.gmra.mrb[8].mxu0 %vm224_vm4, %v1238_v37 }
 0xf7a   :  { %2042 = vmatpush3.bf16.msra.mxu0 %v2581_v3  ;;  %2045 = vmatprep.mubr.msk.bf16.mxu0 %vm2295_vm7, %v2293_v32 }
 0xf7b   :  { %2043 = vmatprep.subr.bf16.mxu0 %v2293_v32 }
 0xf7e   :  { %2044 = vmatpush3.bf16.msra.mxu0 %v2590_v12 }
 0xf7f   :  { %2049 = vmatprep.subr.bf16.mxu0 %v2293_v32 }
0x104c   :  { %v1276_v38 = vpop.f32.mrb[8].mxu0 }
0x104d   :  { %v1282_v39 = vmax.f32 %v1276_v38, 1e-33  ;;  %v2023_v40 = vpop.f32.mrb[9].mxu0 }
0x104e   :  { %v1279_v41 = vpop.f32.mrb[10].mxu0 }
0x104f   :  { %2203 = vrcp.f32 %v1282_v39  ;;  %v2024_v42 = vpop.f32.mrb[11].mxu0  ;;  %v1601_v39 = vld [vmem:[%s2686_s4 + $0x10] sm:$0xff]  ;;  %s2297_s4 = smov [#allocation3]  }
0x1050   :  { %s1744_s24 = sshll.u32 %s2297_s4, 4  ;;  %s1745_s24 = int_to_ptr.vmem [resolvable:$true] %s1744_s24 }
0x1051   :  { %s2217_s25 = scalar_lea.vmem %s1745_s24, 512  ;;  %p2222_p2 = scmp.lt.s32.totalorder %s1745_s24, %s1745_s24 }
0x1052   :  { %p2218_p1 = scmp.ne.s32.totalorder %s1745_s24, %s2217_s25  ;;  %p2223_p3 = scmp.lt.s32.totalorder %s2217_s25, %s2217_s25 }
0x1054   :  { %p2224_p4 = por %p2223_p3, %p2222_p2 }
0x1056   :  { %p2225_p5 = pnand %p2224_p4, %p2218_p1 }
0x1059   :  { %v2204_v43 = vpop.eup %2203 }
0x105a   :  { %v1284_v44 = vmul.f32 0.03125, %v2204_v43 }
0x105c   :  { %v1285_v45 = vpack.c.bf16 %v1284_v44, %v1284_v44 }
0x105e   :  { %2030 = vmatmul.mubr.msk.bf16.vlgmr.msra.gmra.mrb[4].mxu1 %vm532_vm6, %v1285_v45 }
0x105f   :  { %2034 = vmatpush3.bf16.xpose.msra.mxu1 %v2586_v13  ;;  %2037 = vmatprep.mubr.msk.bf16.mxu1 %vm2295_vm7, %v2293_v32 }
0x1060   :  { %2035 = vmatprep.subr.bf16.mxu1 %v2293_v32 }
0x1067   :  { %2036 = vmatpush3.bf16.xpose.msra.mxu1 %v2599_v6 }
0x1068   :  { %2057 = vmatprep.subr.bf16.mxu1 %v2293_v32 }
0x1131   :  { %v1323_v46 = vpop.f32.mrb[4].mxu1 }
0x1132   :  { %v1329_v47 = vmax.f32 %v1323_v46, 1e-33  ;;  %v2031_v28 = vpop.f32.mrb[5].mxu1 }
0x1133   :  { %v1326_v48 = vpop.f32.mrb[6].mxu1 }
0x1134   :  { %2205 = vrcp.f32 %v1329_v47  ;;  %v2032_v49 = vpop.f32.mrb[7].mxu1 }
0x113e   :  { %v2206_v29 = vpop.eup %2205 }
0x113f   :  { %v1331_v30 = vmul.f32 0.041666668, %v2206_v29 }
0x1141   :  { %v1332_v31 = vpack.c.bf16 %v1331_v30, %v1331_v30 }
0x1143   :  { %2038 = vmatmul.mubr.msk.bf16.vlgmr.msra.gmra.mrb[8].mxu1 %vm224_vm4, %v1332_v31 }
0x1144   :  { %2058 = vmatpush3.bf16.msra.mxu1 %v2581_v3  ;;  %2061 = vmatprep.mubr.msk.bf16.mxu1 %vm2295_vm7, %v2293_v32 }
0x1145   :  { %2059 = vmatprep.subr.bf16.mxu1 %v2293_v32 }
0x1148   :  { %2060 = vmatpush3.bf16.msra.mxu1 %v2590_v12 }
0x1149   :  { %2065 = vmatprep.subr.bf16.mxu1 %v2293_v32 }
0x1216   :  { %v1370_v50 = vpop.f32.mrb[8].mxu1 }
0x1217   :  { %v1376_v51 = vmax.f32 %v1370_v50, 1e-33  ;;  %v2039_v52 = vpop.f32.mrb[9].mxu1 }
0x1218   :  { %v1373_v53 = vpop.f32.mrb[10].mxu1 }
0x1219   :  { %2207 = vrcp.f32 %v1376_v51  ;;  %v2040_v54 = vpop.f32.mrb[11].mxu1 }
0x1223   :  { %v2208_v55 = vpop.eup %2207 }
0x1224   :  { %v1378_v57 = vmul.f32 0.03125, %v2208_v55 }
0x1226   :  { %v1379_v58 = vpack.c.bf16 %v1378_v57, %v1378_v57 }
0x1228   :  { %2046 = vmatmul.mubr.msk.bf16.vlgmr.msra.gmra.mrb[12].mxu0 %vm532_vm6, %v1379_v58 }
0x1229   :  { %2050 = vmatpush3.bf16.xpose.msra.mxu0 %v2586_v13  ;;  %2053 = vmatprep.mubr.msk.bf16.mxu0 %vm2295_vm7, %v2293_v32 }
0x122a   :  { %2051 = vmatprep.subr.bf16.mxu0 %v2293_v32 }
0x1231   :  { %2052 = vmatpush3.bf16.xpose.msra.mxu0 %v2599_v6 }
0x12fb   :  { %v1417_v59 = vpop.f32.mrb[12].mxu0 }
0x12fc   :  { %v1423_v61 = vmax.f32 %v1417_v59, 1e-33  ;;  %v2047_v60 = vpop.f32.mrb[13].mxu0 }
0x12fd   :  { %v1420_v63 = vpop.f32.mrb[14].mxu0 }
0x12fe   :  { %2209 = vrcp.f32 %v1423_v61  ;;  %v2048_v0 = vpop.f32.mrb[15].mxu0 }
0x1308   :  { %v2210_v56 = vpop.eup %2209 }
0x1309   :  { %v1425_v14 = vmul.f32 0.041666668, %v2210_v56 }
0x130b   :  { %v1426_v11 = vpack.c.bf16 %v1425_v14, %v1425_v14 }
0x130d   :  { %2054 = vmatmul.mubr.msk.bf16.vlgmr.msra.gmra.mrb[16].mxu0 %vm224_vm4, %v1426_v11 }
0x130e   :  { %2077 = vmatprep.mubr.msk.bf16.mxu0 %vm224_vm4, %v2581_v3 }
0x13e0   :  { %v1464_v2 = vpop.f32.mrb[16].mxu0 }
0x13e1   :  { %v1470_v4 = vmax.f32 %v1464_v2, 1e-33  ;;  %v2055_v5 = vpop.f32.mrb[17].mxu0 }
0x13e2   :  { %v1467_v7 = vpop.f32.mrb[18].mxu0 }
0x13e3   :  { %2211 = vrcp.f32 %v1470_v4  ;;  %v2056_v8 = vpop.f32.mrb[19].mxu0 }
0x13ed   :  { %v2212_v9 = vpop.eup %2211 }
0x13ee   :  { %v1472_v10 = vmul.f32 0.03125, %v2212_v9 }
0x13f0   :  { %v1473_v15 = vpack.c.bf16 %v1472_v10, %v1472_v10 }
0x13f2   :  { %2062 = vmatmul.mubr.msk.bf16.vlgmr.msra.gmra.mrb[12].mxu1 %vm532_vm6, %v1473_v15 }
0x13f3   :  { %2066 = vmatpush3.bf16.xpose.msra.mxu1 %v2586_v13  ;;  %2069 = vmatprep.mubr.msk.bf16.mxu1 %vm2295_vm7, %v2293_v32 }
0x13f4   :  { %2067 = vmatprep.subr.bf16.mxu1 %v2293_v32 }
0x13fb   :  { %2068 = vmatpush3.bf16.xpose.msra.mxu1 %v2599_v6 }
0x14c5   :  { %v1511_v3 = vpop.f32.mrb[12].mxu1 }
0x14c6   :  { %v1517_v16 = vmax.f32 %v1511_v3, 1e-33  ;;  %v2063_v17 = vpop.f32.mrb[13].mxu1 }
0x14c7   :  { %v1514_v18 = vpop.f32.mrb[14].mxu1 }
0x14c8   :  { %2213 = vrcp.f32 %v1517_v16  ;;  %v2064_v19 = vpop.f32.mrb[15].mxu1 }
0x14d2   :  { %v2214_v20 = vpop.eup %2213 }
0x14d3   :  { %v1519_v21 = vmul.f32 0.041666668, %v2214_v20 }
0x14d5   :  { %v1520_v22 = vpack.c.bf16 %v1519_v21, %v1519_v21  ;;  %1567 = vxpose.xlu0.b32.start.end [1/1] (short) (narrow) %v1519_v21, 24 }
0x14d7   :  { %2070 = vmatmul.mubr.msk.bf16.vlgmr.msra.gmra.mrb[16].mxu1 %vm224_vm4, %v1520_v22 }
0x1555   :  { %v1583_v13 = vpop.trf.xlu0 }
0x1556   :  { %1604 = vperm.xlu1 %2188, %v1583_v13  }
0x1559   :  { %v1584_v23 = vpop.trf.xlu0 }
0x155a   :  { %1609 = vperm.xlu1 %2188, %v1584_v23  }
0x155d   :  { %v1585_v24 = vpop.trf.xlu0 }
0x155e   :  { %1614 = vperm.xlu1 %2188, %v1585_v24  }
0x15aa   :  { %v1558_v32 = vpop.f32.mrb[16].mxu1 }
0x15ab   :  { %v1564_v6 = vmax.f32 %v1558_v32, 1e-33  ;;  %v2071_v25 = vpop.f32.mrb[17].mxu1 }
0x15ac   :  { %v1561_v26 = vpop.f32.mrb[18].mxu1 }
0x15ad   :  { %2215 = vrcp.f32 %v1564_v6  ;;  %v2072_v62 = vpop.f32.mrb[19].mxu1 }
0x15b7   :  { %v2216_v27 = vpop.eup %2215 }
0x15b8   :  { %v1566_v33 = vmul.f32 0.03125, %v2216_v27 }
0x15ba   :  { %1675 = vxpose.xlu1.b32.start.end [1/1] (short) (narrow) %v1566_v33, 32 }
0x15d5   :  { %v1605_v35 = vpop.permute.xlu1 %1604 }
0x15d6   :  { %v1617_v37 = vmul.f32 %v1605_v35, %v1599_v34 }
0x15d9   :  { %v1610_v1 = vpop.permute.xlu1 %1609 }
0x15da   :  { %v1618_v38 = vmul.f32 %v1610_v1, %v1600_v36 }
0x15dc   :  { %v1620_v40 = vpack.c.bf16 %v1618_v38, %v1617_v37 }
0x15dd   :  { %v1615_v41 = vpop.permute.xlu1 %1614 }
0x15de   :  { %v1619_v42 = vmul.f32 %v1615_v41, %v1601_v39  ;;  %2073 = vmatprep.subr.bf16.mxu0 %v1620_v40 }
0x15df   :  { %2074 = vmatpush3.bf16.msra.mxu0 %v1620_v40 }
0x15e0   :  { %v1621_v43 = vpack.c.bf16 %v1619_v42, %v1619_v42 }
0x15e2   :  { %v1624_v44 = vsel %vm1622_vm8, %v1621_v43, 0  ;;  %2093 = vmatprep.subr.msk.bf16.mxu0 %vm1622_vm8, %v1621_v43 }
0x15e3   :  { %2076 = vmatpush3.bf16.msra.mxu0 %v1624_v44 }
0x15e6   :  { %2078 = vmatmul.mubr.msk.bf16.vlgmr.msra.gmra.mrb[20].mxu0 %vm224_vm4, %v2590_v12 }
0x163a   :  { %v1691_v45 = vpop.trf.xlu1 }
0x163b   :  { %v1707_v46 = vmul.f32 32.0, %v1691_v45 }
0x163d   :  { %1713 = vperm.xlu0 %2187, %v1707_v46  }
0x163e   :  { %v1692_v47 = vpop.trf.xlu1 }
0x163f   :  { %v1708_v28 = vmul.f32 32.0, %v1692_v47 }
0x1641   :  { %1718 = vperm.xlu1 %2188, %v1708_v28  }
0x1642   :  { %v1693_v48 = vpop.trf.xlu1 }
0x1643   :  { %v1709_v49 = vmul.f32 32.0, %v1693_v48 }
0x1645   :  { %1723 = vperm.xlu0 %2187, %v1709_v49  }
0x1646   :  { %v1694_v29 = vpop.trf.xlu1 }
0x1647   :  { %v1710_v30 = vmul.f32 32.0, %v1694_v29 }
0x1649   :  { %1728 = vperm.xlu0 %2187, %v1710_v30  }
0x16b9   :  { %v2079_v31 = vpop.f32.mrb[20].mxu0 }
0x16ba   :  { %v1660_v50 = vpop.f32.mrb[21].mxu0 }
0x16bb   :  { %v2080_v51 = vpop.f32.mrb[22].mxu0 }
0x16bc   :  { %v1714_v52 = vpop.permute.xlu0 %1713  ;;  %v1663_v53 = vpop.f32.mrb[23].mxu0 }
0x16bd   :  { %v1731_v54 = vmul.f32 %v1714_v52, %v1660_v50 }
0x16bf   :  { %1735 = vst [vmem:[#allocation3] sm:$0xff] %v1731_v54 }
0x16c0   :  { %v1719_v12 = vpop.permute.xlu1 %1718 }
0x16c1   :  { %v1732_v55 = vmul.f32 %v1719_v12, %v1663_v53 }
0x16c3   :  { %1736 = vst [vmem:[#allocation3 + $0x8] sm:$0xff] %v1732_v55 }
0x16c4   :  { %v1724_v57 = vpop.permute.xlu0 %1723 }
0x16c5   :  { %v1733_v58 = vmul.f32 %v2079_v31, %v1724_v57 }
0x16c7   :  { %1737 = vst [vmem:[#allocation3 + $0x10] sm:$0xff] %v1733_v58 }
0x16c8   :  { %v1729_v59 = vpop.permute.xlu0 %1728 }
0x16c9   :  { %v1734_v61 = vmul.f32 %v2080_v51, %v1729_v59 }
0x16cb   :  { %1738 = vst [vmem:[#allocation3 + $0x18] sm:$0xff] %v1734_v61 }
0x16cc   :  { %2228 = shalt.err (!%p2225_p5)
}
0x16cd   :  { %s2229_s27 = scalar_lea.hbm %s2687_s5, 512 }
0x16ce   :  { %p2230_p6 = scmp.ne.s32.totalorder %s2687_s5, %s2229_s27  ;;  %p2233_p7 = scmp.lt.u32.totalorder %s2229_s27, %s2687_s5 }
0x16d0   :  { %p2235_p8 = pnand %p2233_p7, %p2230_p6 }
0x16d2   :  { %2238 = shalt.err (!%p2235_p8)
}
0x16d3   :  { %s2298_s6 = smov 128   ;;  %s2299_s7 = smov 8  }
0x16d4   :  { %1750 = dma.vmem_to_hbm [thread:$0]  %s1745_s24, 512, %s2687_s5, [#allocation4], %s2298_s6, %s2298_s6, %s2299_s7  }
0x16d5   :  { %2263 = dma.done.wait [#allocation4], 512  }
0x16d6   :  { %2264 = vsyncadd [#allocation4], 4294966784 }
0x16d7   :  { %1754 = vsyncpa [#allocation4], 1 }

</bundles_post_ra>
